<compile_context>
chip_gen: v5e
topology: v5e:2x2
jax: 0.10.0
libtpu: 0.0.40
codegen_flags: <defaults>
</compile_context>

<pallas_src>
import math
import functools

import jax
import jax.numpy as jnp
from jax.experimental import pallas as pl
from jax.experimental.pallas import tpu as pltpu


# ----------------------------------------------------------------------------
# In-kernel helpers (operate on ONE set per grid step; everything is in VMEM)
# ----------------------------------------------------------------------------
def _mab(Q, K, p, num_heads):
    """Multihead Attention Block (ln=False).  Q: (Nq, dq), K: (Nk, dk)."""
    Nk = K.shape[0]
    dv = p["wq"].shape[1]
    hd = dv // num_heads
    scale = 1.0 / math.sqrt(dv)      # Set-Transformer scales by sqrt(dim_V), not head dim

    q = jnp.dot(Q, p["wq"][...], preferred_element_type=jnp.float32) + p["bq"][...]
    k = jnp.dot(K, p["wk"][...], preferred_element_type=jnp.float32) + p["bk"][...]
    v = jnp.dot(K, p["wv"][...], preferred_element_type=jnp.float32) + p["bv"][...]

    if Nk == 1:
        # Exact simplification: softmax over a single key is 1, so per-head
        # attention output == v and O = Q_ + V_ (residual uses projected query).
        O = q + jnp.broadcast_to(v, q.shape)
    else:
        # Static unroll over heads (num_heads is a Python int — fixes the
        # TracerIntegerConversionError).  q @ k^T via dot_general contracting
        # the last dims of both operands (trans_b) — no transpose materialized.
        dn = (((1,), (1,)), ((), ()))
        outs = []
        for h in range(num_heads):
            sl = slice(h * hd, (h + 1) * hd)
            qh, kh, vh = q[:, sl], k[:, sl], v[:, sl]
            s = jax.lax.dot_general(qh, kh, dn,
                                    preferred_element_type=jnp.float32) * scale
            s = s - jnp.max(s, axis=-1, keepdims=True)
            e = jnp.exp(s)
            pr = e * pl.reciprocal(jnp.sum(e, axis=-1, keepdims=True), approx=True)
            outs.append(jnp.dot(pr, vh, preferred_element_type=jnp.float32))
        O = q + jnp.concatenate(outs, axis=-1)   # residual on the *projected* query

    # O = O + relu(fc_o(O))   (ln=False configuration)
    f = jnp.dot(O, p["wo"][...], preferred_element_type=jnp.float32) + p["bo"][...]
    return O + jnp.maximum(f, 0.0)


def _isab(X, p, num_heads):
    I = p["I"][0]                                   # (num_inds, dim_out)
    H = _mab(I, X, p["mab0"], num_heads)
    return _mab(X, H, p["mab1"], num_heads)


def _pma(X, p, num_heads):
    S = p["S"][0]                                   # (num_seeds, dim)
    return _mab(S, X, p["mab"], num_heads)


# ----------------------------------------------------------------------------
# Fused kernel: block(1x1 conv + ReLU) + avgpool + full SetTransformer
# ----------------------------------------------------------------------------
def fused_kernel(x_ref, *refs, treedef, num_heads, n_segment, hw):
    o_ref = refs[-1]
    P = jax.tree_util.tree_unflatten(treedef, list(refs[:-1]))

    # --- block + AdaptiveAvgPool2d(1): one matmul + segment mean -------------
    xb = x_ref[...]                                               # (n_seg*hw, cin)
    y = jnp.dot(xb, P["block"]["w"][...], preferred_element_type=jnp.float32)
    y = jnp.maximum(y + P["block"]["b"][...], 0.0)                # (n_seg*hw, c)
    c = y.shape[-1]
    X = jnp.mean(y.reshape(n_segment, hw, c), axis=1)             # (n_seg, c)

    # --- SetTransformer: enc = ISAB, ISAB ; dec = PMA, SAB, SAB, Linear ------
    X = _isab(X, P["isab1"], num_heads)
    X = _isab(X, P["isab2"], num_heads)
    X = _pma(X, P["pma"], num_heads)
    X = _mab(X, X, P["sab1"], num_heads)
    X = _mab(X, X, P["sab2"], num_heads)
    out = (jnp.dot(X, P["fc_w"][...], preferred_element_type=jnp.float32)
           + P["fc_b"][...])                                      # (num_outputs, dim_out)
    o_ref[0] = out.astype(o_ref.dtype)


# ----------------------------------------------------------------------------
# Wrapper
# ----------------------------------------------------------------------------
def set_transformer_wrapper_forward(x_nchw, params, *, num_heads, n_segment):
    nt, cin, h, w = x_nchw.shape
    hw = h * w
    B = nt // n_segment
    # NCHW -> (nt*H*W, C_in): channels on the lane axis inside the kernel.
    x_flat = jnp.transpose(x_nchw, (0, 2, 3, 1)).reshape(nt * hw, cin)

    flat, treedef = jax.tree_util.tree_flatten(params)
    num_outputs = params["pma"]["S"].shape[1]
    dim_output = params["fc_w"].shape[1]

    def _const_spec(a):
        # full-array block, constant block index -> stays resident across grid
        return pl.BlockSpec(a.shape, lambda b, _r=a.ndim: (0,) * _r)

    kernel = functools.partial(fused_kernel, treedef=treedef,
                               num_heads=num_heads, n_segment=n_segment, hw=hw)
    return pl.pallas_call(
        kernel,
        out_shape=jax.ShapeDtypeStruct((B, num_outputs, dim_output), jnp.float32),
        grid=(B,),
        in_specs=[pl.BlockSpec((n_segment * hw, cin), lambda b: (b, 0))]
                 + [_const_spec(a) for a in flat],
        out_specs=pl.BlockSpec((1, num_outputs, dim_output), lambda b: (b, 0, 0)),
        compiler_params=pltpu.CompilerParams(
            dimension_semantics=("parallel",)),   # v7x: one set per TensorCore
    )(x_flat, *flat)


# ----------------------------------------------------------------------------
# Parameter construction (deterministic, synthetic)
# ----------------------------------------------------------------------------
def _linear_init(key, din, dout):
    kw, kb = jax.random.split(key)
    bound = 1.0 / math.sqrt(din)
    wt = jax.random.uniform(kw, (dout, din), jnp.float32, -bound, bound)  # torch (out,in)
    b = jax.random.uniform(kb, (dout,), jnp.float32, -bound, bound)
    return wt.T, b[None, :]          # kernel layout: (din, dout), (1, dout)


def make_mab_params(key, dq, dk, dv):
    kq, kk, kv, ko = jax.random.split(key, 4)
    wq, bq = _linear_init(kq, dq, dv)
    wk, bk = _linear_init(kk, dk, dv)
    wv, bv = _linear_init(kv, dk, dv)
    wo, bo = _linear_init(ko, dv, dv)
    return dict(wq=wq, bq=bq, wk=wk, bk=bk, wv=wv, bv=bv, wo=wo, bo=bo)


def make_isab_params(key, dim_in, dim_out, num_inds):
    ki, k0, k1 = jax.random.split(key, 3)
    bound = math.sqrt(6.0 / (num_inds + dim_out))   # xavier-uniform-ish
    I = jax.random.uniform(ki, (1, num_inds, dim_out), jnp.float32, -bound, bound)
    return dict(I=I,
                mab0=make_mab_params(k0, dim_out, dim_in, dim_out),
                mab1=make_mab_params(k1, dim_in, dim_out, dim_out))


def make_pma_params(key, dim, num_seeds):
    ks, km = jax.random.split(key)
    bound = math.sqrt(6.0 / (num_seeds + dim))
    S = jax.random.uniform(ks, (1, num_seeds, dim), jnp.float32, -bound, bound)
    return dict(S=S, mab=make_mab_params(km, dim, dim, dim))


def make_params(key, cin, c, n_segment, num_outputs):
    dim_hidden = c // 2
    kbw, kbb, k1, k2, k3, k4, k5, k6 = jax.random.split(key, 8)
    bound = 1.0 / math.sqrt(cin)
    fc_w, fc_b = _linear_init(k6, dim_hidden, c)
    return dict(
        block=dict(
            w=jax.random.uniform(kbw, (cin, c), jnp.float32, -bound, bound),
            b=jax.random.uniform(kbb, (1, c), jnp.float32, -bound, bound)),
        isab1=make_isab_params(k1, c, dim_hidden, n_segment),
        isab2=make_isab_params(k2, dim_hidden, dim_hidden, n_segment),
        pma=make_pma_params(k3, dim_hidden, num_outputs),
        sab1=make_mab_params(k4, dim_hidden, dim_hidden, dim_hidden),
        sab2=make_mab_params(k5, dim_hidden, dim_hidden, dim_hidden),
        fc_w=fc_w, fc_b=fc_b,
    )


# ----------------------------------------------------------------------------
# Main
# ----------------------------------------------------------------------------
if __name__ == "__main__":
    n_segment = 8
    batch = 2
    nt = batch * n_segment          # 16 frames
    cin = 16
    h = w = 8
    c = 64                          # block.bn3.num_features
    num_heads = 4                   # SetTransformer default
    num_outputs = 1

    key = jax.random.PRNGKey(0)
    k_in, k_p = jax.random.split(key)
    params = make_params(k_p, cin, c, n_segment, num_outputs)
    x = jax.random.normal(k_in, (nt, cin, h, w), jnp.float32)

    # num_heads / n_segment are bound statically (not traced) -> fixes the
    # previous TracerIntegerConversionError on `range(num_heads)`.
    fwd = jax.jit(functools.partial(set_transformer_wrapper_forward,
                                    num_heads=num_heads, n_segment=n_segment))
    out = jax.block_until_ready(fwd(x, params))

    assert out.shape == (batch, num_outputs, c), out.shape
    assert bool(jnp.all(jnp.isfinite(out)))
    print("KERNEL_OK")
</pallas_src>

<mosaic_0001>
module attributes {stable_mosaic.version = 11 : i64} {
  func.func @fused_kernel(%arg0: i32, %arg1: memref<512x16xf32, #tpu.memory_space<vmem>>, %arg2: memref<1x64xf32, #tpu.memory_space<vmem>>, %arg3: memref<16x64xf32, #tpu.memory_space<vmem>>, %arg4: memref<1x64xf32, #tpu.memory_space<vmem>>, %arg5: memref<32x64xf32, #tpu.memory_space<vmem>>, %arg6: memref<1x8x32xf32, #tpu.memory_space<vmem>>, %arg7: memref<1x32xf32, #tpu.memory_space<vmem>>, %arg8: memref<1x32xf32, #tpu.memory_space<vmem>>, %arg9: memref<1x32xf32, #tpu.memory_space<vmem>>, %arg10: memref<1x32xf32, #tpu.memory_space<vmem>>, %arg11: memref<64x32xf32, #tpu.memory_space<vmem>>, %arg12: memref<32x32xf32, #tpu.memory_space<vmem>>, %arg13: memref<32x32xf32, #tpu.memory_space<vmem>>, %arg14: memref<64x32xf32, #tpu.memory_space<vmem>>, %arg15: memref<1x32xf32, #tpu.memory_space<vmem>>, %arg16: memref<1x32xf32, #tpu.memory_space<vmem>>, %arg17: memref<1x32xf32, #tpu.memory_space<vmem>>, %arg18: memref<1x32xf32, #tpu.memory_space<vmem>>, %arg19: memref<32x32xf32, #tpu.memory_space<vmem>>, %arg20: memref<32x32xf32, #tpu.memory_space<vmem>>, %arg21: memref<64x32xf32, #tpu.memory_space<vmem>>, %arg22: memref<32x32xf32, #tpu.memory_space<vmem>>, %arg23: memref<1x8x32xf32, #tpu.memory_space<vmem>>, %arg24: memref<1x32xf32, #tpu.memory_space<vmem>>, %arg25: memref<1x32xf32, #tpu.memory_space<vmem>>, %arg26: memref<1x32xf32, #tpu.memory_space<vmem>>, %arg27: memref<1x32xf32, #tpu.memory_space<vmem>>, %arg28: memref<32x32xf32, #tpu.memory_space<vmem>>, %arg29: memref<32x32xf32, #tpu.memory_space<vmem>>, %arg30: memref<32x32xf32, #tpu.memory_space<vmem>>, %arg31: memref<32x32xf32, #tpu.memory_space<vmem>>, %arg32: memref<1x32xf32, #tpu.memory_space<vmem>>, %arg33: memref<1x32xf32, #tpu.memory_space<vmem>>, %arg34: memref<1x32xf32, #tpu.memory_space<vmem>>, %arg35: memref<1x32xf32, #tpu.memory_space<vmem>>, %arg36: memref<32x32xf32, #tpu.memory_space<vmem>>, %arg37: memref<32x32xf32, #tpu.memory_space<vmem>>, %arg38: memref<32x32xf32, #tpu.memory_space<vmem>>, %arg39: memref<32x32xf32, #tpu.memory_space<vmem>>, %arg40: memref<1x1x32xf32, #tpu.memory_space<vmem>>, %arg41: memref<1x32xf32, #tpu.memory_space<vmem>>, %arg42: memref<1x32xf32, #tpu.memory_space<vmem>>, %arg43: memref<1x32xf32, #tpu.memory_space<vmem>>, %arg44: memref<1x32xf32, #tpu.memory_space<vmem>>, %arg45: memref<32x32xf32, #tpu.memory_space<vmem>>, %arg46: memref<32x32xf32, #tpu.memory_space<vmem>>, %arg47: memref<32x32xf32, #tpu.memory_space<vmem>>, %arg48: memref<32x32xf32, #tpu.memory_space<vmem>>, %arg49: memref<1x32xf32, #tpu.memory_space<vmem>>, %arg50: memref<1x32xf32, #tpu.memory_space<vmem>>, %arg51: memref<1x32xf32, #tpu.memory_space<vmem>>, %arg52: memref<1x32xf32, #tpu.memory_space<vmem>>, %arg53: memref<32x32xf32, #tpu.memory_space<vmem>>, %arg54: memref<32x32xf32, #tpu.memory_space<vmem>>, %arg55: memref<32x32xf32, #tpu.memory_space<vmem>>, %arg56: memref<32x32xf32, #tpu.memory_space<vmem>>, %arg57: memref<1x32xf32, #tpu.memory_space<vmem>>, %arg58: memref<1x32xf32, #tpu.memory_space<vmem>>, %arg59: memref<1x32xf32, #tpu.memory_space<vmem>>, %arg60: memref<1x32xf32, #tpu.memory_space<vmem>>, %arg61: memref<32x32xf32, #tpu.memory_space<vmem>>, %arg62: memref<32x32xf32, #tpu.memory_space<vmem>>, %arg63: memref<32x32xf32, #tpu.memory_space<vmem>>, %arg64: memref<32x32xf32, #tpu.memory_space<vmem>>, %arg65: memref<1x1x64xf32, #tpu.memory_space<vmem>>) attributes {dimension_semantics = [#tpu.dimension_semantics<parallel>], iteration_bounds = array<i64: 2>, scalar_prefetch = 0 : i64, scratch_operands = 0 : i64, tpu.core_type = #tpu.core_type<tc>, window_params = [{transform_indices = @transform_0, window_bounds = array<i64: 512, 16>}, {pipeline_mode = #tpu.pipeline_mode<synchronous>, transform_indices = @transform_1, window_bounds = array<i64: 1, 64>}, {pipeline_mode = #tpu.pipeline_mode<synchronous>, transform_indices = @transform_2, window_bounds = array<i64: 16, 64>}, {pipeline_mode = #tpu.pipeline_mode<synchronous>, transform_indices = @transform_3, window_bounds = array<i64: 1, 64>}, {pipeline_mode = #tpu.pipeline_mode<synchronous>, transform_indices = @transform_4, window_bounds = array<i64: 32, 64>}, {pipeline_mode = #tpu.pipeline_mode<synchronous>, transform_indices = @transform_5, window_bounds = array<i64: 1, 8, 32>}, {pipeline_mode = #tpu.pipeline_mode<synchronous>, transform_indices = @transform_6, window_bounds = array<i64: 1, 32>}, {pipeline_mode = #tpu.pipeline_mode<synchronous>, transform_indices = @transform_7, window_bounds = array<i64: 1, 32>}, {pipeline_mode = #tpu.pipeline_mode<synchronous>, transform_indices = @transform_8, window_bounds = array<i64: 1, 32>}, {pipeline_mode = #tpu.pipeline_mode<synchronous>, transform_indices = @transform_9, window_bounds = array<i64: 1, 32>}, {pipeline_mode = #tpu.pipeline_mode<synchronous>, transform_indices = @transform_10, window_bounds = array<i64: 64, 32>}, {pipeline_mode = #tpu.pipeline_mode<synchronous>, transform_indices = @transform_11, window_bounds = array<i64: 32, 32>}, {pipeline_mode = #tpu.pipeline_mode<synchronous>, transform_indices = @transform_12, window_bounds = array<i64: 32, 32>}, {pipeline_mode = #tpu.pipeline_mode<synchronous>, transform_indices = @transform_13, window_bounds = array<i64: 64, 32>}, {pipeline_mode = #tpu.pipeline_mode<synchronous>, transform_indices = @transform_14, window_bounds = array<i64: 1, 32>}, {pipeline_mode = #tpu.pipeline_mode<synchronous>, transform_indices = @transform_15, window_bounds = array<i64: 1, 32>}, {pipeline_mode = #tpu.pipeline_mode<synchronous>, transform_indices = @transform_16, window_bounds = array<i64: 1, 32>}, {pipeline_mode = #tpu.pipeline_mode<synchronous>, transform_indices = @transform_17, window_bounds = array<i64: 1, 32>}, {pipeline_mode = #tpu.pipeline_mode<synchronous>, transform_indices = @transform_18, window_bounds = array<i64: 32, 32>}, {pipeline_mode = #tpu.pipeline_mode<synchronous>, transform_indices = @transform_19, window_bounds = array<i64: 32, 32>}, {pipeline_mode = #tpu.pipeline_mode<synchronous>, transform_indices = @transform_20, window_bounds = array<i64: 64, 32>}, {pipeline_mode = #tpu.pipeline_mode<synchronous>, transform_indices = @transform_21, window_bounds = array<i64: 32, 32>}, {pipeline_mode = #tpu.pipeline_mode<synchronous>, transform_indices = @transform_22, window_bounds = array<i64: 1, 8, 32>}, {pipeline_mode = #tpu.pipeline_mode<synchronous>, transform_indices = @transform_23, window_bounds = array<i64: 1, 32>}, {pipeline_mode = #tpu.pipeline_mode<synchronous>, transform_indices = @transform_24, window_bounds = array<i64: 1, 32>}, {pipeline_mode = #tpu.pipeline_mode<synchronous>, transform_indices = @transform_25, window_bounds = array<i64: 1, 32>}, {pipeline_mode = #tpu.pipeline_mode<synchronous>, transform_indices = @transform_26, window_bounds = array<i64: 1, 32>}, {pipeline_mode = #tpu.pipeline_mode<synchronous>, transform_indices = @transform_27, window_bounds = array<i64: 32, 32>}, {pipeline_mode = #tpu.pipeline_mode<synchronous>, transform_indices = @transform_28, window_bounds = array<i64: 32, 32>}, {pipeline_mode = #tpu.pipeline_mode<synchronous>, transform_indices = @transform_29, window_bounds = array<i64: 32, 32>}, {pipeline_mode = #tpu.pipeline_mode<synchronous>, transform_indices = @transform_30, window_bounds = array<i64: 32, 32>}, {pipeline_mode = #tpu.pipeline_mode<synchronous>, transform_indices = @transform_31, window_bounds = array<i64: 1, 32>}, {pipeline_mode = #tpu.pipeline_mode<synchronous>, transform_indices = @transform_32, window_bounds = array<i64: 1, 32>}, {pipeline_mode = #tpu.pipeline_mode<synchronous>, transform_indices = @transform_33, window_bounds = array<i64: 1, 32>}, {pipeline_mode = #tpu.pipeline_mode<synchronous>, transform_indices = @transform_34, window_bounds = array<i64: 1, 32>}, {pipeline_mode = #tpu.pipeline_mode<synchronous>, transform_indices = @transform_35, window_bounds = array<i64: 32, 32>}, {pipeline_mode = #tpu.pipeline_mode<synchronous>, transform_indices = @transform_36, window_bounds = array<i64: 32, 32>}, {pipeline_mode = #tpu.pipeline_mode<synchronous>, transform_indices = @transform_37, window_bounds = array<i64: 32, 32>}, {pipeline_mode = #tpu.pipeline_mode<synchronous>, transform_indices = @transform_38, window_bounds = array<i64: 32, 32>}, {pipeline_mode = #tpu.pipeline_mode<synchronous>, transform_indices = @transform_39, window_bounds = array<i64: 1, 1, 32>}, {pipeline_mode = #tpu.pipeline_mode<synchronous>, transform_indices = @transform_40, window_bounds = array<i64: 1, 32>}, {pipeline_mode = #tpu.pipeline_mode<synchronous>, transform_indices = @transform_41, window_bounds = array<i64: 1, 32>}, {pipeline_mode = #tpu.pipeline_mode<synchronous>, transform_indices = @transform_42, window_bounds = array<i64: 1, 32>}, {pipeline_mode = #tpu.pipeline_mode<synchronous>, transform_indices = @transform_43, window_bounds = array<i64: 1, 32>}, {pipeline_mode = #tpu.pipeline_mode<synchronous>, transform_indices = @transform_44, window_bounds = array<i64: 32, 32>}, {pipeline_mode = #tpu.pipeline_mode<synchronous>, transform_indices = @transform_45, window_bounds = array<i64: 32, 32>}, {pipeline_mode = #tpu.pipeline_mode<synchronous>, transform_indices = @transform_46, window_bounds = array<i64: 32, 32>}, {pipeline_mode = #tpu.pipeline_mode<synchronous>, transform_indices = @transform_47, window_bounds = array<i64: 32, 32>}, {pipeline_mode = #tpu.pipeline_mode<synchronous>, transform_indices = @transform_48, window_bounds = array<i64: 1, 32>}, {pipeline_mode = #tpu.pipeline_mode<synchronous>, transform_indices = @transform_49, window_bounds = array<i64: 1, 32>}, {pipeline_mode = #tpu.pipeline_mode<synchronous>, transform_indices = @transform_50, window_bounds = array<i64: 1, 32>}, {pipeline_mode = #tpu.pipeline_mode<synchronous>, transform_indices = @transform_51, window_bounds = array<i64: 1, 32>}, {pipeline_mode = #tpu.pipeline_mode<synchronous>, transform_indices = @transform_52, window_bounds = array<i64: 32, 32>}, {pipeline_mode = #tpu.pipeline_mode<synchronous>, transform_indices = @transform_53, window_bounds = array<i64: 32, 32>}, {pipeline_mode = #tpu.pipeline_mode<synchronous>, transform_indices = @transform_54, window_bounds = array<i64: 32, 32>}, {pipeline_mode = #tpu.pipeline_mode<synchronous>, transform_indices = @transform_55, window_bounds = array<i64: 32, 32>}, {pipeline_mode = #tpu.pipeline_mode<synchronous>, transform_indices = @transform_56, window_bounds = array<i64: 1, 32>}, {pipeline_mode = #tpu.pipeline_mode<synchronous>, transform_indices = @transform_57, window_bounds = array<i64: 1, 32>}, {pipeline_mode = #tpu.pipeline_mode<synchronous>, transform_indices = @transform_58, window_bounds = array<i64: 1, 32>}, {pipeline_mode = #tpu.pipeline_mode<synchronous>, transform_indices = @transform_59, window_bounds = array<i64: 1, 32>}, {pipeline_mode = #tpu.pipeline_mode<synchronous>, transform_indices = @transform_60, window_bounds = array<i64: 32, 32>}, {pipeline_mode = #tpu.pipeline_mode<synchronous>, transform_indices = @transform_61, window_bounds = array<i64: 32, 32>}, {pipeline_mode = #tpu.pipeline_mode<synchronous>, transform_indices = @transform_62, window_bounds = array<i64: 32, 32>}, {pipeline_mode = #tpu.pipeline_mode<synchronous>, transform_indices = @transform_63, window_bounds = array<i64: 32, 32>}, {transform_indices = @transform_64, window_bounds = array<i64: 1, 1, 64>}]} {
    %c0 = arith.constant 0 : index
    %c0_0 = arith.constant 0 : index
    %0 = vector.load %arg1[%c0, %c0_0] : memref<512x16xf32, #tpu.memory_space<vmem>>, vector<512x16xf32>
    %c0_1 = arith.constant 0 : index
    %c0_2 = arith.constant 0 : index
    %1 = vector.load %arg3[%c0_1, %c0_2] : memref<16x64xf32, #tpu.memory_space<vmem>>, vector<16x64xf32>
    %cst = arith.constant dense<0.000000e+00> : vector<512x64xf32>
    %2 = tpu.matmul %0, %1, %cst {dimension_numbers = #tpu.dot_dimension_numbers<[1], [0], [0], [1], [0, 0, 1, 1], [], []>} : vector<512x16xf32>, vector<16x64xf32>, vector<512x64xf32> -> vector<512x64xf32>
    %c0_3 = arith.constant 0 : index
    %c0_4 = arith.constant 0 : index
    %3 = vector.load %arg2[%c0_3, %c0_4] : memref<1x64xf32, #tpu.memory_space<vmem>>, vector<1x64xf32>
    %4 = vector.broadcast %3 : vector<1x64xf32> to vector<512x64xf32>
    %5 = arith.addf %2, %4 : vector<512x64xf32>
    %cst_5 = arith.constant 0.000000e+00 : f32
    %6 = vector.broadcast %cst_5 : f32 to vector<512x64xf32>
    %7 = arith.maximumf %5, %6 : vector<512x64xf32>
    %8 = vector.shape_cast %7 : vector<512x64xf32> to vector<8x64x64xf32>
    %cst_6 = arith.constant dense<0.000000e+00> : vector<8x64xf32>
    %9 = vector.multi_reduction <add>, %8, %cst_6 [1] : vector<8x64x64xf32> to vector<8x64xf32>
    %cst_7 = arith.constant 6.400000e+01 : f32
    %10 = vector.broadcast %cst_7 : f32 to vector<8x64xf32>
    %11 = arith.divf %9, %10 : vector<8x64xf32>
    %c0_8 = arith.constant 0 : index
    %c0_9 = arith.constant 0 : index
    %c0_10 = arith.constant 0 : index
    %12 = vector.load %arg6[%c0_8, %c0_9, %c0_10] : memref<1x8x32xf32, #tpu.memory_space<vmem>>, vector<1x8x32xf32>
    %13 = vector.shape_cast %12 : vector<1x8x32xf32> to vector<8x32xf32>
    %c0_11 = arith.constant 0 : index
    %c0_12 = arith.constant 0 : index
    %14 = vector.load %arg13[%c0_11, %c0_12] : memref<32x32xf32, #tpu.memory_space<vmem>>, vector<32x32xf32>
    %cst_13 = arith.constant dense<0.000000e+00> : vector<8x32xf32>
    %15 = tpu.matmul %13, %14, %cst_13 {dimension_numbers = #tpu.dot_dimension_numbers<[1], [0], [0], [1], [0, 0, 1, 1], [], []>} : vector<8x32xf32>, vector<32x32xf32>, vector<8x32xf32> -> vector<8x32xf32>
    %c0_14 = arith.constant 0 : index
    %c0_15 = arith.constant 0 : index
    %16 = vector.load %arg9[%c0_14, %c0_15] : memref<1x32xf32, #tpu.memory_space<vmem>>, vector<1x32xf32>
    %17 = vector.broadcast %16 : vector<1x32xf32> to vector<8x32xf32>
    %18 = arith.addf %15, %17 : vector<8x32xf32>
    %c0_16 = arith.constant 0 : index
    %c0_17 = arith.constant 0 : index
    %19 = vector.load %arg11[%c0_16, %c0_17] : memref<64x32xf32, #tpu.memory_space<vmem>>, vector<64x32xf32>
    %cst_18 = arith.constant dense<0.000000e+00> : vector<8x32xf32>
    %20 = tpu.matmul %11, %19, %cst_18 {dimension_numbers = #tpu.dot_dimension_numbers<[1], [0], [0], [1], [0, 0, 1, 1], [], []>} : vector<8x64xf32>, vector<64x32xf32>, vector<8x32xf32> -> vector<8x32xf32>
    %c0_19 = arith.constant 0 : index
    %c0_20 = arith.constant 0 : index
    %21 = vector.load %arg7[%c0_19, %c0_20] : memref<1x32xf32, #tpu.memory_space<vmem>>, vector<1x32xf32>
    %22 = vector.broadcast %21 : vector<1x32xf32> to vector<8x32xf32>
    %23 = arith.addf %20, %22 : vector<8x32xf32>
    %c0_21 = arith.constant 0 : index
    %c0_22 = arith.constant 0 : index
    %24 = vector.load %arg14[%c0_21, %c0_22] : memref<64x32xf32, #tpu.memory_space<vmem>>, vector<64x32xf32>
    %cst_23 = arith.constant dense<0.000000e+00> : vector<8x32xf32>
    %25 = tpu.matmul %11, %24, %cst_23 {dimension_numbers = #tpu.dot_dimension_numbers<[1], [0], [0], [1], [0, 0, 1, 1], [], []>} : vector<8x64xf32>, vector<64x32xf32>, vector<8x32xf32> -> vector<8x32xf32>
    %c0_24 = arith.constant 0 : index
    %c0_25 = arith.constant 0 : index
    %26 = vector.load %arg10[%c0_24, %c0_25] : memref<1x32xf32, #tpu.memory_space<vmem>>, vector<1x32xf32>
    %27 = vector.broadcast %26 : vector<1x32xf32> to vector<8x32xf32>
    %28 = arith.addf %25, %27 : vector<8x32xf32>
    %29 = vector.extract_strided_slice %18 {offsets = [0, 0], sizes = [8, 8], strides = [1, 1]} : vector<8x32xf32> to vector<8x8xf32>
    %30 = vector.extract_strided_slice %23 {offsets = [0, 0], sizes = [8, 8], strides = [1, 1]} : vector<8x32xf32> to vector<8x8xf32>
    %31 = vector.extract_strided_slice %28 {offsets = [0, 0], sizes = [8, 8], strides = [1, 1]} : vector<8x32xf32> to vector<8x8xf32>
    %cst_26 = arith.constant dense<0.000000e+00> : vector<8x8xf32>
    %32 = tpu.matmul %29, %30, %cst_26 {dimension_numbers = #tpu.dot_dimension_numbers<[1], [1], [0], [0], [0, 0, 1, 0], [], []>} : vector<8x8xf32>, vector<8x8xf32>, vector<8x8xf32> -> vector<8x8xf32>
    %cst_27 = arith.constant 0.176776692 : f32
    %33 = vector.broadcast %cst_27 : f32 to vector<8x8xf32>
    %34 = arith.mulf %32, %33 : vector<8x8xf32>
    %cst_28 = arith.constant dense<0xFF800000> : vector<8xf32>
    %35 = vector.multi_reduction <maximumf>, %34, %cst_28 [1] : vector<8x8xf32> to vector<8xf32>
    %36 = vector.shape_cast %35 : vector<8xf32> to vector<8x1xf32>
    %37 = vector.broadcast %36 : vector<8x1xf32> to vector<8x8xf32>
    %38 = arith.subf %34, %37 : vector<8x8xf32>
    %39 = math.exp %38 : vector<8x8xf32>
    %cst_29 = arith.constant dense<0.000000e+00> : vector<8xf32>
    %40 = vector.multi_reduction <add>, %39, %cst_29 [1] : vector<8x8xf32> to vector<8xf32>
    %41 = vector.shape_cast %40 : vector<8xf32> to vector<8x1xf32>
    %42 = tpu.reciprocal %41 {approx = true} : vector<8x1xf32> -> vector<8x1xf32>
    %43 = vector.broadcast %42 : vector<8x1xf32> to vector<8x8xf32>
    %44 = arith.mulf %39, %43 : vector<8x8xf32>
    %cst_30 = arith.constant dense<0.000000e+00> : vector<8x8xf32>
    %45 = tpu.matmul %44, %31, %cst_30 {dimension_numbers = #tpu.dot_dimension_numbers<[1], [0], [0], [1], [0, 0, 1, 1], [], []>} : vector<8x8xf32>, vector<8x8xf32>, vector<8x8xf32> -> vector<8x8xf32>
    %46 = vector.extract_strided_slice %18 {offsets = [0, 8], sizes = [8, 8], strides = [1, 1]} : vector<8x32xf32> to vector<8x8xf32>
    %47 = vector.extract_strided_slice %23 {offsets = [0, 8], sizes = [8, 8], strides = [1, 1]} : vector<8x32xf32> to vector<8x8xf32>
    %48 = vector.extract_strided_slice %28 {offsets = [0, 8], sizes = [8, 8], strides = [1, 1]} : vector<8x32xf32> to vector<8x8xf32>
    %cst_31 = arith.constant dense<0.000000e+00> : vector<8x8xf32>
    %49 = tpu.matmul %46, %47, %cst_31 {dimension_numbers = #tpu.dot_dimension_numbers<[1], [1], [0], [0], [0, 0, 1, 0], [], []>} : vector<8x8xf32>, vector<8x8xf32>, vector<8x8xf32> -> vector<8x8xf32>
    %cst_32 = arith.constant 0.176776692 : f32
    %50 = vector.broadcast %cst_32 : f32 to vector<8x8xf32>
    %51 = arith.mulf %49, %50 : vector<8x8xf32>
    %cst_33 = arith.constant dense<0xFF800000> : vector<8xf32>
    %52 = vector.multi_reduction <maximumf>, %51, %cst_33 [1] : vector<8x8xf32> to vector<8xf32>
    %53 = vector.shape_cast %52 : vector<8xf32> to vector<8x1xf32>
    %54 = vector.broadcast %53 : vector<8x1xf32> to vector<8x8xf32>
    %55 = arith.subf %51, %54 : vector<8x8xf32>
    %56 = math.exp %55 : vector<8x8xf32>
    %cst_34 = arith.constant dense<0.000000e+00> : vector<8xf32>
    %57 = vector.multi_reduction <add>, %56, %cst_34 [1] : vector<8x8xf32> to vector<8xf32>
    %58 = vector.shape_cast %57 : vector<8xf32> to vector<8x1xf32>
    %59 = tpu.reciprocal %58 {approx = true} : vector<8x1xf32> -> vector<8x1xf32>
    %60 = vector.broadcast %59 : vector<8x1xf32> to vector<8x8xf32>
    %61 = arith.mulf %56, %60 : vector<8x8xf32>
    %cst_35 = arith.constant dense<0.000000e+00> : vector<8x8xf32>
    %62 = tpu.matmul %61, %48, %cst_35 {dimension_numbers = #tpu.dot_dimension_numbers<[1], [0], [0], [1], [0, 0, 1, 1], [], []>} : vector<8x8xf32>, vector<8x8xf32>, vector<8x8xf32> -> vector<8x8xf32>
    %63 = vector.extract_strided_slice %18 {offsets = [0, 16], sizes = [8, 8], strides = [1, 1]} : vector<8x32xf32> to vector<8x8xf32>
    %64 = vector.extract_strided_slice %23 {offsets = [0, 16], sizes = [8, 8], strides = [1, 1]} : vector<8x32xf32> to vector<8x8xf32>
    %65 = vector.extract_strided_slice %28 {offsets = [0, 16], sizes = [8, 8], strides = [1, 1]} : vector<8x32xf32> to vector<8x8xf32>
    %cst_36 = arith.constant dense<0.000000e+00> : vector<8x8xf32>
    %66 = tpu.matmul %63, %64, %cst_36 {dimension_numbers = #tpu.dot_dimension_numbers<[1], [1], [0], [0], [0, 0, 1, 0], [], []>} : vector<8x8xf32>, vector<8x8xf32>, vector<8x8xf32> -> vector<8x8xf32>
    %cst_37 = arith.constant 0.176776692 : f32
    %67 = vector.broadcast %cst_37 : f32 to vector<8x8xf32>
    %68 = arith.mulf %66, %67 : vector<8x8xf32>
    %cst_38 = arith.constant dense<0xFF800000> : vector<8xf32>
    %69 = vector.multi_reduction <maximumf>, %68, %cst_38 [1] : vector<8x8xf32> to vector<8xf32>
    %70 = vector.shape_cast %69 : vector<8xf32> to vector<8x1xf32>
    %71 = vector.broadcast %70 : vector<8x1xf32> to vector<8x8xf32>
    %72 = arith.subf %68, %71 : vector<8x8xf32>
    %73 = math.exp %72 : vector<8x8xf32>
    %cst_39 = arith.constant dense<0.000000e+00> : vector<8xf32>
    %74 = vector.multi_reduction <add>, %73, %cst_39 [1] : vector<8x8xf32> to vector<8xf32>
    %75 = vector.shape_cast %74 : vector<8xf32> to vector<8x1xf32>
    %76 = tpu.reciprocal %75 {approx = true} : vector<8x1xf32> -> vector<8x1xf32>
    %77 = vector.broadcast %76 : vector<8x1xf32> to vector<8x8xf32>
    %78 = arith.mulf %73, %77 : vector<8x8xf32>
    %cst_40 = arith.constant dense<0.000000e+00> : vector<8x8xf32>
    %79 = tpu.matmul %78, %65, %cst_40 {dimension_numbers = #tpu.dot_dimension_numbers<[1], [0], [0], [1], [0, 0, 1, 1], [], []>} : vector<8x8xf32>, vector<8x8xf32>, vector<8x8xf32> -> vector<8x8xf32>
    %80 = vector.extract_strided_slice %18 {offsets = [0, 24], sizes = [8, 8], strides = [1, 1]} : vector<8x32xf32> to vector<8x8xf32>
    %81 = vector.extract_strided_slice %23 {offsets = [0, 24], sizes = [8, 8], strides = [1, 1]} : vector<8x32xf32> to vector<8x8xf32>
    %82 = vector.extract_strided_slice %28 {offsets = [0, 24], sizes = [8, 8], strides = [1, 1]} : vector<8x32xf32> to vector<8x8xf32>
    %cst_41 = arith.constant dense<0.000000e+00> : vector<8x8xf32>
    %83 = tpu.matmul %80, %81, %cst_41 {dimension_numbers = #tpu.dot_dimension_numbers<[1], [1], [0], [0], [0, 0, 1, 0], [], []>} : vector<8x8xf32>, vector<8x8xf32>, vector<8x8xf32> -> vector<8x8xf32>
    %cst_42 = arith.constant 0.176776692 : f32
    %84 = vector.broadcast %cst_42 : f32 to vector<8x8xf32>
    %85 = arith.mulf %83, %84 : vector<8x8xf32>
    %cst_43 = arith.constant dense<0xFF800000> : vector<8xf32>
    %86 = vector.multi_reduction <maximumf>, %85, %cst_43 [1] : vector<8x8xf32> to vector<8xf32>
    %87 = vector.shape_cast %86 : vector<8xf32> to vector<8x1xf32>
    %88 = vector.broadcast %87 : vector<8x1xf32> to vector<8x8xf32>
    %89 = arith.subf %85, %88 : vector<8x8xf32>
    %90 = math.exp %89 : vector<8x8xf32>
    %cst_44 = arith.constant dense<0.000000e+00> : vector<8xf32>
    %91 = vector.multi_reduction <add>, %90, %cst_44 [1] : vector<8x8xf32> to vector<8xf32>
    %92 = vector.shape_cast %91 : vector<8xf32> to vector<8x1xf32>
    %93 = tpu.reciprocal %92 {approx = true} : vector<8x1xf32> -> vector<8x1xf32>
    %94 = vector.broadcast %93 : vector<8x1xf32> to vector<8x8xf32>
    %95 = arith.mulf %90, %94 : vector<8x8xf32>
    %cst_45 = arith.constant dense<0.000000e+00> : vector<8x8xf32>
    %96 = tpu.matmul %95, %82, %cst_45 {dimension_numbers = #tpu.dot_dimension_numbers<[1], [0], [0], [1], [0, 0, 1, 1], [], []>} : vector<8x8xf32>, vector<8x8xf32>, vector<8x8xf32> -> vector<8x8xf32>
    %97 = tpu.concatenate %45, %62, %79, %96 in 1 : vector<8x8xf32>, vector<8x8xf32>, vector<8x8xf32>, vector<8x8xf32> -> vector<8x32xf32>
    %98 = arith.addf %18, %97 : vector<8x32xf32>
    %c0_46 = arith.constant 0 : index
    %c0_47 = arith.constant 0 : index
    %99 = vector.load %arg12[%c0_46, %c0_47] : memref<32x32xf32, #tpu.memory_space<vmem>>, vector<32x32xf32>
    %cst_48 = arith.constant dense<0.000000e+00> : vector<8x32xf32>
    %100 = tpu.matmul %98, %99, %cst_48 {dimension_numbers = #tpu.dot_dimension_numbers<[1], [0], [0], [1], [0, 0, 1, 1], [], []>} : vector<8x32xf32>, vector<32x32xf32>, vector<8x32xf32> -> vector<8x32xf32>
    %c0_49 = arith.constant 0 : index
    %c0_50 = arith.constant 0 : index
    %101 = vector.load %arg8[%c0_49, %c0_50] : memref<1x32xf32, #tpu.memory_space<vmem>>, vector<1x32xf32>
    %102 = vector.broadcast %101 : vector<1x32xf32> to vector<8x32xf32>
    %103 = arith.addf %100, %102 : vector<8x32xf32>
    %cst_51 = arith.constant 0.000000e+00 : f32
    %104 = vector.broadcast %cst_51 : f32 to vector<8x32xf32>
    %105 = arith.maximumf %103, %104 : vector<8x32xf32>
    %106 = arith.addf %98, %105 : vector<8x32xf32>
    %c0_52 = arith.constant 0 : index
    %c0_53 = arith.constant 0 : index
    %107 = vector.load %arg21[%c0_52, %c0_53] : memref<64x32xf32, #tpu.memory_space<vmem>>, vector<64x32xf32>
    %cst_54 = arith.constant dense<0.000000e+00> : vector<8x32xf32>
    %108 = tpu.matmul %11, %107, %cst_54 {dimension_numbers = #tpu.dot_dimension_numbers<[1], [0], [0], [1], [0, 0, 1, 1], [], []>} : vector<8x64xf32>, vector<64x32xf32>, vector<8x32xf32> -> vector<8x32xf32>
    %c0_55 = arith.constant 0 : index
    %c0_56 = arith.constant 0 : index
    %109 = vector.load %arg17[%c0_55, %c0_56] : memref<1x32xf32, #tpu.memory_space<vmem>>, vector<1x32xf32>
    %110 = vector.broadcast %109 : vector<1x32xf32> to vector<8x32xf32>
    %111 = arith.addf %108, %110 : vector<8x32xf32>
    %c0_57 = arith.constant 0 : index
    %c0_58 = arith.constant 0 : index
    %112 = vector.load %arg19[%c0_57, %c0_58] : memref<32x32xf32, #tpu.memory_space<vmem>>, vector<32x32xf32>
    %cst_59 = arith.constant dense<0.000000e+00> : vector<8x32xf32>
    %113 = tpu.matmul %106, %112, %cst_59 {dimension_numbers = #tpu.dot_dimension_numbers<[1], [0], [0], [1], [0, 0, 1, 1], [], []>} : vector<8x32xf32>, vector<32x32xf32>, vector<8x32xf32> -> vector<8x32xf32>
    %c0_60 = arith.constant 0 : index
    %c0_61 = arith.constant 0 : index
    %114 = vector.load %arg15[%c0_60, %c0_61] : memref<1x32xf32, #tpu.memory_space<vmem>>, vector<1x32xf32>
    %115 = vector.broadcast %114 : vector<1x32xf32> to vector<8x32xf32>
    %116 = arith.addf %113, %115 : vector<8x32xf32>
    %c0_62 = arith.constant 0 : index
    %c0_63 = arith.constant 0 : index
    %117 = vector.load %arg22[%c0_62, %c0_63] : memref<32x32xf32, #tpu.memory_space<vmem>>, vector<32x32xf32>
    %cst_64 = arith.constant dense<0.000000e+00> : vector<8x32xf32>
    %118 = tpu.matmul %106, %117, %cst_64 {dimension_numbers = #tpu.dot_dimension_numbers<[1], [0], [0], [1], [0, 0, 1, 1], [], []>} : vector<8x32xf32>, vector<32x32xf32>, vector<8x32xf32> -> vector<8x32xf32>
    %c0_65 = arith.constant 0 : index
    %c0_66 = arith.constant 0 : index
    %119 = vector.load %arg18[%c0_65, %c0_66] : memref<1x32xf32, #tpu.memory_space<vmem>>, vector<1x32xf32>
    %120 = vector.broadcast %119 : vector<1x32xf32> to vector<8x32xf32>
    %121 = arith.addf %118, %120 : vector<8x32xf32>
    %122 = vector.extract_strided_slice %111 {offsets = [0, 0], sizes = [8, 8], strides = [1, 1]} : vector<8x32xf32> to vector<8x8xf32>
    %123 = vector.extract_strided_slice %116 {offsets = [0, 0], sizes = [8, 8], strides = [1, 1]} : vector<8x32xf32> to vector<8x8xf32>
    %124 = vector.extract_strided_slice %121 {offsets = [0, 0], sizes = [8, 8], strides = [1, 1]} : vector<8x32xf32> to vector<8x8xf32>
    %cst_67 = arith.constant dense<0.000000e+00> : vector<8x8xf32>
    %125 = tpu.matmul %122, %123, %cst_67 {dimension_numbers = #tpu.dot_dimension_numbers<[1], [1], [0], [0], [0, 0, 1, 0], [], []>} : vector<8x8xf32>, vector<8x8xf32>, vector<8x8xf32> -> vector<8x8xf32>
    %cst_68 = arith.constant 0.176776692 : f32
    %126 = vector.broadcast %cst_68 : f32 to vector<8x8xf32>
    %127 = arith.mulf %125, %126 : vector<8x8xf32>
    %cst_69 = arith.constant dense<0xFF800000> : vector<8xf32>
    %128 = vector.multi_reduction <maximumf>, %127, %cst_69 [1] : vector<8x8xf32> to vector<8xf32>
    %129 = vector.shape_cast %128 : vector<8xf32> to vector<8x1xf32>
    %130 = vector.broadcast %129 : vector<8x1xf32> to vector<8x8xf32>
    %131 = arith.subf %127, %130 : vector<8x8xf32>
    %132 = math.exp %131 : vector<8x8xf32>
    %cst_70 = arith.constant dense<0.000000e+00> : vector<8xf32>
    %133 = vector.multi_reduction <add>, %132, %cst_70 [1] : vector<8x8xf32> to vector<8xf32>
    %134 = vector.shape_cast %133 : vector<8xf32> to vector<8x1xf32>
    %135 = tpu.reciprocal %134 {approx = true} : vector<8x1xf32> -> vector<8x1xf32>
    %136 = vector.broadcast %135 : vector<8x1xf32> to vector<8x8xf32>
    %137 = arith.mulf %132, %136 : vector<8x8xf32>
    %cst_71 = arith.constant dense<0.000000e+00> : vector<8x8xf32>
    %138 = tpu.matmul %137, %124, %cst_71 {dimension_numbers = #tpu.dot_dimension_numbers<[1], [0], [0], [1], [0, 0, 1, 1], [], []>} : vector<8x8xf32>, vector<8x8xf32>, vector<8x8xf32> -> vector<8x8xf32>
    %139 = vector.extract_strided_slice %111 {offsets = [0, 8], sizes = [8, 8], strides = [1, 1]} : vector<8x32xf32> to vector<8x8xf32>
    %140 = vector.extract_strided_slice %116 {offsets = [0, 8], sizes = [8, 8], strides = [1, 1]} : vector<8x32xf32> to vector<8x8xf32>
    %141 = vector.extract_strided_slice %121 {offsets = [0, 8], sizes = [8, 8], strides = [1, 1]} : vector<8x32xf32> to vector<8x8xf32>
    %cst_72 = arith.constant dense<0.000000e+00> : vector<8x8xf32>
    %142 = tpu.matmul %139, %140, %cst_72 {dimension_numbers = #tpu.dot_dimension_numbers<[1], [1], [0], [0], [0, 0, 1, 0], [], []>} : vector<8x8xf32>, vector<8x8xf32>, vector<8x8xf32> -> vector<8x8xf32>
    %cst_73 = arith.constant 0.176776692 : f32
    %143 = vector.broadcast %cst_73 : f32 to vector<8x8xf32>
    %144 = arith.mulf %142, %143 : vector<8x8xf32>
    %cst_74 = arith.constant dense<0xFF800000> : vector<8xf32>
    %145 = vector.multi_reduction <maximumf>, %144, %cst_74 [1] : vector<8x8xf32> to vector<8xf32>
    %146 = vector.shape_cast %145 : vector<8xf32> to vector<8x1xf32>
    %147 = vector.broadcast %146 : vector<8x1xf32> to vector<8x8xf32>
    %148 = arith.subf %144, %147 : vector<8x8xf32>
    %149 = math.exp %148 : vector<8x8xf32>
    %cst_75 = arith.constant dense<0.000000e+00> : vector<8xf32>
    %150 = vector.multi_reduction <add>, %149, %cst_75 [1] : vector<8x8xf32> to vector<8xf32>
    %151 = vector.shape_cast %150 : vector<8xf32> to vector<8x1xf32>
    %152 = tpu.reciprocal %151 {approx = true} : vector<8x1xf32> -> vector<8x1xf32>
    %153 = vector.broadcast %152 : vector<8x1xf32> to vector<8x8xf32>
    %154 = arith.mulf %149, %153 : vector<8x8xf32>
    %cst_76 = arith.constant dense<0.000000e+00> : vector<8x8xf32>
    %155 = tpu.matmul %154, %141, %cst_76 {dimension_numbers = #tpu.dot_dimension_numbers<[1], [0], [0], [1], [0, 0, 1, 1], [], []>} : vector<8x8xf32>, vector<8x8xf32>, vector<8x8xf32> -> vector<8x8xf32>
    %156 = vector.extract_strided_slice %111 {offsets = [0, 16], sizes = [8, 8], strides = [1, 1]} : vector<8x32xf32> to vector<8x8xf32>
    %157 = vector.extract_strided_slice %116 {offsets = [0, 16], sizes = [8, 8], strides = [1, 1]} : vector<8x32xf32> to vector<8x8xf32>
    %158 = vector.extract_strided_slice %121 {offsets = [0, 16], sizes = [8, 8], strides = [1, 1]} : vector<8x32xf32> to vector<8x8xf32>
    %cst_77 = arith.constant dense<0.000000e+00> : vector<8x8xf32>
    %159 = tpu.matmul %156, %157, %cst_77 {dimension_numbers = #tpu.dot_dimension_numbers<[1], [1], [0], [0], [0, 0, 1, 0], [], []>} : vector<8x8xf32>, vector<8x8xf32>, vector<8x8xf32> -> vector<8x8xf32>
    %cst_78 = arith.constant 0.176776692 : f32
    %160 = vector.broadcast %cst_78 : f32 to vector<8x8xf32>
    %161 = arith.mulf %159, %160 : vector<8x8xf32>
    %cst_79 = arith.constant dense<0xFF800000> : vector<8xf32>
    %162 = vector.multi_reduction <maximumf>, %161, %cst_79 [1] : vector<8x8xf32> to vector<8xf32>
    %163 = vector.shape_cast %162 : vector<8xf32> to vector<8x1xf32>
    %164 = vector.broadcast %163 : vector<8x1xf32> to vector<8x8xf32>
    %165 = arith.subf %161, %164 : vector<8x8xf32>
    %166 = math.exp %165 : vector<8x8xf32>
    %cst_80 = arith.constant dense<0.000000e+00> : vector<8xf32>
    %167 = vector.multi_reduction <add>, %166, %cst_80 [1] : vector<8x8xf32> to vector<8xf32>
    %168 = vector.shape_cast %167 : vector<8xf32> to vector<8x1xf32>
    %169 = tpu.reciprocal %168 {approx = true} : vector<8x1xf32> -> vector<8x1xf32>
    %170 = vector.broadcast %169 : vector<8x1xf32> to vector<8x8xf32>
    %171 = arith.mulf %166, %170 : vector<8x8xf32>
    %cst_81 = arith.constant dense<0.000000e+00> : vector<8x8xf32>
    %172 = tpu.matmul %171, %158, %cst_81 {dimension_numbers = #tpu.dot_dimension_numbers<[1], [0], [0], [1], [0, 0, 1, 1], [], []>} : vector<8x8xf32>, vector<8x8xf32>, vector<8x8xf32> -> vector<8x8xf32>
    %173 = vector.extract_strided_slice %111 {offsets = [0, 24], sizes = [8, 8], strides = [1, 1]} : vector<8x32xf32> to vector<8x8xf32>
    %174 = vector.extract_strided_slice %116 {offsets = [0, 24], sizes = [8, 8], strides = [1, 1]} : vector<8x32xf32> to vector<8x8xf32>
    %175 = vector.extract_strided_slice %121 {offsets = [0, 24], sizes = [8, 8], strides = [1, 1]} : vector<8x32xf32> to vector<8x8xf32>
    %cst_82 = arith.constant dense<0.000000e+00> : vector<8x8xf32>
    %176 = tpu.matmul %173, %174, %cst_82 {dimension_numbers = #tpu.dot_dimension_numbers<[1], [1], [0], [0], [0, 0, 1, 0], [], []>} : vector<8x8xf32>, vector<8x8xf32>, vector<8x8xf32> -> vector<8x8xf32>
    %cst_83 = arith.constant 0.176776692 : f32
    %177 = vector.broadcast %cst_83 : f32 to vector<8x8xf32>
    %178 = arith.mulf %176, %177 : vector<8x8xf32>
    %cst_84 = arith.constant dense<0xFF800000> : vector<8xf32>
    %179 = vector.multi_reduction <maximumf>, %178, %cst_84 [1] : vector<8x8xf32> to vector<8xf32>
    %180 = vector.shape_cast %179 : vector<8xf32> to vector<8x1xf32>
    %181 = vector.broadcast %180 : vector<8x1xf32> to vector<8x8xf32>
    %182 = arith.subf %178, %181 : vector<8x8xf32>
    %183 = math.exp %182 : vector<8x8xf32>
    %cst_85 = arith.constant dense<0.000000e+00> : vector<8xf32>
    %184 = vector.multi_reduction <add>, %183, %cst_85 [1] : vector<8x8xf32> to vector<8xf32>
    %185 = vector.shape_cast %184 : vector<8xf32> to vector<8x1xf32>
    %186 = tpu.reciprocal %185 {approx = true} : vector<8x1xf32> -> vector<8x1xf32>
    %187 = vector.broadcast %186 : vector<8x1xf32> to vector<8x8xf32>
    %188 = arith.mulf %183, %187 : vector<8x8xf32>
    %cst_86 = arith.constant dense<0.000000e+00> : vector<8x8xf32>
    %189 = tpu.matmul %188, %175, %cst_86 {dimension_numbers = #tpu.dot_dimension_numbers<[1], [0], [0], [1], [0, 0, 1, 1], [], []>} : vector<8x8xf32>, vector<8x8xf32>, vector<8x8xf32> -> vector<8x8xf32>
    %190 = tpu.concatenate %138, %155, %172, %189 in 1 : vector<8x8xf32>, vector<8x8xf32>, vector<8x8xf32>, vector<8x8xf32> -> vector<8x32xf32>
    %191 = arith.addf %111, %190 : vector<8x32xf32>
    %c0_87 = arith.constant 0 : index
    %c0_88 = arith.constant 0 : index
    %192 = vector.load %arg20[%c0_87, %c0_88] : memref<32x32xf32, #tpu.memory_space<vmem>>, vector<32x32xf32>
    %cst_89 = arith.constant dense<0.000000e+00> : vector<8x32xf32>
    %193 = tpu.matmul %191, %192, %cst_89 {dimension_numbers = #tpu.dot_dimension_numbers<[1], [0], [0], [1], [0, 0, 1, 1], [], []>} : vector<8x32xf32>, vector<32x32xf32>, vector<8x32xf32> -> vector<8x32xf32>
    %c0_90 = arith.constant 0 : index
    %c0_91 = arith.constant 0 : index
    %194 = vector.load %arg16[%c0_90, %c0_91] : memref<1x32xf32, #tpu.memory_space<vmem>>, vector<1x32xf32>
    %195 = vector.broadcast %194 : vector<1x32xf32> to vector<8x32xf32>
    %196 = arith.addf %193, %195 : vector<8x32xf32>
    %cst_92 = arith.constant 0.000000e+00 : f32
    %197 = vector.broadcast %cst_92 : f32 to vector<8x32xf32>
    %198 = arith.maximumf %196, %197 : vector<8x32xf32>
    %199 = arith.addf %191, %198 : vector<8x32xf32>
    %c0_93 = arith.constant 0 : index
    %c0_94 = arith.constant 0 : index
    %c0_95 = arith.constant 0 : index
    %200 = vector.load %arg23[%c0_93, %c0_94, %c0_95] : memref<1x8x32xf32, #tpu.memory_space<vmem>>, vector<1x8x32xf32>
    %201 = vector.shape_cast %200 : vector<1x8x32xf32> to vector<8x32xf32>
    %c0_96 = arith.constant 0 : index
    %c0_97 = arith.constant 0 : index
    %202 = vector.load %arg30[%c0_96, %c0_97] : memref<32x32xf32, #tpu.memory_space<vmem>>, vector<32x32xf32>
    %cst_98 = arith.constant dense<0.000000e+00> : vector<8x32xf32>
    %203 = tpu.matmul %201, %202, %cst_98 {dimension_numbers = #tpu.dot_dimension_numbers<[1], [0], [0], [1], [0, 0, 1, 1], [], []>} : vector<8x32xf32>, vector<32x32xf32>, vector<8x32xf32> -> vector<8x32xf32>
    %c0_99 = arith.constant 0 : index
    %c0_100 = arith.constant 0 : index
    %204 = vector.load %arg26[%c0_99, %c0_100] : memref<1x32xf32, #tpu.memory_space<vmem>>, vector<1x32xf32>
    %205 = vector.broadcast %204 : vector<1x32xf32> to vector<8x32xf32>
    %206 = arith.addf %203, %205 : vector<8x32xf32>
    %c0_101 = arith.constant 0 : index
    %c0_102 = arith.constant 0 : index
    %207 = vector.load %arg28[%c0_101, %c0_102] : memref<32x32xf32, #tpu.memory_space<vmem>>, vector<32x32xf32>
    %cst_103 = arith.constant dense<0.000000e+00> : vector<8x32xf32>
    %208 = tpu.matmul %199, %207, %cst_103 {dimension_numbers = #tpu.dot_dimension_numbers<[1], [0], [0], [1], [0, 0, 1, 1], [], []>} : vector<8x32xf32>, vector<32x32xf32>, vector<8x32xf32> -> vector<8x32xf32>
    %c0_104 = arith.constant 0 : index
    %c0_105 = arith.constant 0 : index
    %209 = vector.load %arg24[%c0_104, %c0_105] : memref<1x32xf32, #tpu.memory_space<vmem>>, vector<1x32xf32>
    %210 = vector.broadcast %209 : vector<1x32xf32> to vector<8x32xf32>
    %211 = arith.addf %208, %210 : vector<8x32xf32>
    %c0_106 = arith.constant 0 : index
    %c0_107 = arith.constant 0 : index
    %212 = vector.load %arg31[%c0_106, %c0_107] : memref<32x32xf32, #tpu.memory_space<vmem>>, vector<32x32xf32>
    %cst_108 = arith.constant dense<0.000000e+00> : vector<8x32xf32>
    %213 = tpu.matmul %199, %212, %cst_108 {dimension_numbers = #tpu.dot_dimension_numbers<[1], [0], [0], [1], [0, 0, 1, 1], [], []>} : vector<8x32xf32>, vector<32x32xf32>, vector<8x32xf32> -> vector<8x32xf32>
    %c0_109 = arith.constant 0 : index
    %c0_110 = arith.constant 0 : index
    %214 = vector.load %arg27[%c0_109, %c0_110] : memref<1x32xf32, #tpu.memory_space<vmem>>, vector<1x32xf32>
    %215 = vector.broadcast %214 : vector<1x32xf32> to vector<8x32xf32>
    %216 = arith.addf %213, %215 : vector<8x32xf32>
    %217 = vector.extract_strided_slice %206 {offsets = [0, 0], sizes = [8, 8], strides = [1, 1]} : vector<8x32xf32> to vector<8x8xf32>
    %218 = vector.extract_strided_slice %211 {offsets = [0, 0], sizes = [8, 8], strides = [1, 1]} : vector<8x32xf32> to vector<8x8xf32>
    %219 = vector.extract_strided_slice %216 {offsets = [0, 0], sizes = [8, 8], strides = [1, 1]} : vector<8x32xf32> to vector<8x8xf32>
    %cst_111 = arith.constant dense<0.000000e+00> : vector<8x8xf32>
    %220 = tpu.matmul %217, %218, %cst_111 {dimension_numbers = #tpu.dot_dimension_numbers<[1], [1], [0], [0], [0, 0, 1, 0], [], []>} : vector<8x8xf32>, vector<8x8xf32>, vector<8x8xf32> -> vector<8x8xf32>
    %cst_112 = arith.constant 0.176776692 : f32
    %221 = vector.broadcast %cst_112 : f32 to vector<8x8xf32>
    %222 = arith.mulf %220, %221 : vector<8x8xf32>
    %cst_113 = arith.constant dense<0xFF800000> : vector<8xf32>
    %223 = vector.multi_reduction <maximumf>, %222, %cst_113 [1] : vector<8x8xf32> to vector<8xf32>
    %224 = vector.shape_cast %223 : vector<8xf32> to vector<8x1xf32>
    %225 = vector.broadcast %224 : vector<8x1xf32> to vector<8x8xf32>
    %226 = arith.subf %222, %225 : vector<8x8xf32>
    %227 = math.exp %226 : vector<8x8xf32>
    %cst_114 = arith.constant dense<0.000000e+00> : vector<8xf32>
    %228 = vector.multi_reduction <add>, %227, %cst_114 [1] : vector<8x8xf32> to vector<8xf32>
    %229 = vector.shape_cast %228 : vector<8xf32> to vector<8x1xf32>
    %230 = tpu.reciprocal %229 {approx = true} : vector<8x1xf32> -> vector<8x1xf32>
    %231 = vector.broadcast %230 : vector<8x1xf32> to vector<8x8xf32>
    %232 = arith.mulf %227, %231 : vector<8x8xf32>
    %cst_115 = arith.constant dense<0.000000e+00> : vector<8x8xf32>
    %233 = tpu.matmul %232, %219, %cst_115 {dimension_numbers = #tpu.dot_dimension_numbers<[1], [0], [0], [1], [0, 0, 1, 1], [], []>} : vector<8x8xf32>, vector<8x8xf32>, vector<8x8xf32> -> vector<8x8xf32>
    %234 = vector.extract_strided_slice %206 {offsets = [0, 8], sizes = [8, 8], strides = [1, 1]} : vector<8x32xf32> to vector<8x8xf32>
    %235 = vector.extract_strided_slice %211 {offsets = [0, 8], sizes = [8, 8], strides = [1, 1]} : vector<8x32xf32> to vector<8x8xf32>
    %236 = vector.extract_strided_slice %216 {offsets = [0, 8], sizes = [8, 8], strides = [1, 1]} : vector<8x32xf32> to vector<8x8xf32>
    %cst_116 = arith.constant dense<0.000000e+00> : vector<8x8xf32>
    %237 = tpu.matmul %234, %235, %cst_116 {dimension_numbers = #tpu.dot_dimension_numbers<[1], [1], [0], [0], [0, 0, 1, 0], [], []>} : vector<8x8xf32>, vector<8x8xf32>, vector<8x8xf32> -> vector<8x8xf32>
    %cst_117 = arith.constant 0.176776692 : f32
    %238 = vector.broadcast %cst_117 : f32 to vector<8x8xf32>
    %239 = arith.mulf %237, %238 : vector<8x8xf32>
    %cst_118 = arith.constant dense<0xFF800000> : vector<8xf32>
    %240 = vector.multi_reduction <maximumf>, %239, %cst_118 [1] : vector<8x8xf32> to vector<8xf32>
    %241 = vector.shape_cast %240 : vector<8xf32> to vector<8x1xf32>
    %242 = vector.broadcast %241 : vector<8x1xf32> to vector<8x8xf32>
    %243 = arith.subf %239, %242 : vector<8x8xf32>
    %244 = math.exp %243 : vector<8x8xf32>
    %cst_119 = arith.constant dense<0.000000e+00> : vector<8xf32>
    %245 = vector.multi_reduction <add>, %244, %cst_119 [1] : vector<8x8xf32> to vector<8xf32>
    %246 = vector.shape_cast %245 : vector<8xf32> to vector<8x1xf32>
    %247 = tpu.reciprocal %246 {approx = true} : vector<8x1xf32> -> vector<8x1xf32>
    %248 = vector.broadcast %247 : vector<8x1xf32> to vector<8x8xf32>
    %249 = arith.mulf %244, %248 : vector<8x8xf32>
    %cst_120 = arith.constant dense<0.000000e+00> : vector<8x8xf32>
    %250 = tpu.matmul %249, %236, %cst_120 {dimension_numbers = #tpu.dot_dimension_numbers<[1], [0], [0], [1], [0, 0, 1, 1], [], []>} : vector<8x8xf32>, vector<8x8xf32>, vector<8x8xf32> -> vector<8x8xf32>
    %251 = vector.extract_strided_slice %206 {offsets = [0, 16], sizes = [8, 8], strides = [1, 1]} : vector<8x32xf32> to vector<8x8xf32>
    %252 = vector.extract_strided_slice %211 {offsets = [0, 16], sizes = [8, 8], strides = [1, 1]} : vector<8x32xf32> to vector<8x8xf32>
    %253 = vector.extract_strided_slice %216 {offsets = [0, 16], sizes = [8, 8], strides = [1, 1]} : vector<8x32xf32> to vector<8x8xf32>
    %cst_121 = arith.constant dense<0.000000e+00> : vector<8x8xf32>
    %254 = tpu.matmul %251, %252, %cst_121 {dimension_numbers = #tpu.dot_dimension_numbers<[1], [1], [0], [0], [0, 0, 1, 0], [], []>} : vector<8x8xf32>, vector<8x8xf32>, vector<8x8xf32> -> vector<8x8xf32>
    %cst_122 = arith.constant 0.176776692 : f32
    %255 = vector.broadcast %cst_122 : f32 to vector<8x8xf32>
    %256 = arith.mulf %254, %255 : vector<8x8xf32>
    %cst_123 = arith.constant dense<0xFF800000> : vector<8xf32>
    %257 = vector.multi_reduction <maximumf>, %256, %cst_123 [1] : vector<8x8xf32> to vector<8xf32>
    %258 = vector.shape_cast %257 : vector<8xf32> to vector<8x1xf32>
    %259 = vector.broadcast %258 : vector<8x1xf32> to vector<8x8xf32>
    %260 = arith.subf %256, %259 : vector<8x8xf32>
    %261 = math.exp %260 : vector<8x8xf32>
    %cst_124 = arith.constant dense<0.000000e+00> : vector<8xf32>
    %262 = vector.multi_reduction <add>, %261, %cst_124 [1] : vector<8x8xf32> to vector<8xf32>
    %263 = vector.shape_cast %262 : vector<8xf32> to vector<8x1xf32>
    %264 = tpu.reciprocal %263 {approx = true} : vector<8x1xf32> -> vector<8x1xf32>
    %265 = vector.broadcast %264 : vector<8x1xf32> to vector<8x8xf32>
    %266 = arith.mulf %261, %265 : vector<8x8xf32>
    %cst_125 = arith.constant dense<0.000000e+00> : vector<8x8xf32>
    %267 = tpu.matmul %266, %253, %cst_125 {dimension_numbers = #tpu.dot_dimension_numbers<[1], [0], [0], [1], [0, 0, 1, 1], [], []>} : vector<8x8xf32>, vector<8x8xf32>, vector<8x8xf32> -> vector<8x8xf32>
    %268 = vector.extract_strided_slice %206 {offsets = [0, 24], sizes = [8, 8], strides = [1, 1]} : vector<8x32xf32> to vector<8x8xf32>
    %269 = vector.extract_strided_slice %211 {offsets = [0, 24], sizes = [8, 8], strides = [1, 1]} : vector<8x32xf32> to vector<8x8xf32>
    %270 = vector.extract_strided_slice %216 {offsets = [0, 24], sizes = [8, 8], strides = [1, 1]} : vector<8x32xf32> to vector<8x8xf32>
    %cst_126 = arith.constant dense<0.000000e+00> : vector<8x8xf32>
    %271 = tpu.matmul %268, %269, %cst_126 {dimension_numbers = #tpu.dot_dimension_numbers<[1], [1], [0], [0], [0, 0, 1, 0], [], []>} : vector<8x8xf32>, vector<8x8xf32>, vector<8x8xf32> -> vector<8x8xf32>
    %cst_127 = arith.constant 0.176776692 : f32
    %272 = vector.broadcast %cst_127 : f32 to vector<8x8xf32>
    %273 = arith.mulf %271, %272 : vector<8x8xf32>
    %cst_128 = arith.constant dense<0xFF800000> : vector<8xf32>
    %274 = vector.multi_reduction <maximumf>, %273, %cst_128 [1] : vector<8x8xf32> to vector<8xf32>
    %275 = vector.shape_cast %274 : vector<8xf32> to vector<8x1xf32>
    %276 = vector.broadcast %275 : vector<8x1xf32> to vector<8x8xf32>
    %277 = arith.subf %273, %276 : vector<8x8xf32>
    %278 = math.exp %277 : vector<8x8xf32>
    %cst_129 = arith.constant dense<0.000000e+00> : vector<8xf32>
    %279 = vector.multi_reduction <add>, %278, %cst_129 [1] : vector<8x8xf32> to vector<8xf32>
    %280 = vector.shape_cast %279 : vector<8xf32> to vector<8x1xf32>
    %281 = tpu.reciprocal %280 {approx = true} : vector<8x1xf32> -> vector<8x1xf32>
    %282 = vector.broadcast %281 : vector<8x1xf32> to vector<8x8xf32>
    %283 = arith.mulf %278, %282 : vector<8x8xf32>
    %cst_130 = arith.constant dense<0.000000e+00> : vector<8x8xf32>
    %284 = tpu.matmul %283, %270, %cst_130 {dimension_numbers = #tpu.dot_dimension_numbers<[1], [0], [0], [1], [0, 0, 1, 1], [], []>} : vector<8x8xf32>, vector<8x8xf32>, vector<8x8xf32> -> vector<8x8xf32>
    %285 = tpu.concatenate %233, %250, %267, %284 in 1 : vector<8x8xf32>, vector<8x8xf32>, vector<8x8xf32>, vector<8x8xf32> -> vector<8x32xf32>
    %286 = arith.addf %206, %285 : vector<8x32xf32>
    %c0_131 = arith.constant 0 : index
    %c0_132 = arith.constant 0 : index
    %287 = vector.load %arg29[%c0_131, %c0_132] : memref<32x32xf32, #tpu.memory_space<vmem>>, vector<32x32xf32>
    %cst_133 = arith.constant dense<0.000000e+00> : vector<8x32xf32>
    %288 = tpu.matmul %286, %287, %cst_133 {dimension_numbers = #tpu.dot_dimension_numbers<[1], [0], [0], [1], [0, 0, 1, 1], [], []>} : vector<8x32xf32>, vector<32x32xf32>, vector<8x32xf32> -> vector<8x32xf32>
    %c0_134 = arith.constant 0 : index
    %c0_135 = arith.constant 0 : index
    %289 = vector.load %arg25[%c0_134, %c0_135] : memref<1x32xf32, #tpu.memory_space<vmem>>, vector<1x32xf32>
    %290 = vector.broadcast %289 : vector<1x32xf32> to vector<8x32xf32>
    %291 = arith.addf %288, %290 : vector<8x32xf32>
    %cst_136 = arith.constant 0.000000e+00 : f32
    %292 = vector.broadcast %cst_136 : f32 to vector<8x32xf32>
    %293 = arith.maximumf %291, %292 : vector<8x32xf32>
    %294 = arith.addf %286, %293 : vector<8x32xf32>
    %c0_137 = arith.constant 0 : index
    %c0_138 = arith.constant 0 : index
    %295 = vector.load %arg38[%c0_137, %c0_138] : memref<32x32xf32, #tpu.memory_space<vmem>>, vector<32x32xf32>
    %cst_139 = arith.constant dense<0.000000e+00> : vector<8x32xf32>
    %296 = tpu.matmul %199, %295, %cst_139 {dimension_numbers = #tpu.dot_dimension_numbers<[1], [0], [0], [1], [0, 0, 1, 1], [], []>} : vector<8x32xf32>, vector<32x32xf32>, vector<8x32xf32> -> vector<8x32xf32>
    %c0_140 = arith.constant 0 : index
    %c0_141 = arith.constant 0 : index
    %297 = vector.load %arg34[%c0_140, %c0_141] : memref<1x32xf32, #tpu.memory_space<vmem>>, vector<1x32xf32>
    %298 = vector.broadcast %297 : vector<1x32xf32> to vector<8x32xf32>
    %299 = arith.addf %296, %298 : vector<8x32xf32>
    %c0_142 = arith.constant 0 : index
    %c0_143 = arith.constant 0 : index
    %300 = vector.load %arg36[%c0_142, %c0_143] : memref<32x32xf32, #tpu.memory_space<vmem>>, vector<32x32xf32>
    %cst_144 = arith.constant dense<0.000000e+00> : vector<8x32xf32>
    %301 = tpu.matmul %294, %300, %cst_144 {dimension_numbers = #tpu.dot_dimension_numbers<[1], [0], [0], [1], [0, 0, 1, 1], [], []>} : vector<8x32xf32>, vector<32x32xf32>, vector<8x32xf32> -> vector<8x32xf32>
    %c0_145 = arith.constant 0 : index
    %c0_146 = arith.constant 0 : index
    %302 = vector.load %arg32[%c0_145, %c0_146] : memref<1x32xf32, #tpu.memory_space<vmem>>, vector<1x32xf32>
    %303 = vector.broadcast %302 : vector<1x32xf32> to vector<8x32xf32>
    %304 = arith.addf %301, %303 : vector<8x32xf32>
    %c0_147 = arith.constant 0 : index
    %c0_148 = arith.constant 0 : index
    %305 = vector.load %arg39[%c0_147, %c0_148] : memref<32x32xf32, #tpu.memory_space<vmem>>, vector<32x32xf32>
    %cst_149 = arith.constant dense<0.000000e+00> : vector<8x32xf32>
    %306 = tpu.matmul %294, %305, %cst_149 {dimension_numbers = #tpu.dot_dimension_numbers<[1], [0], [0], [1], [0, 0, 1, 1], [], []>} : vector<8x32xf32>, vector<32x32xf32>, vector<8x32xf32> -> vector<8x32xf32>
    %c0_150 = arith.constant 0 : index
    %c0_151 = arith.constant 0 : index
    %307 = vector.load %arg35[%c0_150, %c0_151] : memref<1x32xf32, #tpu.memory_space<vmem>>, vector<1x32xf32>
    %308 = vector.broadcast %307 : vector<1x32xf32> to vector<8x32xf32>
    %309 = arith.addf %306, %308 : vector<8x32xf32>
    %310 = vector.extract_strided_slice %299 {offsets = [0, 0], sizes = [8, 8], strides = [1, 1]} : vector<8x32xf32> to vector<8x8xf32>
    %311 = vector.extract_strided_slice %304 {offsets = [0, 0], sizes = [8, 8], strides = [1, 1]} : vector<8x32xf32> to vector<8x8xf32>
    %312 = vector.extract_strided_slice %309 {offsets = [0, 0], sizes = [8, 8], strides = [1, 1]} : vector<8x32xf32> to vector<8x8xf32>
    %cst_152 = arith.constant dense<0.000000e+00> : vector<8x8xf32>
    %313 = tpu.matmul %310, %311, %cst_152 {dimension_numbers = #tpu.dot_dimension_numbers<[1], [1], [0], [0], [0, 0, 1, 0], [], []>} : vector<8x8xf32>, vector<8x8xf32>, vector<8x8xf32> -> vector<8x8xf32>
    %cst_153 = arith.constant 0.176776692 : f32
    %314 = vector.broadcast %cst_153 : f32 to vector<8x8xf32>
    %315 = arith.mulf %313, %314 : vector<8x8xf32>
    %cst_154 = arith.constant dense<0xFF800000> : vector<8xf32>
    %316 = vector.multi_reduction <maximumf>, %315, %cst_154 [1] : vector<8x8xf32> to vector<8xf32>
    %317 = vector.shape_cast %316 : vector<8xf32> to vector<8x1xf32>
    %318 = vector.broadcast %317 : vector<8x1xf32> to vector<8x8xf32>
    %319 = arith.subf %315, %318 : vector<8x8xf32>
    %320 = math.exp %319 : vector<8x8xf32>
    %cst_155 = arith.constant dense<0.000000e+00> : vector<8xf32>
    %321 = vector.multi_reduction <add>, %320, %cst_155 [1] : vector<8x8xf32> to vector<8xf32>
    %322 = vector.shape_cast %321 : vector<8xf32> to vector<8x1xf32>
    %323 = tpu.reciprocal %322 {approx = true} : vector<8x1xf32> -> vector<8x1xf32>
    %324 = vector.broadcast %323 : vector<8x1xf32> to vector<8x8xf32>
    %325 = arith.mulf %320, %324 : vector<8x8xf32>
    %cst_156 = arith.constant dense<0.000000e+00> : vector<8x8xf32>
    %326 = tpu.matmul %325, %312, %cst_156 {dimension_numbers = #tpu.dot_dimension_numbers<[1], [0], [0], [1], [0, 0, 1, 1], [], []>} : vector<8x8xf32>, vector<8x8xf32>, vector<8x8xf32> -> vector<8x8xf32>
    %327 = vector.extract_strided_slice %299 {offsets = [0, 8], sizes = [8, 8], strides = [1, 1]} : vector<8x32xf32> to vector<8x8xf32>
    %328 = vector.extract_strided_slice %304 {offsets = [0, 8], sizes = [8, 8], strides = [1, 1]} : vector<8x32xf32> to vector<8x8xf32>
    %329 = vector.extract_strided_slice %309 {offsets = [0, 8], sizes = [8, 8], strides = [1, 1]} : vector<8x32xf32> to vector<8x8xf32>
    %cst_157 = arith.constant dense<0.000000e+00> : vector<8x8xf32>
    %330 = tpu.matmul %327, %328, %cst_157 {dimension_numbers = #tpu.dot_dimension_numbers<[1], [1], [0], [0], [0, 0, 1, 0], [], []>} : vector<8x8xf32>, vector<8x8xf32>, vector<8x8xf32> -> vector<8x8xf32>
    %cst_158 = arith.constant 0.176776692 : f32
    %331 = vector.broadcast %cst_158 : f32 to vector<8x8xf32>
    %332 = arith.mulf %330, %331 : vector<8x8xf32>
    %cst_159 = arith.constant dense<0xFF800000> : vector<8xf32>
    %333 = vector.multi_reduction <maximumf>, %332, %cst_159 [1] : vector<8x8xf32> to vector<8xf32>
    %334 = vector.shape_cast %333 : vector<8xf32> to vector<8x1xf32>
    %335 = vector.broadcast %334 : vector<8x1xf32> to vector<8x8xf32>
    %336 = arith.subf %332, %335 : vector<8x8xf32>
    %337 = math.exp %336 : vector<8x8xf32>
    %cst_160 = arith.constant dense<0.000000e+00> : vector<8xf32>
    %338 = vector.multi_reduction <add>, %337, %cst_160 [1] : vector<8x8xf32> to vector<8xf32>
    %339 = vector.shape_cast %338 : vector<8xf32> to vector<8x1xf32>
    %340 = tpu.reciprocal %339 {approx = true} : vector<8x1xf32> -> vector<8x1xf32>
    %341 = vector.broadcast %340 : vector<8x1xf32> to vector<8x8xf32>
    %342 = arith.mulf %337, %341 : vector<8x8xf32>
    %cst_161 = arith.constant dense<0.000000e+00> : vector<8x8xf32>
    %343 = tpu.matmul %342, %329, %cst_161 {dimension_numbers = #tpu.dot_dimension_numbers<[1], [0], [0], [1], [0, 0, 1, 1], [], []>} : vector<8x8xf32>, vector<8x8xf32>, vector<8x8xf32> -> vector<8x8xf32>
    %344 = vector.extract_strided_slice %299 {offsets = [0, 16], sizes = [8, 8], strides = [1, 1]} : vector<8x32xf32> to vector<8x8xf32>
    %345 = vector.extract_strided_slice %304 {offsets = [0, 16], sizes = [8, 8], strides = [1, 1]} : vector<8x32xf32> to vector<8x8xf32>
    %346 = vector.extract_strided_slice %309 {offsets = [0, 16], sizes = [8, 8], strides = [1, 1]} : vector<8x32xf32> to vector<8x8xf32>
    %cst_162 = arith.constant dense<0.000000e+00> : vector<8x8xf32>
    %347 = tpu.matmul %344, %345, %cst_162 {dimension_numbers = #tpu.dot_dimension_numbers<[1], [1], [0], [0], [0, 0, 1, 0], [], []>} : vector<8x8xf32>, vector<8x8xf32>, vector<8x8xf32> -> vector<8x8xf32>
    %cst_163 = arith.constant 0.176776692 : f32
    %348 = vector.broadcast %cst_163 : f32 to vector<8x8xf32>
    %349 = arith.mulf %347, %348 : vector<8x8xf32>
    %cst_164 = arith.constant dense<0xFF800000> : vector<8xf32>
    %350 = vector.multi_reduction <maximumf>, %349, %cst_164 [1] : vector<8x8xf32> to vector<8xf32>
    %351 = vector.shape_cast %350 : vector<8xf32> to vector<8x1xf32>
    %352 = vector.broadcast %351 : vector<8x1xf32> to vector<8x8xf32>
    %353 = arith.subf %349, %352 : vector<8x8xf32>
    %354 = math.exp %353 : vector<8x8xf32>
    %cst_165 = arith.constant dense<0.000000e+00> : vector<8xf32>
    %355 = vector.multi_reduction <add>, %354, %cst_165 [1] : vector<8x8xf32> to vector<8xf32>
    %356 = vector.shape_cast %355 : vector<8xf32> to vector<8x1xf32>
    %357 = tpu.reciprocal %356 {approx = true} : vector<8x1xf32> -> vector<8x1xf32>
    %358 = vector.broadcast %357 : vector<8x1xf32> to vector<8x8xf32>
    %359 = arith.mulf %354, %358 : vector<8x8xf32>
    %cst_166 = arith.constant dense<0.000000e+00> : vector<8x8xf32>
    %360 = tpu.matmul %359, %346, %cst_166 {dimension_numbers = #tpu.dot_dimension_numbers<[1], [0], [0], [1], [0, 0, 1, 1], [], []>} : vector<8x8xf32>, vector<8x8xf32>, vector<8x8xf32> -> vector<8x8xf32>
    %361 = vector.extract_strided_slice %299 {offsets = [0, 24], sizes = [8, 8], strides = [1, 1]} : vector<8x32xf32> to vector<8x8xf32>
    %362 = vector.extract_strided_slice %304 {offsets = [0, 24], sizes = [8, 8], strides = [1, 1]} : vector<8x32xf32> to vector<8x8xf32>
    %363 = vector.extract_strided_slice %309 {offsets = [0, 24], sizes = [8, 8], strides = [1, 1]} : vector<8x32xf32> to vector<8x8xf32>
    %cst_167 = arith.constant dense<0.000000e+00> : vector<8x8xf32>
    %364 = tpu.matmul %361, %362, %cst_167 {dimension_numbers = #tpu.dot_dimension_numbers<[1], [1], [0], [0], [0, 0, 1, 0], [], []>} : vector<8x8xf32>, vector<8x8xf32>, vector<8x8xf32> -> vector<8x8xf32>
    %cst_168 = arith.constant 0.176776692 : f32
    %365 = vector.broadcast %cst_168 : f32 to vector<8x8xf32>
    %366 = arith.mulf %364, %365 : vector<8x8xf32>
    %cst_169 = arith.constant dense<0xFF800000> : vector<8xf32>
    %367 = vector.multi_reduction <maximumf>, %366, %cst_169 [1] : vector<8x8xf32> to vector<8xf32>
    %368 = vector.shape_cast %367 : vector<8xf32> to vector<8x1xf32>
    %369 = vector.broadcast %368 : vector<8x1xf32> to vector<8x8xf32>
    %370 = arith.subf %366, %369 : vector<8x8xf32>
    %371 = math.exp %370 : vector<8x8xf32>
    %cst_170 = arith.constant dense<0.000000e+00> : vector<8xf32>
    %372 = vector.multi_reduction <add>, %371, %cst_170 [1] : vector<8x8xf32> to vector<8xf32>
    %373 = vector.shape_cast %372 : vector<8xf32> to vector<8x1xf32>
    %374 = tpu.reciprocal %373 {approx = true} : vector<8x1xf32> -> vector<8x1xf32>
    %375 = vector.broadcast %374 : vector<8x1xf32> to vector<8x8xf32>
    %376 = arith.mulf %371, %375 : vector<8x8xf32>
    %cst_171 = arith.constant dense<0.000000e+00> : vector<8x8xf32>
    %377 = tpu.matmul %376, %363, %cst_171 {dimension_numbers = #tpu.dot_dimension_numbers<[1], [0], [0], [1], [0, 0, 1, 1], [], []>} : vector<8x8xf32>, vector<8x8xf32>, vector<8x8xf32> -> vector<8x8xf32>
    %378 = tpu.concatenate %326, %343, %360, %377 in 1 : vector<8x8xf32>, vector<8x8xf32>, vector<8x8xf32>, vector<8x8xf32> -> vector<8x32xf32>
    %379 = arith.addf %299, %378 : vector<8x32xf32>
    %c0_172 = arith.constant 0 : index
    %c0_173 = arith.constant 0 : index
    %380 = vector.load %arg37[%c0_172, %c0_173] : memref<32x32xf32, #tpu.memory_space<vmem>>, vector<32x32xf32>
    %cst_174 = arith.constant dense<0.000000e+00> : vector<8x32xf32>
    %381 = tpu.matmul %379, %380, %cst_174 {dimension_numbers = #tpu.dot_dimension_numbers<[1], [0], [0], [1], [0, 0, 1, 1], [], []>} : vector<8x32xf32>, vector<32x32xf32>, vector<8x32xf32> -> vector<8x32xf32>
    %c0_175 = arith.constant 0 : index
    %c0_176 = arith.constant 0 : index
    %382 = vector.load %arg33[%c0_175, %c0_176] : memref<1x32xf32, #tpu.memory_space<vmem>>, vector<1x32xf32>
    %383 = vector.broadcast %382 : vector<1x32xf32> to vector<8x32xf32>
    %384 = arith.addf %381, %383 : vector<8x32xf32>
    %cst_177 = arith.constant 0.000000e+00 : f32
    %385 = vector.broadcast %cst_177 : f32 to vector<8x32xf32>
    %386 = arith.maximumf %384, %385 : vector<8x32xf32>
    %387 = arith.addf %379, %386 : vector<8x32xf32>
    %c0_178 = arith.constant 0 : index
    %c0_179 = arith.constant 0 : index
    %c0_180 = arith.constant 0 : index
    %388 = vector.load %arg40[%c0_178, %c0_179, %c0_180] : memref<1x1x32xf32, #tpu.memory_space<vmem>>, vector<1x1x32xf32>
    %389 = vector.shape_cast %388 : vector<1x1x32xf32> to vector<1x32xf32>
    %c0_181 = arith.constant 0 : index
    %c0_182 = arith.constant 0 : index
    %390 = vector.load %arg47[%c0_181, %c0_182] : memref<32x32xf32, #tpu.memory_space<vmem>>, vector<32x32xf32>
    %cst_183 = arith.constant dense<0.000000e+00> : vector<1x32xf32>
    %391 = tpu.matmul %389, %390, %cst_183 {dimension_numbers = #tpu.dot_dimension_numbers<[1], [0], [0], [1], [0, 0, 1, 1], [], []>} : vector<1x32xf32>, vector<32x32xf32>, vector<1x32xf32> -> vector<1x32xf32>
    %c0_184 = arith.constant 0 : index
    %c0_185 = arith.constant 0 : index
    %392 = vector.load %arg43[%c0_184, %c0_185] : memref<1x32xf32, #tpu.memory_space<vmem>>, vector<1x32xf32>
    %393 = arith.addf %391, %392 : vector<1x32xf32>
    %c0_186 = arith.constant 0 : index
    %c0_187 = arith.constant 0 : index
    %394 = vector.load %arg45[%c0_186, %c0_187] : memref<32x32xf32, #tpu.memory_space<vmem>>, vector<32x32xf32>
    %cst_188 = arith.constant dense<0.000000e+00> : vector<8x32xf32>
    %395 = tpu.matmul %387, %394, %cst_188 {dimension_numbers = #tpu.dot_dimension_numbers<[1], [0], [0], [1], [0, 0, 1, 1], [], []>} : vector<8x32xf32>, vector<32x32xf32>, vector<8x32xf32> -> vector<8x32xf32>
    %c0_189 = arith.constant 0 : index
    %c0_190 = arith.constant 0 : index
    %396 = vector.load %arg41[%c0_189, %c0_190] : memref<1x32xf32, #tpu.memory_space<vmem>>, vector<1x32xf32>
    %397 = vector.broadcast %396 : vector<1x32xf32> to vector<8x32xf32>
    %398 = arith.addf %395, %397 : vector<8x32xf32>
    %c0_191 = arith.constant 0 : index
    %c0_192 = arith.constant 0 : index
    %399 = vector.load %arg48[%c0_191, %c0_192] : memref<32x32xf32, #tpu.memory_space<vmem>>, vector<32x32xf32>
    %cst_193 = arith.constant dense<0.000000e+00> : vector<8x32xf32>
    %400 = tpu.matmul %387, %399, %cst_193 {dimension_numbers = #tpu.dot_dimension_numbers<[1], [0], [0], [1], [0, 0, 1, 1], [], []>} : vector<8x32xf32>, vector<32x32xf32>, vector<8x32xf32> -> vector<8x32xf32>
    %c0_194 = arith.constant 0 : index
    %c0_195 = arith.constant 0 : index
    %401 = vector.load %arg44[%c0_194, %c0_195] : memref<1x32xf32, #tpu.memory_space<vmem>>, vector<1x32xf32>
    %402 = vector.broadcast %401 : vector<1x32xf32> to vector<8x32xf32>
    %403 = arith.addf %400, %402 : vector<8x32xf32>
    %404 = vector.extract_strided_slice %393 {offsets = [0, 0], sizes = [1, 8], strides = [1, 1]} : vector<1x32xf32> to vector<1x8xf32>
    %405 = vector.extract_strided_slice %398 {offsets = [0, 0], sizes = [8, 8], strides = [1, 1]} : vector<8x32xf32> to vector<8x8xf32>
    %406 = vector.extract_strided_slice %403 {offsets = [0, 0], sizes = [8, 8], strides = [1, 1]} : vector<8x32xf32> to vector<8x8xf32>
    %cst_196 = arith.constant dense<0.000000e+00> : vector<1x8xf32>
    %407 = tpu.matmul %404, %405, %cst_196 {dimension_numbers = #tpu.dot_dimension_numbers<[1], [1], [0], [0], [0, 0, 1, 0], [], []>} : vector<1x8xf32>, vector<8x8xf32>, vector<1x8xf32> -> vector<1x8xf32>
    %cst_197 = arith.constant 0.176776692 : f32
    %408 = vector.broadcast %cst_197 : f32 to vector<1x8xf32>
    %409 = arith.mulf %407, %408 : vector<1x8xf32>
    %cst_198 = arith.constant dense<0xFF800000> : vector<1xf32>
    %410 = vector.multi_reduction <maximumf>, %409, %cst_198 [1] : vector<1x8xf32> to vector<1xf32>
    %411 = vector.shape_cast %410 : vector<1xf32> to vector<1x1xf32>
    %412 = vector.broadcast %411 : vector<1x1xf32> to vector<1x8xf32>
    %413 = arith.subf %409, %412 : vector<1x8xf32>
    %414 = math.exp %413 : vector<1x8xf32>
    %cst_199 = arith.constant dense<0.000000e+00> : vector<1xf32>
    %415 = vector.multi_reduction <add>, %414, %cst_199 [1] : vector<1x8xf32> to vector<1xf32>
    %416 = vector.shape_cast %415 : vector<1xf32> to vector<1x1xf32>
    %417 = tpu.reciprocal %416 {approx = true} : vector<1x1xf32> -> vector<1x1xf32>
    %418 = vector.broadcast %417 : vector<1x1xf32> to vector<1x8xf32>
    %419 = arith.mulf %414, %418 : vector<1x8xf32>
    %cst_200 = arith.constant dense<0.000000e+00> : vector<1x8xf32>
    %420 = tpu.matmul %419, %406, %cst_200 {dimension_numbers = #tpu.dot_dimension_numbers<[1], [0], [0], [1], [0, 0, 1, 1], [], []>} : vector<1x8xf32>, vector<8x8xf32>, vector<1x8xf32> -> vector<1x8xf32>
    %421 = vector.extract_strided_slice %393 {offsets = [0, 8], sizes = [1, 8], strides = [1, 1]} : vector<1x32xf32> to vector<1x8xf32>
    %422 = vector.extract_strided_slice %398 {offsets = [0, 8], sizes = [8, 8], strides = [1, 1]} : vector<8x32xf32> to vector<8x8xf32>
    %423 = vector.extract_strided_slice %403 {offsets = [0, 8], sizes = [8, 8], strides = [1, 1]} : vector<8x32xf32> to vector<8x8xf32>
    %cst_201 = arith.constant dense<0.000000e+00> : vector<1x8xf32>
    %424 = tpu.matmul %421, %422, %cst_201 {dimension_numbers = #tpu.dot_dimension_numbers<[1], [1], [0], [0], [0, 0, 1, 0], [], []>} : vector<1x8xf32>, vector<8x8xf32>, vector<1x8xf32> -> vector<1x8xf32>
    %cst_202 = arith.constant 0.176776692 : f32
    %425 = vector.broadcast %cst_202 : f32 to vector<1x8xf32>
    %426 = arith.mulf %424, %425 : vector<1x8xf32>
    %cst_203 = arith.constant dense<0xFF800000> : vector<1xf32>
    %427 = vector.multi_reduction <maximumf>, %426, %cst_203 [1] : vector<1x8xf32> to vector<1xf32>
    %428 = vector.shape_cast %427 : vector<1xf32> to vector<1x1xf32>
    %429 = vector.broadcast %428 : vector<1x1xf32> to vector<1x8xf32>
    %430 = arith.subf %426, %429 : vector<1x8xf32>
    %431 = math.exp %430 : vector<1x8xf32>
    %cst_204 = arith.constant dense<0.000000e+00> : vector<1xf32>
    %432 = vector.multi_reduction <add>, %431, %cst_204 [1] : vector<1x8xf32> to vector<1xf32>
    %433 = vector.shape_cast %432 : vector<1xf32> to vector<1x1xf32>
    %434 = tpu.reciprocal %433 {approx = true} : vector<1x1xf32> -> vector<1x1xf32>
    %435 = vector.broadcast %434 : vector<1x1xf32> to vector<1x8xf32>
    %436 = arith.mulf %431, %435 : vector<1x8xf32>
    %cst_205 = arith.constant dense<0.000000e+00> : vector<1x8xf32>
    %437 = tpu.matmul %436, %423, %cst_205 {dimension_numbers = #tpu.dot_dimension_numbers<[1], [0], [0], [1], [0, 0, 1, 1], [], []>} : vector<1x8xf32>, vector<8x8xf32>, vector<1x8xf32> -> vector<1x8xf32>
    %438 = vector.extract_strided_slice %393 {offsets = [0, 16], sizes = [1, 8], strides = [1, 1]} : vector<1x32xf32> to vector<1x8xf32>
    %439 = vector.extract_strided_slice %398 {offsets = [0, 16], sizes = [8, 8], strides = [1, 1]} : vector<8x32xf32> to vector<8x8xf32>
    %440 = vector.extract_strided_slice %403 {offsets = [0, 16], sizes = [8, 8], strides = [1, 1]} : vector<8x32xf32> to vector<8x8xf32>
    %cst_206 = arith.constant dense<0.000000e+00> : vector<1x8xf32>
    %441 = tpu.matmul %438, %439, %cst_206 {dimension_numbers = #tpu.dot_dimension_numbers<[1], [1], [0], [0], [0, 0, 1, 0], [], []>} : vector<1x8xf32>, vector<8x8xf32>, vector<1x8xf32> -> vector<1x8xf32>
    %cst_207 = arith.constant 0.176776692 : f32
    %442 = vector.broadcast %cst_207 : f32 to vector<1x8xf32>
    %443 = arith.mulf %441, %442 : vector<1x8xf32>
    %cst_208 = arith.constant dense<0xFF800000> : vector<1xf32>
    %444 = vector.multi_reduction <maximumf>, %443, %cst_208 [1] : vector<1x8xf32> to vector<1xf32>
    %445 = vector.shape_cast %444 : vector<1xf32> to vector<1x1xf32>
    %446 = vector.broadcast %445 : vector<1x1xf32> to vector<1x8xf32>
    %447 = arith.subf %443, %446 : vector<1x8xf32>
    %448 = math.exp %447 : vector<1x8xf32>
    %cst_209 = arith.constant dense<0.000000e+00> : vector<1xf32>
    %449 = vector.multi_reduction <add>, %448, %cst_209 [1] : vector<1x8xf32> to vector<1xf32>
    %450 = vector.shape_cast %449 : vector<1xf32> to vector<1x1xf32>
    %451 = tpu.reciprocal %450 {approx = true} : vector<1x1xf32> -> vector<1x1xf32>
    %452 = vector.broadcast %451 : vector<1x1xf32> to vector<1x8xf32>
    %453 = arith.mulf %448, %452 : vector<1x8xf32>
    %cst_210 = arith.constant dense<0.000000e+00> : vector<1x8xf32>
    %454 = tpu.matmul %453, %440, %cst_210 {dimension_numbers = #tpu.dot_dimension_numbers<[1], [0], [0], [1], [0, 0, 1, 1], [], []>} : vector<1x8xf32>, vector<8x8xf32>, vector<1x8xf32> -> vector<1x8xf32>
    %455 = vector.extract_strided_slice %393 {offsets = [0, 24], sizes = [1, 8], strides = [1, 1]} : vector<1x32xf32> to vector<1x8xf32>
    %456 = vector.extract_strided_slice %398 {offsets = [0, 24], sizes = [8, 8], strides = [1, 1]} : vector<8x32xf32> to vector<8x8xf32>
    %457 = vector.extract_strided_slice %403 {offsets = [0, 24], sizes = [8, 8], strides = [1, 1]} : vector<8x32xf32> to vector<8x8xf32>
    %cst_211 = arith.constant dense<0.000000e+00> : vector<1x8xf32>
    %458 = tpu.matmul %455, %456, %cst_211 {dimension_numbers = #tpu.dot_dimension_numbers<[1], [1], [0], [0], [0, 0, 1, 0], [], []>} : vector<1x8xf32>, vector<8x8xf32>, vector<1x8xf32> -> vector<1x8xf32>
    %cst_212 = arith.constant 0.176776692 : f32
    %459 = vector.broadcast %cst_212 : f32 to vector<1x8xf32>
    %460 = arith.mulf %458, %459 : vector<1x8xf32>
    %cst_213 = arith.constant dense<0xFF800000> : vector<1xf32>
    %461 = vector.multi_reduction <maximumf>, %460, %cst_213 [1] : vector<1x8xf32> to vector<1xf32>
    %462 = vector.shape_cast %461 : vector<1xf32> to vector<1x1xf32>
    %463 = vector.broadcast %462 : vector<1x1xf32> to vector<1x8xf32>
    %464 = arith.subf %460, %463 : vector<1x8xf32>
    %465 = math.exp %464 : vector<1x8xf32>
    %cst_214 = arith.constant dense<0.000000e+00> : vector<1xf32>
    %466 = vector.multi_reduction <add>, %465, %cst_214 [1] : vector<1x8xf32> to vector<1xf32>
    %467 = vector.shape_cast %466 : vector<1xf32> to vector<1x1xf32>
    %468 = tpu.reciprocal %467 {approx = true} : vector<1x1xf32> -> vector<1x1xf32>
    %469 = vector.broadcast %468 : vector<1x1xf32> to vector<1x8xf32>
    %470 = arith.mulf %465, %469 : vector<1x8xf32>
    %cst_215 = arith.constant dense<0.000000e+00> : vector<1x8xf32>
    %471 = tpu.matmul %470, %457, %cst_215 {dimension_numbers = #tpu.dot_dimension_numbers<[1], [0], [0], [1], [0, 0, 1, 1], [], []>} : vector<1x8xf32>, vector<8x8xf32>, vector<1x8xf32> -> vector<1x8xf32>
    %472 = tpu.concatenate %420, %437, %454, %471 in 1 : vector<1x8xf32>, vector<1x8xf32>, vector<1x8xf32>, vector<1x8xf32> -> vector<1x32xf32>
    %473 = arith.addf %393, %472 : vector<1x32xf32>
    %c0_216 = arith.constant 0 : index
    %c0_217 = arith.constant 0 : index
    %474 = vector.load %arg46[%c0_216, %c0_217] : memref<32x32xf32, #tpu.memory_space<vmem>>, vector<32x32xf32>
    %cst_218 = arith.constant dense<0.000000e+00> : vector<1x32xf32>
    %475 = tpu.matmul %473, %474, %cst_218 {dimension_numbers = #tpu.dot_dimension_numbers<[1], [0], [0], [1], [0, 0, 1, 1], [], []>} : vector<1x32xf32>, vector<32x32xf32>, vector<1x32xf32> -> vector<1x32xf32>
    %c0_219 = arith.constant 0 : index
    %c0_220 = arith.constant 0 : index
    %476 = vector.load %arg42[%c0_219, %c0_220] : memref<1x32xf32, #tpu.memory_space<vmem>>, vector<1x32xf32>
    %477 = arith.addf %475, %476 : vector<1x32xf32>
    %cst_221 = arith.constant 0.000000e+00 : f32
    %478 = vector.broadcast %cst_221 : f32 to vector<1x32xf32>
    %479 = arith.maximumf %477, %478 : vector<1x32xf32>
    %480 = arith.addf %473, %479 : vector<1x32xf32>
    %c0_222 = arith.constant 0 : index
    %c0_223 = arith.constant 0 : index
    %481 = vector.load %arg55[%c0_222, %c0_223] : memref<32x32xf32, #tpu.memory_space<vmem>>, vector<32x32xf32>
    %cst_224 = arith.constant dense<0.000000e+00> : vector<1x32xf32>
    %482 = tpu.matmul %480, %481, %cst_224 {dimension_numbers = #tpu.dot_dimension_numbers<[1], [0], [0], [1], [0, 0, 1, 1], [], []>} : vector<1x32xf32>, vector<32x32xf32>, vector<1x32xf32> -> vector<1x32xf32>
    %c0_225 = arith.constant 0 : index
    %c0_226 = arith.constant 0 : index
    %483 = vector.load %arg51[%c0_225, %c0_226] : memref<1x32xf32, #tpu.memory_space<vmem>>, vector<1x32xf32>
    %484 = arith.addf %482, %483 : vector<1x32xf32>
    %c0_227 = arith.constant 0 : index
    %c0_228 = arith.constant 0 : index
    %485 = vector.load %arg56[%c0_227, %c0_228] : memref<32x32xf32, #tpu.memory_space<vmem>>, vector<32x32xf32>
    %cst_229 = arith.constant dense<0.000000e+00> : vector<1x32xf32>
    %486 = tpu.matmul %480, %485, %cst_229 {dimension_numbers = #tpu.dot_dimension_numbers<[1], [0], [0], [1], [0, 0, 1, 1], [], []>} : vector<1x32xf32>, vector<32x32xf32>, vector<1x32xf32> -> vector<1x32xf32>
    %c0_230 = arith.constant 0 : index
    %c0_231 = arith.constant 0 : index
    %487 = vector.load %arg52[%c0_230, %c0_231] : memref<1x32xf32, #tpu.memory_space<vmem>>, vector<1x32xf32>
    %488 = arith.addf %486, %487 : vector<1x32xf32>
    %489 = arith.addf %484, %488 : vector<1x32xf32>
    %c0_232 = arith.constant 0 : index
    %c0_233 = arith.constant 0 : index
    %490 = vector.load %arg54[%c0_232, %c0_233] : memref<32x32xf32, #tpu.memory_space<vmem>>, vector<32x32xf32>
    %cst_234 = arith.constant dense<0.000000e+00> : vector<1x32xf32>
    %491 = tpu.matmul %489, %490, %cst_234 {dimension_numbers = #tpu.dot_dimension_numbers<[1], [0], [0], [1], [0, 0, 1, 1], [], []>} : vector<1x32xf32>, vector<32x32xf32>, vector<1x32xf32> -> vector<1x32xf32>
    %c0_235 = arith.constant 0 : index
    %c0_236 = arith.constant 0 : index
    %492 = vector.load %arg50[%c0_235, %c0_236] : memref<1x32xf32, #tpu.memory_space<vmem>>, vector<1x32xf32>
    %493 = arith.addf %491, %492 : vector<1x32xf32>
    %cst_237 = arith.constant 0.000000e+00 : f32
    %494 = vector.broadcast %cst_237 : f32 to vector<1x32xf32>
    %495 = arith.maximumf %493, %494 : vector<1x32xf32>
    %496 = arith.addf %489, %495 : vector<1x32xf32>
    %c0_238 = arith.constant 0 : index
    %c0_239 = arith.constant 0 : index
    %497 = vector.load %arg63[%c0_238, %c0_239] : memref<32x32xf32, #tpu.memory_space<vmem>>, vector<32x32xf32>
    %cst_240 = arith.constant dense<0.000000e+00> : vector<1x32xf32>
    %498 = tpu.matmul %496, %497, %cst_240 {dimension_numbers = #tpu.dot_dimension_numbers<[1], [0], [0], [1], [0, 0, 1, 1], [], []>} : vector<1x32xf32>, vector<32x32xf32>, vector<1x32xf32> -> vector<1x32xf32>
    %c0_241 = arith.constant 0 : index
    %c0_242 = arith.constant 0 : index
    %499 = vector.load %arg59[%c0_241, %c0_242] : memref<1x32xf32, #tpu.memory_space<vmem>>, vector<1x32xf32>
    %500 = arith.addf %498, %499 : vector<1x32xf32>
    %c0_243 = arith.constant 0 : index
    %c0_244 = arith.constant 0 : index
    %501 = vector.load %arg64[%c0_243, %c0_244] : memref<32x32xf32, #tpu.memory_space<vmem>>, vector<32x32xf32>
    %cst_245 = arith.constant dense<0.000000e+00> : vector<1x32xf32>
    %502 = tpu.matmul %496, %501, %cst_245 {dimension_numbers = #tpu.dot_dimension_numbers<[1], [0], [0], [1], [0, 0, 1, 1], [], []>} : vector<1x32xf32>, vector<32x32xf32>, vector<1x32xf32> -> vector<1x32xf32>
    %c0_246 = arith.constant 0 : index
    %c0_247 = arith.constant 0 : index
    %503 = vector.load %arg60[%c0_246, %c0_247] : memref<1x32xf32, #tpu.memory_space<vmem>>, vector<1x32xf32>
    %504 = arith.addf %502, %503 : vector<1x32xf32>
    %505 = arith.addf %500, %504 : vector<1x32xf32>
    %c0_248 = arith.constant 0 : index
    %c0_249 = arith.constant 0 : index
    %506 = vector.load %arg62[%c0_248, %c0_249] : memref<32x32xf32, #tpu.memory_space<vmem>>, vector<32x32xf32>
    %cst_250 = arith.constant dense<0.000000e+00> : vector<1x32xf32>
    %507 = tpu.matmul %505, %506, %cst_250 {dimension_numbers = #tpu.dot_dimension_numbers<[1], [0], [0], [1], [0, 0, 1, 1], [], []>} : vector<1x32xf32>, vector<32x32xf32>, vector<1x32xf32> -> vector<1x32xf32>
    %c0_251 = arith.constant 0 : index
    %c0_252 = arith.constant 0 : index
    %508 = vector.load %arg58[%c0_251, %c0_252] : memref<1x32xf32, #tpu.memory_space<vmem>>, vector<1x32xf32>
    %509 = arith.addf %507, %508 : vector<1x32xf32>
    %cst_253 = arith.constant 0.000000e+00 : f32
    %510 = vector.broadcast %cst_253 : f32 to vector<1x32xf32>
    %511 = arith.maximumf %509, %510 : vector<1x32xf32>
    %512 = arith.addf %505, %511 : vector<1x32xf32>
    %c0_254 = arith.constant 0 : index
    %c0_255 = arith.constant 0 : index
    %513 = vector.load %arg5[%c0_254, %c0_255] : memref<32x64xf32, #tpu.memory_space<vmem>>, vector<32x64xf32>
    %cst_256 = arith.constant dense<0.000000e+00> : vector<1x64xf32>
    %514 = tpu.matmul %512, %513, %cst_256 {dimension_numbers = #tpu.dot_dimension_numbers<[1], [0], [0], [1], [0, 0, 1, 1], [], []>} : vector<1x32xf32>, vector<32x64xf32>, vector<1x64xf32> -> vector<1x64xf32>
    %c0_257 = arith.constant 0 : index
    %c0_258 = arith.constant 0 : index
    %515 = vector.load %arg4[%c0_257, %c0_258] : memref<1x64xf32, #tpu.memory_space<vmem>>, vector<1x64xf32>
    %516 = arith.addf %514, %515 : vector<1x64xf32>
    %c0_259 = arith.constant 0 : index
    %c0_260 = arith.constant 0 : index
    %c0_261 = arith.constant 0 : index
    %517 = vector.load %arg65[%c0_259, %c0_260, %c0_261] : memref<1x1x64xf32, #tpu.memory_space<vmem>>, vector<1x1x64xf32>
    %518 = vector.shape_cast %517 : vector<1x1x64xf32> to vector<1x64xf32>
    %519 = vector.shape_cast %516 : vector<1x64xf32> to vector<1x1x64xf32>
    tpu.vector_store %arg65[%c0_259, %c0_260, %c0_261], %519 {strides = array<i32>} : memref<1x1x64xf32, #tpu.memory_space<vmem>>, vector<1x1x64xf32>,
    return
  }
  func.func @transform_0(%arg0: i32) -> (i32, i32) {
    %c0_i32 = arith.constant 0 : i32
    %c0_i32_0 = arith.constant 0 : i32
    return %arg0, %c0_i32 : i32, i32
  }
  func.func @transform_1(%arg0: i32) -> (i32, i32) {
    %c0_i32 = arith.constant 0 : i32
    %c0_i32_0 = arith.constant 0 : i32
    %c0_i32_1 = arith.constant 0 : i32
    return %c0_i32, %c0_i32_0 : i32, i32
  }
  func.func @transform_2(%arg0: i32) -> (i32, i32) {
    %c0_i32 = arith.constant 0 : i32
    %c0_i32_0 = arith.constant 0 : i32
    %c0_i32_1 = arith.constant 0 : i32
    return %c0_i32, %c0_i32_0 : i32, i32
  }
  func.func @transform_3(%arg0: i32) -> (i32, i32) {
    %c0_i32 = arith.constant 0 : i32
    %c0_i32_0 = arith.constant 0 : i32
    %c0_i32_1 = arith.constant 0 : i32
    return %c0_i32, %c0_i32_0 : i32, i32
  }
  func.func @transform_4(%arg0: i32) -> (i32, i32) {
    %c0_i32 = arith.constant 0 : i32
    %c0_i32_0 = arith.constant 0 : i32
    %c0_i32_1 = arith.constant 0 : i32
    return %c0_i32, %c0_i32_0 : i32, i32
  }
  func.func @transform_5(%arg0: i32) -> (i32, i32, i32) {
    %c0_i32 = arith.constant 0 : i32
    %c0_i32_0 = arith.constant 0 : i32
    %c0_i32_1 = arith.constant 0 : i32
    %c0_i32_2 = arith.constant 0 : i32
    return %c0_i32, %c0_i32_0, %c0_i32_1 : i32, i32, i32
  }
  func.func @transform_6(%arg0: i32) -> (i32, i32) {
    %c0_i32 = arith.constant 0 : i32
    %c0_i32_0 = arith.constant 0 : i32
    %c0_i32_1 = arith.constant 0 : i32
    return %c0_i32, %c0_i32_0 : i32, i32
  }
  func.func @transform_7(%arg0: i32) -> (i32, i32) {
    %c0_i32 = arith.constant 0 : i32
    %c0_i32_0 = arith.constant 0 : i32
    %c0_i32_1 = arith.constant 0 : i32
    return %c0_i32, %c0_i32_0 : i32, i32
  }
  func.func @transform_8(%arg0: i32) -> (i32, i32) {
    %c0_i32 = arith.constant 0 : i32
    %c0_i32_0 = arith.constant 0 : i32
    %c0_i32_1 = arith.constant 0 : i32
    return %c0_i32, %c0_i32_0 : i32, i32
  }
  func.func @transform_9(%arg0: i32) -> (i32, i32) {
    %c0_i32 = arith.constant 0 : i32
    %c0_i32_0 = arith.constant 0 : i32
    %c0_i32_1 = arith.constant 0 : i32
    return %c0_i32, %c0_i32_0 : i32, i32
  }
  func.func @transform_10(%arg0: i32) -> (i32, i32) {
    %c0_i32 = arith.constant 0 : i32
    %c0_i32_0 = arith.constant 0 : i32
    %c0_i32_1 = arith.constant 0 : i32
    return %c0_i32, %c0_i32_0 : i32, i32
  }
  func.func @transform_11(%arg0: i32) -> (i32, i32) {
    %c0_i32 = arith.constant 0 : i32
    %c0_i32_0 = arith.constant 0 : i32
    %c0_i32_1 = arith.constant 0 : i32
    return %c0_i32, %c0_i32_0 : i32, i32
  }
  func.func @transform_12(%arg0: i32) -> (i32, i32) {
    %c0_i32 = arith.constant 0 : i32
    %c0_i32_0 = arith.constant 0 : i32
    %c0_i32_1 = arith.constant 0 : i32
    return %c0_i32, %c0_i32_0 : i32, i32
  }
  func.func @transform_13(%arg0: i32) -> (i32, i32) {
    %c0_i32 = arith.constant 0 : i32
    %c0_i32_0 = arith.constant 0 : i32
    %c0_i32_1 = arith.constant 0 : i32
    return %c0_i32, %c0_i32_0 : i32, i32
  }
  func.func @transform_14(%arg0: i32) -> (i32, i32) {
    %c0_i32 = arith.constant 0 : i32
    %c0_i32_0 = arith.constant 0 : i32
    %c0_i32_1 = arith.constant 0 : i32
    return %c0_i32, %c0_i32_0 : i32, i32
  }
  func.func @transform_15(%arg0: i32) -> (i32, i32) {
    %c0_i32 = arith.constant 0 : i32
    %c0_i32_0 = arith.constant 0 : i32
    %c0_i32_1 = arith.constant 0 : i32
    return %c0_i32, %c0_i32_0 : i32, i32
  }
  func.func @transform_16(%arg0: i32) -> (i32, i32) {
    %c0_i32 = arith.constant 0 : i32
    %c0_i32_0 = arith.constant 0 : i32
    %c0_i32_1 = arith.constant 0 : i32
    return %c0_i32, %c0_i32_0 : i32, i32
  }
  func.func @transform_17(%arg0: i32) -> (i32, i32) {
    %c0_i32 = arith.constant 0 : i32
    %c0_i32_0 = arith.constant 0 : i32
    %c0_i32_1 = arith.constant 0 : i32
    return %c0_i32, %c0_i32_0 : i32, i32
  }
  func.func @transform_18(%arg0: i32) -> (i32, i32) {
    %c0_i32 = arith.constant 0 : i32
    %c0_i32_0 = arith.constant 0 : i32
    %c0_i32_1 = arith.constant 0 : i32
    return %c0_i32, %c0_i32_0 : i32, i32
  }
  func.func @transform_19(%arg0: i32) -> (i32, i32) {
    %c0_i32 = arith.constant 0 : i32
    %c0_i32_0 = arith.constant 0 : i32
    %c0_i32_1 = arith.constant 0 : i32
    return %c0_i32, %c0_i32_0 : i32, i32
  }
  func.func @transform_20(%arg0: i32) -> (i32, i32) {
    %c0_i32 = arith.constant 0 : i32
    %c0_i32_0 = arith.constant 0 : i32
    %c0_i32_1 = arith.constant 0 : i32
    return %c0_i32, %c0_i32_0 : i32, i32
  }
  func.func @transform_21(%arg0: i32) -> (i32, i32) {
    %c0_i32 = arith.constant 0 : i32
    %c0_i32_0 = arith.constant 0 : i32
    %c0_i32_1 = arith.constant 0 : i32
    return %c0_i32, %c0_i32_0 : i32, i32
  }
  func.func @transform_22(%arg0: i32) -> (i32, i32, i32) {
    %c0_i32 = arith.constant 0 : i32
    %c0_i32_0 = arith.constant 0 : i32
    %c0_i32_1 = arith.constant 0 : i32
    %c0_i32_2 = arith.constant 0 : i32
    return %c0_i32, %c0_i32_0, %c0_i32_1 : i32, i32, i32
  }
  func.func @transform_23(%arg0: i32) -> (i32, i32) {
    %c0_i32 = arith.constant 0 : i32
    %c0_i32_0 = arith.constant 0 : i32
    %c0_i32_1 = arith.constant 0 : i32
    return %c0_i32, %c0_i32_0 : i32, i32
  }
  func.func @transform_24(%arg0: i32) -> (i32, i32) {
    %c0_i32 = arith.constant 0 : i32
    %c0_i32_0 = arith.constant 0 : i32
    %c0_i32_1 = arith.constant 0 : i32
    return %c0_i32, %c0_i32_0 : i32, i32
  }
  func.func @transform_25(%arg0: i32) -> (i32, i32) {
    %c0_i32 = arith.constant 0 : i32
    %c0_i32_0 = arith.constant 0 : i32
    %c0_i32_1 = arith.constant 0 : i32
    return %c0_i32, %c0_i32_0 : i32, i32
  }
  func.func @transform_26(%arg0: i32) -> (i32, i32) {
    %c0_i32 = arith.constant 0 : i32
    %c0_i32_0 = arith.constant 0 : i32
    %c0_i32_1 = arith.constant 0 : i32
    return %c0_i32, %c0_i32_0 : i32, i32
  }
  func.func @transform_27(%arg0: i32) -> (i32, i32) {
    %c0_i32 = arith.constant 0 : i32
    %c0_i32_0 = arith.constant 0 : i32
    %c0_i32_1 = arith.constant 0 : i32
    return %c0_i32, %c0_i32_0 : i32, i32
  }
  func.func @transform_28(%arg0: i32) -> (i32, i32) {
    %c0_i32 = arith.constant 0 : i32
    %c0_i32_0 = arith.constant 0 : i32
    %c0_i32_1 = arith.constant 0 : i32
    return %c0_i32, %c0_i32_0 : i32, i32
  }
  func.func @transform_29(%arg0: i32) -> (i32, i32) {
    %c0_i32 = arith.constant 0 : i32
    %c0_i32_0 = arith.constant 0 : i32
    %c0_i32_1 = arith.constant 0 : i32
    return %c0_i32, %c0_i32_0 : i32, i32
  }
  func.func @transform_30(%arg0: i32) -> (i32, i32) {
    %c0_i32 = arith.constant 0 : i32
    %c0_i32_0 = arith.constant 0 : i32
    %c0_i32_1 = arith.constant 0 : i32
    return %c0_i32, %c0_i32_0 : i32, i32
  }
  func.func @transform_31(%arg0: i32) -> (i32, i32) {
    %c0_i32 = arith.constant 0 : i32
    %c0_i32_0 = arith.constant 0 : i32
    %c0_i32_1 = arith.constant 0 : i32
    return %c0_i32, %c0_i32_0 : i32, i32
  }
  func.func @transform_32(%arg0: i32) -> (i32, i32) {
    %c0_i32 = arith.constant 0 : i32
    %c0_i32_0 = arith.constant 0 : i32
    %c0_i32_1 = arith.constant 0 : i32
    return %c0_i32, %c0_i32_0 : i32, i32
  }
  func.func @transform_33(%arg0: i32) -> (i32, i32) {
    %c0_i32 = arith.constant 0 : i32
    %c0_i32_0 = arith.constant 0 : i32
    %c0_i32_1 = arith.constant 0 : i32
    return %c0_i32, %c0_i32_0 : i32, i32
  }
  func.func @transform_34(%arg0: i32) -> (i32, i32) {
    %c0_i32 = arith.constant 0 : i32
    %c0_i32_0 = arith.constant 0 : i32
    %c0_i32_1 = arith.constant 0 : i32
    return %c0_i32, %c0_i32_0 : i32, i32
  }
  func.func @transform_35(%arg0: i32) -> (i32, i32) {
    %c0_i32 = arith.constant 0 : i32
    %c0_i32_0 = arith.constant 0 : i32
    %c0_i32_1 = arith.constant 0 : i32
    return %c0_i32, %c0_i32_0 : i32, i32
  }
  func.func @transform_36(%arg0: i32) -> (i32, i32) {
    %c0_i32 = arith.constant 0 : i32
    %c0_i32_0 = arith.constant 0 : i32
    %c0_i32_1 = arith.constant 0 : i32
    return %c0_i32, %c0_i32_0 : i32, i32
  }
  func.func @transform_37(%arg0: i32) -> (i32, i32) {
    %c0_i32 = arith.constant 0 : i32
    %c0_i32_0 = arith.constant 0 : i32
    %c0_i32_1 = arith.constant 0 : i32
    return %c0_i32, %c0_i32_0 : i32, i32
  }
  func.func @transform_38(%arg0: i32) -> (i32, i32) {
    %c0_i32 = arith.constant 0 : i32
    %c0_i32_0 = arith.constant 0 : i32
    %c0_i32_1 = arith.constant 0 : i32
    return %c0_i32, %c0_i32_0 : i32, i32
  }
  func.func @transform_39(%arg0: i32) -> (i32, i32, i32) {
    %c0_i32 = arith.constant 0 : i32
    %c0_i32_0 = arith.constant 0 : i32
    %c0_i32_1 = arith.constant 0 : i32
    %c0_i32_2 = arith.constant 0 : i32
    return %c0_i32, %c0_i32_0, %c0_i32_1 : i32, i32, i32
  }
  func.func @transform_40(%arg0: i32) -> (i32, i32) {
    %c0_i32 = arith.constant 0 : i32
    %c0_i32_0 = arith.constant 0 : i32
    %c0_i32_1 = arith.constant 0 : i32
    return %c0_i32, %c0_i32_0 : i32, i32
  }
  func.func @transform_41(%arg0: i32) -> (i32, i32) {
    %c0_i32 = arith.constant 0 : i32
    %c0_i32_0 = arith.constant 0 : i32
    %c0_i32_1 = arith.constant 0 : i32
    return %c0_i32, %c0_i32_0 : i32, i32
  }
  func.func @transform_42(%arg0: i32) -> (i32, i32) {
    %c0_i32 = arith.constant 0 : i32
    %c0_i32_0 = arith.constant 0 : i32
    %c0_i32_1 = arith.constant 0 : i32
    return %c0_i32, %c0_i32_0 : i32, i32
  }
  func.func @transform_43(%arg0: i32) -> (i32, i32) {
    %c0_i32 = arith.constant 0 : i32
    %c0_i32_0 = arith.constant 0 : i32
    %c0_i32_1 = arith.constant 0 : i32
    return %c0_i32, %c0_i32_0 : i32, i32
  }
  func.func @transform_44(%arg0: i32) -> (i32, i32) {
    %c0_i32 = arith.constant 0 : i32
    %c0_i32_0 = arith.constant 0 : i32
    %c0_i32_1 = arith.constant 0 : i32
    return %c0_i32, %c0_i32_0 : i32, i32
  }
  func.func @transform_45(%arg0: i32) -> (i32, i32) {
    %c0_i32 = arith.constant 0 : i32
    %c0_i32_0 = arith.constant 0 : i32
    %c0_i32_1 = arith.constant 0 : i32
    return %c0_i32, %c0_i32_0 : i32, i32
  }
  func.func @transform_46(%arg0: i32) -> (i32, i32) {
    %c0_i32 = arith.constant 0 : i32
    %c0_i32_0 = arith.constant 0 : i32
    %c0_i32_1 = arith.constant 0 : i32
    return %c0_i32, %c0_i32_0 : i32, i32
  }
  func.func @transform_47(%arg0: i32) -> (i32, i32) {
    %c0_i32 = arith.constant 0 : i32
    %c0_i32_0 = arith.constant 0 : i32
    %c0_i32_1 = arith.constant 0 : i32
    return %c0_i32, %c0_i32_0 : i32, i32
  }
  func.func @transform_48(%arg0: i32) -> (i32, i32) {
    %c0_i32 = arith.constant 0 : i32
    %c0_i32_0 = arith.constant 0 : i32
    %c0_i32_1 = arith.constant 0 : i32
    return %c0_i32, %c0_i32_0 : i32, i32
  }
  func.func @transform_49(%arg0: i32) -> (i32, i32) {
    %c0_i32 = arith.constant 0 : i32
    %c0_i32_0 = arith.constant 0 : i32
    %c0_i32_1 = arith.constant 0 : i32
    return %c0_i32, %c0_i32_0 : i32, i32
  }
  func.func @transform_50(%arg0: i32) -> (i32, i32) {
    %c0_i32 = arith.constant 0 : i32
    %c0_i32_0 = arith.constant 0 : i32
    %c0_i32_1 = arith.constant 0 : i32
    return %c0_i32, %c0_i32_0 : i32, i32
  }
  func.func @transform_51(%arg0: i32) -> (i32, i32) {
    %c0_i32 = arith.constant 0 : i32
    %c0_i32_0 = arith.constant 0 : i32
    %c0_i32_1 = arith.constant 0 : i32
    return %c0_i32, %c0_i32_0 : i32, i32
  }
  func.func @transform_52(%arg0: i32) -> (i32, i32) {
    %c0_i32 = arith.constant 0 : i32
    %c0_i32_0 = arith.constant 0 : i32
    %c0_i32_1 = arith.constant 0 : i32
    return %c0_i32, %c0_i32_0 : i32, i32
  }
  func.func @transform_53(%arg0: i32) -> (i32, i32) {
    %c0_i32 = arith.constant 0 : i32
    %c0_i32_0 = arith.constant 0 : i32
    %c0_i32_1 = arith.constant 0 : i32
    return %c0_i32, %c0_i32_0 : i32, i32
  }
  func.func @transform_54(%arg0: i32) -> (i32, i32) {
    %c0_i32 = arith.constant 0 : i32
    %c0_i32_0 = arith.constant 0 : i32
    %c0_i32_1 = arith.constant 0 : i32
    return %c0_i32, %c0_i32_0 : i32, i32
  }
  func.func @transform_55(%arg0: i32) -> (i32, i32) {
    %c0_i32 = arith.constant 0 : i32
    %c0_i32_0 = arith.constant 0 : i32
    %c0_i32_1 = arith.constant 0 : i32
    return %c0_i32, %c0_i32_0 : i32, i32
  }
  func.func @transform_56(%arg0: i32) -> (i32, i32) {
    %c0_i32 = arith.constant 0 : i32
    %c0_i32_0 = arith.constant 0 : i32
    %c0_i32_1 = arith.constant 0 : i32
    return %c0_i32, %c0_i32_0 : i32, i32
  }
  func.func @transform_57(%arg0: i32) -> (i32, i32) {
    %c0_i32 = arith.constant 0 : i32
    %c0_i32_0 = arith.constant 0 : i32
    %c0_i32_1 = arith.constant 0 : i32
    return %c0_i32, %c0_i32_0 : i32, i32
  }
  func.func @transform_58(%arg0: i32) -> (i32, i32) {
    %c0_i32 = arith.constant 0 : i32
    %c0_i32_0 = arith.constant 0 : i32
    %c0_i32_1 = arith.constant 0 : i32
    return %c0_i32, %c0_i32_0 : i32, i32
  }
  func.func @transform_59(%arg0: i32) -> (i32, i32) {
    %c0_i32 = arith.constant 0 : i32
    %c0_i32_0 = arith.constant 0 : i32
    %c0_i32_1 = arith.constant 0 : i32
    return %c0_i32, %c0_i32_0 : i32, i32
  }
  func.func @transform_60(%arg0: i32) -> (i32, i32) {
    %c0_i32 = arith.constant 0 : i32
    %c0_i32_0 = arith.constant 0 : i32
    %c0_i32_1 = arith.constant 0 : i32
    return %c0_i32, %c0_i32_0 : i32, i32
  }
  func.func @transform_61(%arg0: i32) -> (i32, i32) {
    %c0_i32 = arith.constant 0 : i32
    %c0_i32_0 = arith.constant 0 : i32
    %c0_i32_1 = arith.constant 0 : i32
    return %c0_i32, %c0_i32_0 : i32, i32
  }
  func.func @transform_62(%arg0: i32) -> (i32, i32) {
    %c0_i32 = arith.constant 0 : i32
    %c0_i32_0 = arith.constant 0 : i32
    %c0_i32_1 = arith.constant 0 : i32
    return %c0_i32, %c0_i32_0 : i32, i32
  }
  func.func @transform_63(%arg0: i32) -> (i32, i32) {
    %c0_i32 = arith.constant 0 : i32
    %c0_i32_0 = arith.constant 0 : i32
    %c0_i32_1 = arith.constant 0 : i32
    return %c0_i32, %c0_i32_0 : i32, i32
  }
  func.func @transform_64(%arg0: i32) -> (i32, i32, i32) {
    %c0_i32 = arith.constant 0 : i32
    %c0_i32_0 = arith.constant 0 : i32
    %c0_i32_1 = arith.constant 0 : i32
    return %arg0, %c0_i32, %c0_i32_0 : i32, i32, i32
  }
}

</mosaic_0001>

<bundles_post_ra>
// kernel: set_transformer_wrapper_forward.1
= control target key start
LH: loop header
LB: loop body
LE: loop exit
PB: predicated region body
PF: predicated region fallthrough
CT: control target
= control target key end

     0   :  { %s7843_s6 = smov 1   ;;  %s7844_s10 = smov 2   ;;  %s9649_s0 = inlined_call_operand.smem [shape: u32[65], index: -1, kind: input, shape index: {}] }
   0x1   :  { %s7961_s5 = sld [smem:[%s9649_s0]]   ;;  %s7845_s14 = smov 3  }
   0x2   :  { %s7966_s9 = sld [smem:[%s9649_s0 + %s7843_s6]]   ;;  %s7846_s18 = smov 4  }
   0x3   :  { %s7971_s13 = sld [smem:[%s9649_s0 + %s7844_s10]]   ;;  %s7847_s22 = smov 5  }
   0x4   :  { %s7976_s17 = sld [smem:[%s9649_s0 + %s7845_s14]]   ;;  %s7848_s26 = smov 6  }
   0x5   :  { %s7981_s21 = sld [smem:[%s9649_s0 + %s7846_s18]]   ;;  %s7849_s30 = smov 7  }
   0x6   :  { %s7986_s25 = sld [smem:[%s9649_s0 + %s7847_s22]]   ;;  %s7850_s4 = smov 8  }
   0x7   :  { %9743 = sst [smem:[#allocation83_spill]] %s7961_s5  ;;  %s7851_s10 = smov 9  }
   0x8   :  { %9744 = sst [smem:[#allocation84_spill]] %s7966_s9  ;;  %s7852_s15 = smov 10  }
   0x9   :  { %9745 = sst [smem:[#allocation85_spill]] %s7971_s13  ;;  %s7853_s20 = smov 11  }
   0xa   :  { %9746 = sst [smem:[#allocation86_spill]] %s7976_s17  ;;  %s7855_s1 = smov 13  }
   0xb   :  { %9747 = sst [smem:[#allocation87_spill]] %s7981_s21  ;;  %s7856_s7 = smov 14  }
   0xc   :  { %s7991_s29 = sld [smem:[%s9649_s0 + %s7848_s26]]   ;;  %s7854_s26 = smov 12  }
   0xd   :  { %s7996_s3 = sld [smem:[%s9649_s0 + %s7849_s30]]   ;;  %s7858_s22 = smov 16  }
   0xe   :  { %s8001_s8 = sld [smem:[%s9649_s0 + %s7850_s4]]   ;;  %s7859_s28 = smov 17  }
   0xf   :  { %s8006_s14 = sld [smem:[%s9649_s0 + %s7851_s10]]  }
  0x10   :  { %s8011_s19 = sld [smem:[%s9649_s0 + %s7852_s15]]   ;;  %s7857_s15 = smov 15  }
  0x11   :  { %s8016_s24 = sld [smem:[%s9649_s0 + %s7853_s20]]  }
  0x12   :  { %9748 = sst [smem:[#allocation88_spill]] %s7991_s29 }
  0x13   :  { %9749 = sst [smem:[#allocation89_spill]] %s7996_s3 }
  0x14   :  { %9750 = sst [smem:[#allocation90_spill]] %s8001_s8 }
  0x15   :  { %9751 = sst [smem:[#allocation91_spill]] %s8006_s14 }
  0x16   :  { %9752 = sst [smem:[#allocation92_spill]] %s8011_s19 }
  0x17   :  { %9753 = sst [smem:[#allocation93_spill]] %s8016_s24 }
  0x18   :  { %s8021_s30 = sld [smem:[%s9649_s0 + %s7854_s26]]  }
  0x19   :  { %s8026_s6 = sld [smem:[%s9649_s0 + %s7855_s1]]  }
  0x1a   :  { %s8031_s12 = sld [smem:[%s9649_s0 + %s7856_s7]]   ;;  %s7860_s7 = smov 18  }
  0x1b   :  { %s8036_s20 = sld [smem:[%s9649_s0 + %s7857_s15]]   ;;  %s7861_s15 = smov 19  }
  0x1c   :  { %s8041_s27 = sld [smem:[%s9649_s0 + %s7858_s22]]   ;;  %s7862_s22 = smov 20  }
  0x1d   :  { %s8046_s4 = sld [smem:[%s9649_s0 + %s7859_s28]]   ;;  %s7863_s28 = smov 21  }
  0x1e   :  { %9754 = sst [smem:[#allocation94_spill]] %s8021_s30 }
  0x1f   :  { %9755 = sst [smem:[#allocation95_spill]] %s8026_s6 }
  0x20   :  { %9756 = sst [smem:[#allocation96_spill]] %s8031_s12 }
  0x21   :  { %9757 = sst [smem:[#allocation97_spill]] %s8036_s20 }
  0x22   :  { %s8051_s17 = sld [smem:[%s9649_s0 + %s7860_s7]]   ;;  %s7864_s7 = smov 22  }
  0x23   :  { %9758 = sst [smem:[#allocation98_spill]] %s8046_s4 }
  0x24   :  { %s8056_s21 = sld [smem:[%s9649_s0 + %s7861_s15]]   ;;  %s7865_s15 = smov 23  }
  0x25   :  { %s8061_s24 = sld [smem:[%s9649_s0 + %s7862_s22]]   ;;  %s7866_s22 = smov 24  }
  0x26   :  { %s8066_s29 = sld [smem:[%s9649_s0 + %s7863_s28]]   ;;  %s7867_s28 = smov 25  }
  0x28   :  { %9759 = sst [smem:[#allocation99_spill]] %s8051_s17 }
  0x29   :  { %s8071_s17 = sld [smem:[%s9649_s0 + %s7864_s7]]   ;;  %s7868_s7 = smov 26  }
  0x2a   :  { %9760 = sst [smem:[#allocation100_spill]] %s8056_s21 }
  0x2b   :  { %9761 = sst [smem:[#allocation101_spill]] %s8061_s24 }
  0x2c   :  { %9762 = sst [smem:[#allocation102_spill]] %s8066_s29 }
  0x2d   :  { %s8076_s21 = sld [smem:[%s9649_s0 + %s7865_s15]]   ;;  %s7869_s15 = smov 27  }
  0x2e   :  { %s8081_s24 = sld [smem:[%s9649_s0 + %s7866_s22]]   ;;  %s7870_s22 = smov 28  }
  0x2f   :  { %s8086_s29 = sld [smem:[%s9649_s0 + %s7867_s28]]   ;;  %s7871_s28 = smov 29  }
  0x30   :  { %s8091_s6 = sld [smem:[%s9649_s0 + %s7868_s7]]   ;;  %s7872_s7 = smov 30  }
  0x31   :  { %s8096_s30 = sld [smem:[%s9649_s0 + %s7869_s15]]   ;;  %s7873_s15 = smov 31  }
  0x32   :  { %s8101_s19 = sld [smem:[%s9649_s0 + %s7870_s22]]   ;;  %s7874_s22 = smov 32  }
  0x33   :  { %9763 = sst [smem:[#allocation103_spill]] %s8076_s21 }
  0x34   :  { %s8106_s5 = sld [smem:[%s9649_s0 + %s7871_s28]]   ;;  %s7875_s28 = smov 33  }
  0x35   :  { %9764 = sst [smem:[#allocation104_spill]] %s8086_s29 }
  0x36   :  { %9765 = sst [smem:[#allocation105_spill]] %s8091_s6 }
  0x37   :  { %9766 = sst [smem:[#allocation106_spill]] %s8096_s30 }
  0x38   :  { %9767 = sst [smem:[#allocation107_spill]] %s8101_s19 }
  0x39   :  { %s8111_s29 = sld [smem:[%s9649_s0 + %s7872_s7]]   ;;  %s7876_s7 = smov 34  }
  0x3a   :  { %9768 = sst [smem:[#allocation108_spill]] %s8106_s5 }
  0x3b   :  { %s8116_s30 = sld [smem:[%s9649_s0 + %s7873_s15]]   ;;  %s7877_s15 = smov 35  }
  0x3c   :  { %s8121_s19 = sld [smem:[%s9649_s0 + %s7874_s22]]   ;;  %s7878_s22 = smov 36  }
  0x3d   :  { %s8126_s21 = sld [smem:[%s9649_s0 + %s7875_s28]]   ;;  %s7879_s28 = smov 37  }
  0x3e   :  { %s8136_s4 = sld [smem:[%s9649_s0 + %s7877_s15]]   ;;  %s7881_s15 = smov 39  }
  0x3f   :  { %9769 = sst [smem:[#allocation109_spill]] %s8111_s29 }
  0x40   :  { %s8131_s29 = sld [smem:[%s9649_s0 + %s7876_s7]]   ;;  %s7880_s7 = smov 38  }
  0x41   :  { %s8146_s20 = sld [smem:[%s9649_s0 + %s7879_s28]]   ;;  %s7883_s28 = smov 41  }
  0x42   :  { %9770 = sst [smem:[#allocation110_spill]] %s8121_s19 }
  0x43   :  { %s8141_s19 = sld [smem:[%s9649_s0 + %s7878_s22]]   ;;  %s7882_s22 = smov 40  }
  0x44   :  { %9772 = sst [smem:[#allocation112_spill]] %s8136_s4 }
  0x45   :  { %s8156_s4 = sld [smem:[%s9649_s0 + %s7881_s15]]   ;;  %s7885_s15 = smov 43  }
  0x46   :  { %9771 = sst [smem:[#allocation111_spill]] %s8131_s29 }
  0x47   :  { %9773 = sst [smem:[#allocation113_spill]] %s8146_s20 }
  0x48   :  { %s8151_s29 = sld [smem:[%s9649_s0 + %s7880_s7]]   ;;  %s7884_s7 = smov 42  }
  0x49   :  { %s8161_s14 = sld [smem:[%s9649_s0 + %s7882_s22]]   ;;  %s7886_s22 = smov 44  }
  0x4a   :  { %s8166_s20 = sld [smem:[%s9649_s0 + %s7883_s28]]   ;;  %s7887_s28 = smov 45  }
  0x4b   :  { %9774 = sst [smem:[#allocation114_spill]] %s8156_s4 }
  0x4c   :  { %s8171_s3 = sld [smem:[%s9649_s0 + %s7884_s7]]   ;;  %s7888_s7 = smov 46  }
  0x4d   :  { %s8176_s4 = sld [smem:[%s9649_s0 + %s7885_s15]]   ;;  %s7889_s15 = smov 47  }
  0x4f   :  { %9775 = sst [smem:[#allocation115_spill]] %s8161_s14 }
  0x50   :  { %9776 = sst [smem:[#allocation116_spill]] %s8166_s20 }
  0x51   :  { %s8181_s14 = sld [smem:[%s9649_s0 + %s7886_s22]]   ;;  %s7890_s22 = smov 49  }
  0x52   :  { %9777 = sst [smem:[#allocation117_spill]] %s8171_s3 }
  0x53   :  { %9778 = sst [smem:[#allocation118_spill]] %s8176_s4 }
  0x54   :  { %s8186_s20 = sld [smem:[%s9649_s0 + %s7887_s28]]   ;;  %s7891_s28 = smov 50  }
  0x55   :  { %s8191_s3 = sld [smem:[%s9649_s0 + %s7888_s7]]   ;;  %s7892_s7 = smov 51  }
  0x56   :  { %s8196_s4 = sld [smem:[%s9649_s0 + %s7889_s15]]   ;;  %s7893_s15 = smov 52  }
  0x57   :  { %9779 = sst [smem:[#allocation119_spill]] %s8181_s14 }
  0x58   :  { %s8201_s14 = sld [smem:[%s9649_s0 + %s7890_s22]]   ;;  %s7894_s22 = smov 53  }
  0x59   :  { %s8206_s13 = sld [smem:[%s9649_s0 + %s7891_s28]]   ;;  %s7895_s28 = smov 54  }
  0x5b   :  { %9780 = sst [smem:[#allocation120_spill]] %s8191_s3 }
  0x5c   :  { %9781 = sst [smem:[#allocation121_spill]] %s8196_s4 }
  0x5d   :  { %s8211_s3 = sld [smem:[%s9649_s0 + %s7892_s7]]   ;;  %s7896_s7 = smov 55  }
  0x5e   :  { %9782 = sst [smem:[#allocation122_spill]] %s8201_s14 }
  0x5f   :  { %9783 = sst [smem:[#allocation123_spill]] %s8206_s13 }
  0x60   :  { %s8216_s4 = sld [smem:[%s9649_s0 + %s7893_s15]]   ;;  %s7897_s15 = smov 57  }
  0x61   :  { %s8221_s14 = sld [smem:[%s9649_s0 + %s7894_s22]]   ;;  %s7898_s22 = smov 58  }
  0x62   :  { %s8226_s13 = sld [smem:[%s9649_s0 + %s7895_s28]]   ;;  %s7899_s28 = smov 59  }
  0x63   :  { %9784 = sst [smem:[#allocation124_spill]] %s8211_s3 }
  0x64   :  { %s8231_s3 = sld [smem:[%s9649_s0 + %s7896_s7]]   ;;  %s7900_s7 = smov 60  }
  0x66   :  { %9785 = sst [smem:[#allocation125_spill]] %s8216_s4 }
  0x67   :  { %9786 = sst [smem:[#allocation126_spill]] %s8221_s14 }
  0x68   :  { %9787 = sst [smem:[#allocation127_spill]] %s8226_s13 }
  0x69   :  { %s8236_s4 = sld [smem:[%s9649_s0 + %s7897_s15]]   ;;  %s7901_s15 = smov 61  }
  0x6a   :  { %9788 = sst [smem:[#allocation128_spill]] %s8231_s3 }
  0x6b   :  { %s8241_s14 = sld [smem:[%s9649_s0 + %s7898_s22]]   ;;  %s7902_s22 = smov 62  }
  0x6c   :  { %s8246_s13 = sld [smem:[%s9649_s0 + %s7899_s28]]   ;;  %s7903_s28 = smov 63  }
  0x6d   :  { %s8251_s3 = sld [smem:[%s9649_s0 + %s7900_s7]]   ;;  %s7904_s7 = smov 64  }
  0x6f   :  { %9789 = sst [smem:[#allocation129_spill]] %s8236_s4 }
  0x70   :  { %s8256_s4 = sld [smem:[%s9649_s0 + %s7901_s15]]  }
  0x71   :  { %9790 = sst [smem:[#allocation130_spill]] %s8241_s14 }
  0x72   :  { %9791 = sst [smem:[#allocation131_spill]] %s8246_s13 }
  0x73   :  { %9792 = sst [smem:[#allocation132_spill]] %s8251_s3 }
  0x74   :  { %s8261_s14 = sld [smem:[%s9649_s0 + %s7902_s22]]  }
  0x75   :  { %s8266_s13 = sld [smem:[%s9649_s0 + %s7903_s28]]  }
  0x76   :  { %9793 = sst [smem:[#allocation133_spill]] %s8256_s4 }
  0x77   :  { %s8271_s3 = sld [smem:[%s9649_s0 + %s7904_s7]]  }
  0x7d   :  { %9794 = sst [smem:[#allocation134_spill]] %s8271_s3 }
  0x7e   :  { %134 = vsyncpa [#allocation3], 0 }
  0x7f   :  { %136 = vsyncpa [#allocation3 + $0x1], 0 }
  0x80   :  { %137 = vsyncpa [#allocation6], 0 }
  0x81   :  { %138 = vsyncpa [#allocation9], 0 }
  0x82   :  { %139 = vsyncpa [#allocation12], 0 }
  0x83   :  { %140 = vsyncpa [#allocation15], 0 }
  0x84   :  { %141 = vsyncpa [#allocation18], 0 }
  0x85   :  { %142 = vsyncpa [#allocation21], 0 }
  0x86   :  { %143 = vsyncpa [#allocation24], 0 }
  0x87   :  { %144 = vsyncpa [#allocation27], 0 }
  0x88   :  { %145 = vsyncpa [#allocation30], 0 }
  0x89   :  { %146 = vsyncpa [#allocation33], 0 }
  0x8a   :  { %147 = vsyncpa [#allocation36], 0 }
  0x8b   :  { %148 = vsyncpa [#allocation39], 0 }
  0x8c   :  { %149 = vsyncpa [#allocation42], 0 }
  0x8d   :  { %150 = vsyncpa [#allocation45], 0 }
  0x8e   :  { %151 = vsyncpa [#allocation48], 0 }
  0x8f   :  { %152 = vsyncpa [#allocation51], 0 }
  0x90   :  { %153 = vsyncpa [#allocation54], 0 }
  0x91   :  { %154 = vsyncpa [#allocation57], 0 }
  0x92   :  { %155 = vsyncpa [#allocation60], 0 }
  0x93   :  { %156 = vsyncpa [#allocation4], 0 }
  0x94   :  { %158 = vsyncpa [#allocation4 + $0x1], 0  ;;  %s8273_s0 = smov 0   ;;  %s8275_s15 = smov 0  }
  0x95   :  { %s8277_s16 = smov 0   ;;  %s8279_s18 = smov 0  }
  0x96 LB: > { %s9795_s12 = sld [smem:[#allocation96_spill]]  ;;  %s8294_s22 = sadd.s32 4294967295, %s7841_s18   ;;  %s7833_s15 = sphi %s8275_s15, %s9922_s15   ;;  %s7829_s0 = sphi %s8273_s0, %s9920_s0   ;;  %s7841_s18 = sphi %s8279_s18, %s9919_s18   ;;  %s7837_s16 = sphi %s8277_s16, %s9923_s16  }
  0x97   : > { %s9796_s4 = sld [smem:[#allocation133_spill]]  ;;  %s5912_s23 = sadd.s32 4294967294, %s7841_s18  }
  0x98   : > { %s9797_s9 = sld [smem:[#allocation84_spill]]  ;;  %s8298_s26 = sadd.s32 1, %s7841_s18  }
  0x99   : > { %s9798_s8 = sld [smem:[#allocation90_spill]]  ;;  %s171_s28 = sadd.s32 1, %s7837_s16 }
  0x9a   : > { %s9799_s6 = sld [smem:[#allocation105_spill]]  ;;  %s168_s1 = ssub.s32 %s7841_s18, %s8298_s26 }
  0x9b   : > { %s9800_s5 = sld [smem:[#allocation108_spill]]  ;;  %p178_p0 = scmp.ne.s32.totalorder %s7837_s16, %s7833_s15 }
  0x9c   : > { %9801 = sst [smem:[#allocation135_spill]] %s7829_s0  ;;  %p169_p1 = scmp.eq.s32.totalorder %s168_s1, 0 }
  0x9d   : > { %9802 = sst [smem:[#allocation136_spill]] %s7833_s15  ;;  %p179_p2 = scmp.eq.s32.totalorder %s7841_s18, 0 }
  0x9e   : > { %9803 = sst [smem:[#allocation137_spill]] %s8298_s26  ;;  %p184_p3 = scmp.ne.s32.totalorder %s7833_s15, %s7829_s0 }
  0x9f   : > { %p9719_p4 = scmp.eq.s32.totalorder %s8294_s22, 0  ;;  %p8312_p5 = por %p179_p2, %p178_p0 }
  0xa0   : > { %s8310_s2 = scalar_select %p169_p1, %s7837_s16, %s171_s28  }
  0xa1   : > { %p8318_p6 = por %p9719_p4, %p184_p3  ;;  %p1531_p7 = scmp.eq.s32.totalorder %s8294_s22, 1 }
  0xa2   : > { %9804 = sst [smem:[#allocation138_spill]] %s8310_s2  ;;  %p1537_p8 = scmp.eq.s32.totalorder %s5912_s23, 1 }
  0xa3   : > { %s9806_s10 = scalar_select %p8318_p6, 1, 0 }
  0xa4   : > { %p5913_p9 = scmp.ge.s32.totalorder %s7841_s18, 1  ;;  %p1544_p10 = scmp.lt.s32.totalorder %s7841_s18, 3 }
  0xa5   : > { %9807 = sst [smem:[#allocation139_spill]] %s9806_s10  ;;  %p8325_p11 = por %p1531_p7, %p178_p0 }
  0xa6   : > { %p8329_p12 = por %p1537_p8, %p184_p3  ;;  %p8333_p13 = pnand %p5913_p9, %p1544_p10 }
  0xa7   : > { %s9808_s11 = scalar_select %p8325_p11, 1, 0 }
  0xa8   : > { %s9810_s28 = scalar_select %p8329_p12, 1, 0 }
  0xa9   : > { %9809 = sst [smem:[#allocation140_spill]] %s9808_s11  ;;  %1548 = sbr.rel (%p8333_p13) target bundleno = 657 (0x291), region = 12 }
  0xaa   : > { %9811 = sst [smem:[#allocation141_spill]] %s9810_s28  ;;  %s1556_s23 = sshll.u32 (!%p8333_p13), %s9797_s9, 4  ;;  %s1557_s23 = int_to_ptr.hbm [resolvable:$true] %s1556_s23 }
  0xab   : > { %s9812_s1 = scalar_select %p8333_p13, 1, 0 }
  0xac   : > { %s7905_s2 = smov (!%p8333_p13), [#allocation5]   ;;  %s1588_s0 = sshll.u32 (!%p8333_p13), %s7986_s25, 4  ;;  %s8341_s0 = int_to_ptr.hbm [resolvable:$true] %s1588_s0 }
  0xad   : > { %9813 = sst [smem:[#allocation142_spill]] %s9812_s1  ;;  %s1558_s26 = sshll.u32 (!%p8333_p13), %s7905_s2, 4  ;;  %s1559_s26 = int_to_ptr.vmem [resolvable:$true] %s1558_s26 }
  0xae   : > { %s6633_s28 = sshra.s32 %s1557_s23, 4  ;;  %s6639_s3 = scalar_lea.hbm %s9797_s9, 1  ;;  %s6634_s28 = int_to_ptr.hbm [resolvable:$true] %s6633_s28 }
  0xaf   : > { %s6635_s11 = scalar_lea.hbm %s6634_s28, 1  ;;  %p6640_p3 = scmp.lt.s32.totalorder %s6634_s28, %s9797_s9 }
  0xb0   : > { %p6636_p0 = scmp.ne.s32.totalorder %s6634_s28, %s6635_s11  ;;  %p6641_p7 = scmp.lt.s32.totalorder %s6639_s3, %s6635_s11 }
  0xb2   : > { %p6637_p1 = pnand %p6636_p0, %p9719_p4  ;;  %p6642_p8 = por %p6641_p7, %p6640_p3 }
  0xb4   : > { %p6638_p2 = pneg %p6637_p1 }
  0xb6   : > { %p6643_p9 = pnand %p6642_p8, %p6638_p2 }
  0xb8   : > { %6646 = shalt.err (!%p6643_p9)
}
  0xb9   : > { %6155 = dma.hbm_to_vmem [thread:$0]  (%p9719_p4), %s1557_s23, 16, %s1559_s26, [#allocation6]  }
  0xba   : > { %s1615_s2 = sshll.u32 %s9798_s8, 4  ;;  %s7906_s10 = smov [#allocation8]   ;;  %s8350_s2 = int_to_ptr.hbm [resolvable:$true] %s1615_s2 }
  0xbb   : > { %s1590_s15 = sshll.u32 %s7906_s10, 4  ;;  %s6661_s1 = sshra.s32 %s8341_s0, 4  ;;  %s1591_s15 = int_to_ptr.vmem [resolvable:$true] %s1590_s15  ;;  %s6662_s1 = int_to_ptr.hbm [resolvable:$true] %s6661_s1 }
  0xbc   : > { %s6663_s3 = scalar_lea.hbm %s6662_s1, 8  ;;  %s6667_s11 = scalar_lea.hbm %s7986_s25, 8 }
  0xbd   : > { %p6664_p10 = scmp.ne.s32.totalorder %s6662_s1, %s6663_s3  ;;  %p6668_p2 = scmp.lt.s32.totalorder %s6662_s1, %s7986_s25 }
  0xbe   : > { %p6669_p3 = scmp.lt.s32.totalorder %s6667_s11, %s6663_s3 }
  0xbf   : > { %p6665_p0 = pnand %p6664_p10, %p9719_p4 }
  0xc0   : > { %p6670_p7 = por %p6669_p3, %p6668_p2 }
  0xc1   : > { %p6666_p1 = pneg %p6665_p0 }
  0xc3   : > { %p6671_p8 = pnand %p6670_p7, %p6666_p1 }
  0xc5   : > { %6674 = shalt.err (!%p6671_p8)
}
  0xc6   : > { %6159 = dma.hbm_to_vmem [thread:$0]  (%p9719_p4), %s8341_s0, 128, %s1591_s15, [#allocation9]  }
  0xc7   : > { %s7907_s26 = smov [#allocation11]   ;;  %s1651_s28 = sshll.u32 %s9795_s12, 4  ;;  %s8361_s28 = int_to_ptr.hbm [resolvable:$true] %s1651_s28 }
  0xc8   : > { %s1617_s10 = sshll.u32 %s7907_s26, 4  ;;  %s6689_s1 = sshra.s32 %s8350_s2, 4  ;;  %s1618_s10 = int_to_ptr.vmem [resolvable:$true] %s1617_s10  ;;  %s6690_s1 = int_to_ptr.hbm [resolvable:$true] %s6689_s1 }
  0xc9   : > { %s6691_s23 = scalar_lea.hbm %s6690_s1, 1  ;;  %s6695_s3 = scalar_lea.hbm %s9798_s8, 1 }
  0xca   : > { %p6692_p9 = scmp.ne.s32.totalorder %s6690_s1, %s6691_s23  ;;  %p6696_p1 = scmp.lt.s32.totalorder %s6690_s1, %s9798_s8 }
  0xcb   : > { %p6697_p2 = scmp.lt.s32.totalorder %s6695_s3, %s6691_s23 }
  0xcc   : > { %p6693_p10 = pnand %p6692_p9, %p9719_p4 }
  0xcd   : > { %p6698_p3 = por %p6697_p2, %p6696_p1 }
  0xce   : > { %p6694_p0 = pneg %p6693_p10 }
  0xd0   : > { %p6699_p7 = pnand %p6698_p3, %p6694_p0 }
  0xd2   : > { %6702 = shalt.err (!%p6699_p7)
}
  0xd3   : > { %6163 = dma.hbm_to_vmem [thread:$0]  (%p9719_p4), %s8350_s2, 16, %s1618_s10, [#allocation12]  }
  0xd4   : > { %s1675_s0 = sshll.u32 %s8041_s27, 4  ;;  %s7908_s15 = smov [#allocation14]   ;;  %s8372_s0 = int_to_ptr.hbm [resolvable:$true] %s1675_s0 }
  0xd5   : > { %s1653_s11 = sshll.u32 %s7908_s15, 4  ;;  %s6717_s26 = sshra.s32 %s8361_s28, 4  ;;  %s1654_s11 = int_to_ptr.vmem [resolvable:$true] %s1653_s11  ;;  %s6718_s26 = int_to_ptr.hbm [resolvable:$true] %s6717_s26 }
  0xd6   : > { %s6719_s1 = scalar_lea.hbm %s6718_s26, 1  ;;  %s6723_s23 = scalar_lea.hbm %s9795_s12, 1 }
  0xd7   : > { %p6720_p8 = scmp.ne.s32.totalorder %s6718_s26, %s6719_s1  ;;  %p6724_p0 = scmp.lt.s32.totalorder %s6718_s26, %s9795_s12 }
  0xd8   : > { %p6725_p1 = scmp.lt.s32.totalorder %s6723_s23, %s6719_s1 }
  0xd9   : > { %p6721_p9 = pnand %p6720_p8, %p9719_p4 }
  0xda   : > { %p6726_p2 = por %p6725_p1, %p6724_p0 }
  0xdb   : > { %p6722_p10 = pneg %p6721_p9 }
  0xdd   : > { %p6727_p3 = pnand %p6726_p2, %p6722_p10 }
  0xdf   : > { %6730 = shalt.err (!%p6727_p3)
}
  0xe0   : > { %6167 = dma.hbm_to_vmem [thread:$0]  (%p9719_p4), %s8361_s28, 16, %s1654_s11, [#allocation15]  }
  0xe1   : > { %s7909_s2 = smov [#allocation17]   ;;  %s1711_s3 = sshll.u32 %s8071_s17, 4  ;;  %s8383_s3 = int_to_ptr.hbm [resolvable:$true] %s1711_s3 }
  0xe2   : > { %s1677_s10 = sshll.u32 %s7909_s2, 4  ;;  %s6745_s15 = sshra.s32 %s8372_s0, 4  ;;  %s1678_s10 = int_to_ptr.vmem [resolvable:$true] %s1677_s10  ;;  %s6746_s15 = int_to_ptr.hbm [resolvable:$true] %s6745_s15 }
  0xe3   : > { %s6747_s26 = scalar_lea.hbm %s6746_s15, 1  ;;  %s6751_s1 = scalar_lea.hbm %s8041_s27, 1 }
  0xe4   : > { %p6748_p7 = scmp.ne.s32.totalorder %s6746_s15, %s6747_s26  ;;  %p6752_p10 = scmp.lt.s32.totalorder %s6746_s15, %s8041_s27 }
  0xe5   : > { %p6753_p0 = scmp.lt.s32.totalorder %s6751_s1, %s6747_s26 }
  0xe6   : > { %p6749_p8 = pnand %p6748_p7, %p9719_p4 }
  0xe7   : > { %p6754_p1 = por %p6753_p0, %p6752_p10 }
  0xe8   : > { %p6750_p9 = pneg %p6749_p8 }
  0xea   : > { %p6755_p2 = pnand %p6754_p1, %p6750_p9 }
  0xec   : > { %6758 = shalt.err (!%p6755_p2)
}
  0xed   : > { %6171 = dma.hbm_to_vmem [thread:$0]  (%p9719_p4), %s8372_s0, 16, %s1678_s10, [#allocation18]  }
  0xee   : > { %s1735_s28 = sshll.u32 %s8081_s24, 4  ;;  %s7910_s11 = smov [#allocation20]   ;;  %s8394_s28 = int_to_ptr.hbm [resolvable:$true] %s1735_s28 }
  0xef   : > { %s1713_s23 = sshll.u32 %s7910_s11, 4  ;;  %s6773_s2 = sshra.s32 %s8383_s3, 4  ;;  %s1714_s23 = int_to_ptr.vmem [resolvable:$true] %s1713_s23  ;;  %s6774_s2 = int_to_ptr.hbm [resolvable:$true] %s6773_s2 }
  0xf0   : > { %s6775_s15 = scalar_lea.hbm %s6774_s2, 8  ;;  %s6779_s26 = scalar_lea.hbm %s8071_s17, 8 }
  0xf1   : > { %p6776_p3 = scmp.ne.s32.totalorder %s6774_s2, %s6775_s15  ;;  %p6780_p9 = scmp.lt.s32.totalorder %s6774_s2, %s8071_s17 }
  0xf2   : > { %p6781_p10 = scmp.lt.s32.totalorder %s6779_s26, %s6775_s15 }
  0xf3   : > { %p6777_p7 = pnand %p6776_p3, %p9719_p4 }
  0xf4   : > { %p6782_p0 = por %p6781_p10, %p6780_p9 }
  0xf5   : > { %p6778_p8 = pneg %p6777_p7 }
  0xf7   : > { %p6783_p1 = pnand %p6782_p0, %p6778_p8 }
  0xf9   : > { %6786 = shalt.err (!%p6783_p1)
}
  0xfa   : > { %6175 = dma.hbm_to_vmem [thread:$0]  (%p9719_p4), %s8383_s3, 128, %s1714_s23, [#allocation21]  }
  0xfb   : > { %s7911_s0 = smov [#allocation23]   ;;  %s1759_s1 = sshll.u32 %s9799_s6, 4  ;;  %s8405_s1 = int_to_ptr.hbm [resolvable:$true] %s1759_s1 }
  0xfc   : > { %s1737_s10 = sshll.u32 %s7911_s0, 4  ;;  %s6801_s11 = sshra.s32 %s8394_s28, 4  ;;  %s1738_s10 = int_to_ptr.vmem [resolvable:$true] %s1737_s10  ;;  %s6802_s11 = int_to_ptr.hbm [resolvable:$true] %s6801_s11 }
  0xfd   : > { %s6803_s2 = scalar_lea.hbm %s6802_s11, 1  ;;  %s6807_s15 = scalar_lea.hbm %s8081_s24, 1 }
  0xfe   : > { %p6804_p2 = scmp.ne.s32.totalorder %s6802_s11, %s6803_s2  ;;  %p6808_p8 = scmp.lt.s32.totalorder %s6802_s11, %s8081_s24 }
  0xff   : > { %p6809_p9 = scmp.lt.s32.totalorder %s6807_s15, %s6803_s2 }
 0x100   : > { %p6805_p3 = pnand %p6804_p2, %p9719_p4 }
 0x101   : > { %p6810_p10 = por %p6809_p9, %p6808_p8 }
 0x102   : > { %p6806_p7 = pneg %p6805_p3 }
 0x104   : > { %p6811_p0 = pnand %p6810_p10, %p6806_p7 }
 0x106   : > { %6814 = shalt.err (!%p6811_p0)
}
 0x107   : > { %6179 = dma.hbm_to_vmem [thread:$0]  (%p9719_p4), %s8394_s28, 16, %s1738_s10, [#allocation24]  }
 0x108   : > { %s7912_s3 = smov [#allocation26]   ;;  %s1787_s26 = sshll.u32 %s9800_s5, 4  ;;  %s1788_s26 = int_to_ptr.hbm [resolvable:$true] %s1787_s26 }
 0x109   : > { %s1761_s23 = sshll.u32 %s7912_s3, 4  ;;  %s6829_s0 = sshra.s32 %s8405_s1, 4  ;;  %s1762_s23 = int_to_ptr.vmem [resolvable:$true] %s1761_s23  ;;  %s6830_s0 = int_to_ptr.hbm [resolvable:$true] %s6829_s0 }
 0x10a   : > { %s6831_s11 = scalar_lea.hbm %s6830_s0, 1  ;;  %s6835_s2 = scalar_lea.hbm %s9799_s6, 1 }
 0x10b   : > { %p6832_p1 = scmp.ne.s32.totalorder %s6830_s0, %s6831_s11  ;;  %p6836_p7 = scmp.lt.s32.totalorder %s6830_s0, %s9799_s6 }
 0x10c   : > { %p6837_p8 = scmp.lt.s32.totalorder %s6835_s2, %s6831_s11 }
 0x10d   : > { %p6833_p2 = pnand %p6832_p1, %p9719_p4 }
 0x10e   : > { %p6838_p9 = por %p6837_p8, %p6836_p7 }
 0x10f   : > { %p6834_p3 = pneg %p6833_p2 }
 0x111   : > { %p6839_p10 = pnand %p6838_p9, %p6834_p3 }
 0x113   : > { %6842 = shalt.err (!%p6839_p10)
}
 0x114   : > { %6183 = dma.hbm_to_vmem [thread:$0]  (%p9719_p4), %s8405_s1, 16, %s1762_s23, [#allocation27]  }
 0x115   : > { %s7913_s28 = smov [#allocation29]   ;;  %s1816_s15 = sshll.u32 %s8116_s30, 4  ;;  %s8425_s15 = int_to_ptr.hbm [resolvable:$true] %s1816_s15 }
 0x116   : > { %s1789_s10 = sshll.u32 %s7913_s28, 4  ;;  %s6857_s3 = sshra.s32 %s1788_s26, 4  ;;  %s1790_s10 = int_to_ptr.vmem [resolvable:$true] %s1789_s10  ;;  %s6858_s3 = int_to_ptr.hbm [resolvable:$true] %s6857_s3 }
 0x117   : > { %s6859_s0 = scalar_lea.hbm %s6858_s3, 32  ;;  %s6863_s11 = scalar_lea.hbm %s9800_s5, 32 }
 0x118   : > { %p6860_p0 = scmp.ne.s32.totalorder %s6858_s3, %s6859_s0  ;;  %p6864_p3 = scmp.lt.s32.totalorder %s6858_s3, %s9800_s5 }
 0x119   : > { %p6865_p7 = scmp.lt.s32.totalorder %s6863_s11, %s6859_s0 }
 0x11a   : > { %p6861_p1 = pnand %p6860_p0, %p9719_p4 }
 0x11b   : > { %p6866_p8 = por %p6865_p7, %p6864_p3 }
 0x11c   : > { %p6862_p2 = pneg %p6861_p1 }
 0x11e   : > { %p6867_p9 = pnand %p6866_p8, %p6862_p2 }
 0x120   : > { %6870 = shalt.err (!%p6867_p9)
}
 0x121   : > { %s9700_s1 = smov 128   ;;  %s9702_s23 = smov 8  }
 0x122   : > { %6187 = dma.hbm_to_vmem [thread:$0]  (%p9719_p4), %s1788_s26, 512, %s1790_s10, [#allocation30], %s9700_s1, %s9700_s1, %s9702_s23  }
 0x123   : > { %s1840_s2 = sshll.u32 %s8126_s21, 4  ;;  %s7916_s28 = smov [#allocation32]   ;;  %s8437_s2 = int_to_ptr.hbm [resolvable:$true] %s1840_s2 }
 0x124   : > { %s1818_s3 = sshll.u32 %s7916_s28, 4  ;;  %s6885_s0 = sshra.s32 %s8425_s15, 4  ;;  %s1819_s3 = int_to_ptr.vmem [resolvable:$true] %s1818_s3  ;;  %s6886_s0 = int_to_ptr.hbm [resolvable:$true] %s6885_s0 }
 0x125   : > { %s6887_s11 = scalar_lea.hbm %s6886_s0, 1  ;;  %s6891_s5 = scalar_lea.hbm %s8116_s30, 1 }
 0x126   : > { %p6888_p10 = scmp.ne.s32.totalorder %s6886_s0, %s6887_s11  ;;  %p6892_p2 = scmp.lt.s32.totalorder %s6886_s0, %s8116_s30 }
 0x127   : > { %p6893_p3 = scmp.lt.s32.totalorder %s6891_s5, %s6887_s11 }
 0x128   : > { %p6889_p0 = pnand %p6888_p10, %p9719_p4 }
 0x129   : > { %p6894_p7 = por %p6893_p3, %p6892_p2 }
 0x12a   : > { %p6890_p1 = pneg %p6889_p0 }
 0x12c   : > { %p6895_p8 = pnand %p6894_p7, %p6890_p1 }
 0x12e   : > { %6898 = shalt.err (!%p6895_p8)
}
 0x12f   : > { %6191 = dma.hbm_to_vmem [thread:$0]  (%p9719_p4), %s8425_s15, 16, %s1819_s3, [#allocation33]  }
 0x130   : > { %s7917_s26 = smov [#allocation35]   ;;  %s1866_s28 = sshll.u32 %s8141_s19, 4  ;;  %s8448_s28 = int_to_ptr.hbm [resolvable:$true] %s1866_s28 }
 0x131   : > { %s1842_s10 = sshll.u32 %s7917_s26, 4  ;;  %s6913_s0 = sshra.s32 %s8437_s2, 4  ;;  %s1843_s10 = int_to_ptr.vmem [resolvable:$true] %s1842_s10  ;;  %s6914_s0 = int_to_ptr.hbm [resolvable:$true] %s6913_s0 }
 0x132   : > { %s6915_s5 = scalar_lea.hbm %s6914_s0, 1  ;;  %s6919_s11 = scalar_lea.hbm %s8126_s21, 1 }
 0x133   : > { %p6916_p9 = scmp.ne.s32.totalorder %s6914_s0, %s6915_s5  ;;  %p6920_p1 = scmp.lt.s32.totalorder %s6914_s0, %s8126_s21 }
 0x134   : > { %p6921_p2 = scmp.lt.s32.totalorder %s6919_s11, %s6915_s5 }
 0x135   : > { %p6917_p10 = pnand %p6916_p9, %p9719_p4 }
 0x136   : > { %p6922_p3 = por %p6921_p2, %p6920_p1 }
 0x137   : > { %p6918_p0 = pneg %p6917_p10 }
 0x139   : > { %p6923_p7 = pnand %p6922_p3, %p6918_p0 }
 0x13b   : > { %6926 = shalt.err (!%p6923_p7)
}
 0x13c   : > { %6195 = dma.hbm_to_vmem [thread:$0]  (%p9719_p4), %s8437_s2, 16, %s1843_s10, [#allocation36]  }
 0x13d   : > { %s1894_s15 = sshll.u32 %s8151_s29, 4  ;;  %s7918_s3 = smov [#allocation38]   ;;  %s8459_s15 = int_to_ptr.hbm [resolvable:$true] %s1894_s15 }
 0x13e   : > { %s1868_s26 = sshll.u32 %s7918_s3, 4  ;;  %s6941_s0 = sshra.s32 %s8448_s28, 4  ;;  %s1869_s26 = int_to_ptr.vmem [resolvable:$true] %s1868_s26  ;;  %s6942_s0 = int_to_ptr.hbm [resolvable:$true] %s6941_s0 }
 0x13f   : > { %s6943_s5 = scalar_lea.hbm %s6942_s0, 32  ;;  %s6947_s11 = scalar_lea.hbm %s8141_s19, 32 }
 0x140   : > { %p6944_p8 = scmp.ne.s32.totalorder %s6942_s0, %s6943_s5  ;;  %p6948_p0 = scmp.lt.s32.totalorder %s6942_s0, %s8141_s19 }
 0x141   : > { %p6949_p1 = scmp.lt.s32.totalorder %s6947_s11, %s6943_s5 }
 0x142   : > { %p6945_p9 = pnand %p6944_p8, %p9719_p4 }
 0x143   : > { %p6950_p2 = por %p6949_p1, %p6948_p0 }
 0x144   : > { %p6946_p10 = pneg %p6945_p9 }
 0x146   : > { %p6951_p3 = pnand %p6950_p2, %p6946_p10 }
 0x148   : > { %6954 = shalt.err (!%p6951_p3)
}
 0x149   : > { %6199 = dma.hbm_to_vmem [thread:$0]  (%p9719_p4), %s8448_s28, 512, %s1869_s26, [#allocation39], %s9700_s1, %s9700_s1, %s9702_s23  }
 0x14a   : > { %s7919_s2 = smov [#allocation41]   ;;  %s1937_s3 = sshll.u32 %s8186_s20, 4  ;;  %s8473_s3 = int_to_ptr.hbm [resolvable:$true] %s1937_s3 }
 0x14b   : > { %s1896_s10 = sshll.u32 %s7919_s2, 4  ;;  %s6969_s0 = sshra.s32 %s8459_s15, 4  ;;  %s1897_s10 = int_to_ptr.vmem [resolvable:$true] %s1896_s10  ;;  %s6970_s0 = int_to_ptr.hbm [resolvable:$true] %s6969_s0 }
 0x14c   : > { %s6971_s5 = scalar_lea.hbm %s6970_s0, 32  ;;  %s6975_s11 = scalar_lea.hbm %s8151_s29, 32 }
 0x14d   : > { %p6972_p7 = scmp.ne.s32.totalorder %s6970_s0, %s6971_s5  ;;  %p6976_p10 = scmp.lt.s32.totalorder %s6970_s0, %s8151_s29 }
 0x14e   : > { %p6977_p0 = scmp.lt.s32.totalorder %s6975_s11, %s6971_s5 }
 0x14f   : > { %p6973_p8 = pnand %p6972_p7, %p9719_p4 }
 0x150   : > { %p6978_p1 = por %p6977_p0, %p6976_p10 }
 0x151   : > { %p6974_p9 = pneg %p6973_p8 }
 0x153   : > { %p6979_p2 = pnand %p6978_p1, %p6974_p9 }
 0x155   : > { %6982 = shalt.err (!%p6979_p2)
}
 0x156   : > { %s9814_s28 = sld [smem:[#allocation121_spill]]  ;;  %s7920_s2 = smov [#allocation44]  }
 0x157   : > { %6203 = dma.hbm_to_vmem [thread:$0]  (%p9719_p4), %s8459_s15, 512, %s1897_s10, [#allocation42], %s9700_s1, %s9700_s1, %s9702_s23  }
 0x158   : > { %s1939_s6 = sshll.u32 %s7920_s2, 4  ;;  %s6997_s0 = sshra.s32 %s8473_s3, 4  ;;  %s1940_s6 = int_to_ptr.vmem [resolvable:$true] %s1939_s6  ;;  %s6998_s0 = int_to_ptr.hbm [resolvable:$true] %s6997_s0 }
 0x159   : > { %s6999_s5 = scalar_lea.hbm %s6998_s0, 32  ;;  %s7003_s11 = scalar_lea.hbm %s8186_s20, 32 }
 0x15a   : > { %p7000_p3 = scmp.ne.s32.totalorder %s6998_s0, %s6999_s5  ;;  %p7004_p9 = scmp.lt.s32.totalorder %s6998_s0, %s8186_s20 }
 0x15b   : > { %p7005_p10 = scmp.lt.s32.totalorder %s7003_s11, %s6999_s5 }
 0x15c   : > { %s1965_s26 = sshll.u32 %s9814_s28, 4  ;;  %p7001_p7 = pnand %p7000_p3, %p9719_p4  ;;  %s8487_s26 = int_to_ptr.hbm [resolvable:$true] %s1965_s26 }
 0x15d   : > { %p7006_p0 = por %p7005_p10, %p7004_p9 }
 0x15e   : > { %p7002_p8 = pneg %p7001_p7 }
 0x160   : > { %p7007_p1 = pnand %p7006_p0, %p7002_p8 }
 0x162   : > { %7010 = shalt.err (!%p7007_p1)
}
 0x163   : > { %s9815_s15 = sld [smem:[#allocation126_spill]]  ;;  %s7921_s2 = smov [#allocation47]  }
 0x164   : > { %6207 = dma.hbm_to_vmem [thread:$0]  (%p9719_p4), %s8473_s3, 512, %s1940_s6, [#allocation45], %s9700_s1, %s9700_s1, %s9702_s23  }
 0x165   : > { %s1967_s8 = sshll.u32 %s7921_s2, 4  ;;  %s7025_s0 = sshra.s32 %s8487_s26, 4  ;;  %s1968_s8 = int_to_ptr.vmem [resolvable:$true] %s1967_s8  ;;  %s7026_s0 = int_to_ptr.hbm [resolvable:$true] %s7025_s0 }
 0x166   : > { %s7027_s5 = scalar_lea.hbm %s7026_s0, 32  ;;  %s7031_s11 = scalar_lea.hbm %s9814_s28, 32 }
 0x167   : > { %p7028_p2 = scmp.ne.s32.totalorder %s7026_s0, %s7027_s5  ;;  %p7032_p8 = scmp.lt.s32.totalorder %s7026_s0, %s9814_s28 }
 0x168   : > { %p7033_p9 = scmp.lt.s32.totalorder %s7031_s11, %s7027_s5 }
 0x169   : > { %s9816_s10 = smov %s9815_s15  ;;  %s2005_s9 = sshll.u32 %s9815_s15, 4  ;;  %s8501_s9 = int_to_ptr.hbm [resolvable:$true] %s2005_s9 }
 0x16a   : > { %p7029_p3 = pnand %p7028_p2, %p9719_p4  ;;  %p7034_p10 = por %p7033_p9, %p7032_p8 }
 0x16c   : > { %p7030_p7 = pneg %p7029_p3 }
 0x16e   : > { %p7035_p0 = pnand %p7034_p10, %p7030_p7 }
 0x170   : > { %7038 = shalt.err (!%p7035_p0)
}
 0x171   : > { %s9817_s6 = sld [smem:[#allocation128_spill]]  ;;  %s7922_s15 = smov [#allocation50]  }
 0x172   : > { %6211 = dma.hbm_to_vmem [thread:$0]  (%p9719_p4), %s8487_s26, 512, %s1968_s8, [#allocation48], %s9700_s1, %s9700_s1, %s9702_s23  }
 0x173   : > { %s2007_s2 = sshll.u32 %s7922_s15, 4  ;;  %s7053_s0 = sshra.s32 %s8501_s9, 4  ;;  %s2008_s2 = int_to_ptr.vmem [resolvable:$true] %s2007_s2  ;;  %s7054_s0 = int_to_ptr.hbm [resolvable:$true] %s7053_s0 }
 0x174   : > { %s7055_s5 = scalar_lea.hbm %s7054_s0, 32  ;;  %s7059_s11 = scalar_lea.hbm %s9816_s10, 32 }
 0x175   : > { %p7056_p1 = scmp.ne.s32.totalorder %s7054_s0, %s7055_s5  ;;  %p7060_p7 = scmp.lt.s32.totalorder %s7054_s0, %s9816_s10 }
 0x176   : > { %p7061_p8 = scmp.lt.s32.totalorder %s7059_s11, %s7055_s5 }
 0x177   : > { %s2033_s3 = sshll.u32 %s9817_s6, 4  ;;  %p7057_p2 = pnand %p7056_p1, %p9719_p4  ;;  %s8515_s3 = int_to_ptr.hbm [resolvable:$true] %s2033_s3 }
 0x178   : > { %p7062_p9 = por %p7061_p8, %p7060_p7 }
 0x179   : > { %p7058_p3 = pneg %p7057_p2 }
 0x17b   : > { %p7063_p10 = pnand %p7062_p9, %p7058_p3 }
 0x17d   : > { %7066 = shalt.err (!%p7063_p10)
}
 0x17e   : > { %6215 = dma.hbm_to_vmem [thread:$0]  (%p9719_p4), %s8501_s9, 512, %s2008_s2, [#allocation51], %s9700_s1, %s9700_s1, %s9702_s23  }
 0x17f   : > { %s7923_s8 = smov [#allocation53]   ;;  %s2073_s15 = sshll.u32 %s9796_s4, 4  ;;  %s8529_s15 = int_to_ptr.hbm [resolvable:$true] %s2073_s15 }
 0x180   : > { %s2035_s26 = sshll.u32 %s7923_s8, 4  ;;  %s7081_s0 = sshra.s32 %s8515_s3, 4  ;;  %s2036_s26 = int_to_ptr.vmem [resolvable:$true] %s2035_s26  ;;  %s7082_s0 = int_to_ptr.hbm [resolvable:$true] %s7081_s0 }
 0x181   : > { %s7083_s5 = scalar_lea.hbm %s7082_s0, 32  ;;  %s7087_s11 = scalar_lea.hbm %s9817_s6, 32 }
 0x182   : > { %p7084_p0 = scmp.ne.s32.totalorder %s7082_s0, %s7083_s5  ;;  %p7088_p3 = scmp.lt.s32.totalorder %s7082_s0, %s9817_s6 }
 0x183   : > { %p7089_p7 = scmp.lt.s32.totalorder %s7087_s11, %s7083_s5 }
 0x184   : > { %p7085_p1 = pnand %p7084_p0, %p9719_p4 }
 0x185   : > { %p7090_p8 = por %p7089_p7, %p7088_p3 }
 0x186   : > { %p7086_p2 = pneg %p7085_p1 }
 0x188   : > { %p7091_p9 = pnand %p7090_p8, %p7086_p2 }
 0x18a   : > { %7094 = shalt.err (!%p7091_p9)
}
 0x18b   : > { %s9818_s9 = sld [smem:[#allocation85_spill]]  ;;  %s7924_s8 = smov [#allocation56]  }
 0x18c   : > { %6219 = dma.hbm_to_vmem [thread:$0]  (%p9719_p4), %s8515_s3, 512, %s2036_s26, [#allocation54], %s9700_s1, %s9700_s1, %s9702_s23  }
 0x18d   : > { %s2075_s10 = sshll.u32 %s7924_s8, 4  ;;  %s7109_s0 = sshra.s32 %s8529_s15, 4  ;;  %s2076_s10 = int_to_ptr.vmem [resolvable:$true] %s2075_s10  ;;  %s7110_s0 = int_to_ptr.hbm [resolvable:$true] %s7109_s0 }
 0x18e   : > { %s7111_s5 = scalar_lea.hbm %s7110_s0, 32  ;;  %s7115_s11 = scalar_lea.hbm %s9796_s4, 32 }
 0x18f   : > { %p7112_p10 = scmp.ne.s32.totalorder %s7110_s0, %s7111_s5  ;;  %p7116_p2 = scmp.lt.s32.totalorder %s7110_s0, %s9796_s4 }
 0x190   : > { %p7117_p3 = scmp.lt.s32.totalorder %s7115_s11, %s7111_s5 }
 0x191   : > { %s1567_s2 = sshll.u32 %s9818_s9, 4  ;;  %p7113_p0 = pnand %p7112_p10, %p9719_p4  ;;  %s8543_s2 = int_to_ptr.hbm [resolvable:$true] %s1567_s2 }
 0x192   : > { %p7118_p7 = por %p7117_p3, %p7116_p2 }
 0x193   : > { %p7114_p1 = pneg %p7113_p0 }
 0x195   : > { %p7119_p8 = pnand %p7118_p7, %p7114_p1 }
 0x197   : > { %7122 = shalt.err (!%p7119_p8)
}
 0x198   : > { %s9819_s3 = sld [smem:[#allocation89_spill]]  ;;  %s7925_s26 = smov [#allocation7]  }
 0x199   : > { %6223 = dma.hbm_to_vmem [thread:$0]  (%p9719_p4), %s8529_s15, 512, %s2076_s10, [#allocation57], %s9700_s1, %s9700_s1, %s9702_s23  }
 0x19a   : > { %s1569_s8 = sshll.u32 %s7925_s26, 4  ;;  %s7137_s0 = sshra.s32 %s8543_s2, 4  ;;  %s1570_s8 = int_to_ptr.vmem [resolvable:$true] %s1569_s8  ;;  %s7138_s0 = int_to_ptr.hbm [resolvable:$true] %s7137_s0 }
 0x19b   : > { %s7139_s5 = scalar_lea.hbm %s7138_s0, 16  ;;  %s7143_s11 = scalar_lea.hbm %s9818_s9, 16 }
 0x19c   : > { %p7140_p9 = scmp.ne.s32.totalorder %s7138_s0, %s7139_s5  ;;  %p7144_p1 = scmp.lt.s32.totalorder %s7138_s0, %s9818_s9 }
 0x19d   : > { %p7145_p2 = scmp.lt.s32.totalorder %s7143_s11, %s7139_s5 }
 0x19e   : > { %s1603_s6 = sshll.u32 %s9819_s3, 4  ;;  %p7141_p10 = pnand %p7140_p9, %p9719_p4  ;;  %s8557_s6 = int_to_ptr.hbm [resolvable:$true] %s1603_s6 }
 0x19f   : > { %p7146_p3 = por %p7145_p2, %p7144_p1 }
 0x1a0   : > { %p7142_p0 = pneg %p7141_p10 }
 0x1a2   : > { %p7147_p7 = pnand %p7146_p3, %p7142_p0 }
 0x1a4   : > { %7150 = shalt.err (!%p7147_p7)
}
 0x1a5   : > { %s9820_s10 = sld [smem:[#allocation91_spill]]  ;;  %s7926_s26 = smov [#allocation10]  }
 0x1a6   : > { %6157 = dma.hbm_to_vmem [thread:$0]  (%p9719_p4), %s8543_s2, 256, %s1570_s8, [#allocation6], %s9700_s1, %s9700_s1, %s9702_s23  }
 0x1a7   : > { %s1605_s4 = sshll.u32 %s7926_s26, 4  ;;  %s7165_s0 = sshra.s32 %s8557_s6, 4  ;;  %s1606_s4 = int_to_ptr.vmem [resolvable:$true] %s1605_s4  ;;  %s7166_s0 = int_to_ptr.hbm [resolvable:$true] %s7165_s0 }
 0x1a8   : > { %s7167_s5 = scalar_lea.hbm %s7166_s0, 1  ;;  %s7171_s11 = scalar_lea.hbm %s9819_s3, 1 }
 0x1a9   : > { %p7168_p8 = scmp.ne.s32.totalorder %s7166_s0, %s7167_s5  ;;  %p7172_p0 = scmp.lt.s32.totalorder %s7166_s0, %s9819_s3 }
 0x1aa   : > { %p7173_p1 = scmp.lt.s32.totalorder %s7171_s11, %s7167_s5 }
 0x1ab   : > { %s1627_s15 = sshll.u32 %s9820_s10, 4  ;;  %p7169_p9 = pnand %p7168_p8, %p9719_p4  ;;  %s8571_s15 = int_to_ptr.hbm [resolvable:$true] %s1627_s15 }
 0x1ac   : > { %p7174_p2 = por %p7173_p1, %p7172_p0 }
 0x1ad   : > { %p7170_p10 = pneg %p7169_p9 }
 0x1af   : > { %p7175_p3 = pnand %p7174_p2, %p7170_p10 }
 0x1b1   : > { %7178 = shalt.err (!%p7175_p3)
}
 0x1b2   : > { %s9821_s2 = sld [smem:[#allocation97_spill]]  ;;  %s7927_s8 = smov [#allocation13]  }
 0x1b3   : > { %6161 = dma.hbm_to_vmem [thread:$0]  (%p9719_p4), %s8557_s6, 16, %s1606_s4, [#allocation9]  }
 0x1b4   : > { %s1629_s26 = sshll.u32 %s7927_s8, 4  ;;  %s7193_s0 = sshra.s32 %s8571_s15, 4  ;;  %s1630_s26 = int_to_ptr.vmem [resolvable:$true] %s1629_s26  ;;  %s7194_s0 = int_to_ptr.hbm [resolvable:$true] %s7193_s0 }
 0x1b5   : > { %s7195_s5 = scalar_lea.hbm %s7194_s0, 1  ;;  %s7199_s11 = scalar_lea.hbm %s9820_s10, 1 }
 0x1b6   : > { %p7196_p7 = scmp.ne.s32.totalorder %s7194_s0, %s7195_s5  ;;  %p7200_p10 = scmp.lt.s32.totalorder %s7194_s0, %s9820_s10 }
 0x1b7   : > { %p7201_p0 = scmp.lt.s32.totalorder %s7199_s11, %s7195_s5 }
 0x1b8   : > { %s1663_s1 = sshll.u32 %s9821_s2, 4  ;;  %p7197_p8 = pnand %p7196_p7, %p9719_p4  ;;  %s8582_s1 = int_to_ptr.hbm [resolvable:$true] %s1663_s1 }
 0x1b9   : > { %p7202_p1 = por %p7201_p0, %p7200_p10 }
 0x1ba   : > { %p7198_p9 = pneg %p7197_p8 }
 0x1bc   : > { %p7203_p2 = pnand %p7202_p1, %p7198_p9 }
 0x1be   : > { %7206 = shalt.err (!%p7203_p2)
}
 0x1bf   : > { %s9822_s4 = sld [smem:[#allocation98_spill]]  ;;  %s7928_s8 = smov [#allocation16]  }
 0x1c0   : > { %6165 = dma.hbm_to_vmem [thread:$0]  (%p9719_p4), %s8571_s15, 16, %s1630_s26, [#allocation12]  }
 0x1c1   : > { %s1665_s23 = sshll.u32 %s7928_s8, 4  ;;  %s7221_s0 = sshra.s32 %s8582_s1, 4  ;;  %s1666_s23 = int_to_ptr.vmem [resolvable:$true] %s1665_s23  ;;  %s7222_s0 = int_to_ptr.hbm [resolvable:$true] %s7221_s0 }
 0x1c2   : > { %s7223_s5 = scalar_lea.hbm %s7222_s0, 1  ;;  %s7227_s11 = scalar_lea.hbm %s9821_s2, 1 }
 0x1c3   : > { %p7224_p3 = scmp.ne.s32.totalorder %s7222_s0, %s7223_s5  ;;  %p7228_p9 = scmp.lt.s32.totalorder %s7222_s0, %s9821_s2 }
 0x1c4   : > { %p7229_p10 = scmp.lt.s32.totalorder %s7227_s11, %s7223_s5 }
 0x1c5   : > { %s1687_s6 = sshll.u32 %s9822_s4, 4  ;;  %p7225_p7 = pnand %p7224_p3, %p9719_p4  ;;  %s8593_s6 = int_to_ptr.hbm [resolvable:$true] %s1687_s6 }
 0x1c6   : > { %p7230_p0 = por %p7229_p10, %p7228_p9 }
 0x1c7   : > { %p7226_p8 = pneg %p7225_p7 }
 0x1c9   : > { %p7231_p1 = pnand %p7230_p0, %p7226_p8 }
 0x1cb   : > { %7234 = shalt.err (!%p7231_p1)
}
 0x1cc   : > { %s9823_s15 = sld [smem:[#allocation103_spill]]  ;;  %s7929_s8 = smov [#allocation19]  }
 0x1cd   : > { %6169 = dma.hbm_to_vmem [thread:$0]  (%p9719_p4), %s8582_s1, 16, %s1666_s23, [#allocation15]  }
 0x1ce   : > { %s1689_s3 = sshll.u32 %s7929_s8, 4  ;;  %s7249_s0 = sshra.s32 %s8593_s6, 4  ;;  %s1690_s3 = int_to_ptr.vmem [resolvable:$true] %s1689_s3  ;;  %s7250_s0 = int_to_ptr.hbm [resolvable:$true] %s7249_s0 }
 0x1cf   : > { %s7251_s5 = scalar_lea.hbm %s7250_s0, 1  ;;  %s7255_s11 = scalar_lea.hbm %s9822_s4, 1 }
 0x1d0   : > { %p7252_p2 = scmp.ne.s32.totalorder %s7250_s0, %s7251_s5  ;;  %p7256_p8 = scmp.lt.s32.totalorder %s7250_s0, %s9822_s4 }
 0x1d1   : > { %p7257_p9 = scmp.lt.s32.totalorder %s7255_s11, %s7251_s5 }
 0x1d2   : > { %s9824_s26 = smov %s9823_s15  ;;  %s1723_s9 = sshll.u32 %s9823_s15, 4  ;;  %s8604_s9 = int_to_ptr.hbm [resolvable:$true] %s1723_s9 }
 0x1d3   : > { %p7253_p3 = pnand %p7252_p2, %p9719_p4  ;;  %p7258_p10 = por %p7257_p9, %p7256_p8 }
 0x1d5   : > { %p7254_p7 = pneg %p7253_p3 }
 0x1d7   : > { %p7259_p0 = pnand %p7258_p10, %p7254_p7 }
 0x1d9   : > { %7262 = shalt.err (!%p7259_p0)
}
 0x1da   : > { %s9825_s1 = sld [smem:[#allocation104_spill]]  ;;  %s7930_s15 = smov [#allocation22]  }
 0x1db   : > { %6173 = dma.hbm_to_vmem [thread:$0]  (%p9719_p4), %s8593_s6, 16, %s1690_s3, [#allocation18]  }
 0x1dc   : > { %s1725_s8 = sshll.u32 %s7930_s15, 4  ;;  %s7277_s0 = sshra.s32 %s8604_s9, 4  ;;  %s1726_s8 = int_to_ptr.vmem [resolvable:$true] %s1725_s8  ;;  %s7278_s0 = int_to_ptr.hbm [resolvable:$true] %s7277_s0 }
 0x1dd   : > { %s7279_s5 = scalar_lea.hbm %s7278_s0, 1  ;;  %s7283_s11 = scalar_lea.hbm %s9824_s26, 1 }
 0x1de   : > { %p7280_p1 = scmp.ne.s32.totalorder %s7278_s0, %s7279_s5  ;;  %p7284_p7 = scmp.lt.s32.totalorder %s7278_s0, %s9824_s26 }
 0x1df   : > { %p7285_p8 = scmp.lt.s32.totalorder %s7283_s11, %s7279_s5 }
 0x1e0   : > { %s1747_s23 = sshll.u32 %s9825_s1, 4  ;;  %p7281_p2 = pnand %p7280_p1, %p9719_p4  ;;  %s8615_s23 = int_to_ptr.hbm [resolvable:$true] %s1747_s23 }
 0x1e1   : > { %p7286_p9 = por %p7285_p8, %p7284_p7 }
 0x1e2   : > { %p7282_p3 = pneg %p7281_p2 }
 0x1e4   : > { %p7287_p10 = pnand %p7286_p9, %p7282_p3 }
 0x1e6   : > { %7290 = shalt.err (!%p7287_p10)
}
 0x1e7   : > { %s9826_s3 = sld [smem:[#allocation107_spill]]  ;;  %s7931_s6 = smov [#allocation25]  }
 0x1e8   : > { %6177 = dma.hbm_to_vmem [thread:$0]  (%p9719_p4), %s8604_s9, 16, %s1726_s8, [#allocation21]  }
 0x1e9   : > { %s1749_s15 = sshll.u32 %s7931_s6, 4  ;;  %s7305_s0 = sshra.s32 %s8615_s23, 4  ;;  %s1750_s15 = int_to_ptr.vmem [resolvable:$true] %s1749_s15  ;;  %s7306_s0 = int_to_ptr.hbm [resolvable:$true] %s7305_s0 }
 0x1ea   : > { %s7307_s5 = scalar_lea.hbm %s7306_s0, 1  ;;  %s7311_s11 = scalar_lea.hbm %s9825_s1, 1 }
 0x1eb   : > { %p7308_p0 = scmp.ne.s32.totalorder %s7306_s0, %s7307_s5  ;;  %p7312_p3 = scmp.lt.s32.totalorder %s7306_s0, %s9825_s1 }
 0x1ec   : > { %p7313_p7 = scmp.lt.s32.totalorder %s7311_s11, %s7307_s5 }
 0x1ed   : > { %s1773_s2 = sshll.u32 %s9826_s3, 4  ;;  %p7309_p1 = pnand %p7308_p0, %p9719_p4  ;;  %s8626_s2 = int_to_ptr.hbm [resolvable:$true] %s1773_s2 }
 0x1ee   : > { %p7314_p8 = por %p7313_p7, %p7312_p3 }
 0x1ef   : > { %p7310_p2 = pneg %p7309_p1 }
 0x1f1   : > { %p7315_p9 = pnand %p7314_p8, %p7310_p2 }
 0x1f3   : > { %7318 = shalt.err (!%p7315_p9)
}
 0x1f4   : > { %s9827_s9 = sld [smem:[#allocation109_spill]]  ;;  %s7932_s6 = smov [#allocation28]  }
 0x1f5   : > { %6181 = dma.hbm_to_vmem [thread:$0]  (%p9719_p4), %s8615_s23, 16, %s1750_s15, [#allocation24]  }
 0x1f6   : > { %s1775_s4 = sshll.u32 %s7932_s6, 4  ;;  %s7333_s0 = sshra.s32 %s8626_s2, 4  ;;  %s1776_s4 = int_to_ptr.vmem [resolvable:$true] %s1775_s4  ;;  %s7334_s0 = int_to_ptr.hbm [resolvable:$true] %s7333_s0 }
 0x1f7   : > { %s7335_s5 = scalar_lea.hbm %s7334_s0, 32  ;;  %s7339_s11 = scalar_lea.hbm %s9826_s3, 32 }
 0x1f8   : > { %p7336_p10 = scmp.ne.s32.totalorder %s7334_s0, %s7335_s5  ;;  %p7340_p2 = scmp.lt.s32.totalorder %s7334_s0, %s9826_s3 }
 0x1f9   : > { %p7341_p3 = scmp.lt.s32.totalorder %s7339_s11, %s7335_s5 }
 0x1fa   : > { %s1801_s8 = sshll.u32 %s9827_s9, 4  ;;  %p7337_p0 = pnand %p7336_p10, %p9719_p4  ;;  %s8637_s8 = int_to_ptr.hbm [resolvable:$true] %s1801_s8 }
 0x1fb   : > { %p7342_p7 = por %p7341_p3, %p7340_p2 }
 0x1fc   : > { %p7338_p1 = pneg %p7337_p0 }
 0x1fe   : > { %p7343_p8 = pnand %p7342_p7, %p7338_p1 }
 0x200   : > { %7346 = shalt.err (!%p7343_p8)
}
 0x201   : > { %s9828_s23 = smov 8   ;;  %s9829_s15 = smov 128  }
 0x202   : > { %s9830_s6 = sld [smem:[#allocation110_spill]]  ;;  %s7933_s1 = smov [#allocation31]  }
 0x203   : > { %6185 = dma.hbm_to_vmem [thread:$0]  (%p9719_p4), %s8626_s2, 512, %s1776_s4, [#allocation27], %s9829_s15, %s9829_s15, %s9828_s23  }
 0x204   : > { %s1803_s10 = sshll.u32 %s7933_s1, 4  ;;  %s7361_s0 = sshra.s32 %s8637_s8, 4  ;;  %s1804_s10 = int_to_ptr.vmem [resolvable:$true] %s1803_s10  ;;  %s7362_s0 = int_to_ptr.hbm [resolvable:$true] %s7361_s0 }
 0x205   : > { %s7363_s5 = scalar_lea.hbm %s7362_s0, 32  ;;  %s7367_s11 = scalar_lea.hbm %s9827_s9, 32 }
 0x206   : > { %p7364_p9 = scmp.ne.s32.totalorder %s7362_s0, %s7363_s5  ;;  %p7368_p1 = scmp.lt.s32.totalorder %s7362_s0, %s9827_s9 }
 0x207   : > { %p7369_p2 = scmp.lt.s32.totalorder %s7367_s11, %s7363_s5 }
 0x208   : > { %s1828_s12 = sshll.u32 %s9830_s6, 4  ;;  %p7365_p10 = pnand %p7364_p9, %p9719_p4  ;;  %s8651_s12 = int_to_ptr.hbm [resolvable:$true] %s1828_s12 }
 0x209   : > { %p7370_p3 = por %p7369_p2, %p7368_p1 }
 0x20a   : > { %p7366_p0 = pneg %p7365_p10 }
 0x20c   : > { %p7371_p7 = pnand %p7370_p3, %p7366_p0 }
 0x20e   : > { %7374 = shalt.err (!%p7371_p7)
}
 0x20f   : > { %s9831_s2 = sld [smem:[#allocation111_spill]]  ;;  %s7934_s1 = smov [#allocation34]  }
 0x210   : > { %6189 = dma.hbm_to_vmem [thread:$0]  (%p9719_p4), %s8637_s8, 512, %s1804_s10, [#allocation30], %s9829_s15, %s9829_s15, %s9828_s23  }
 0x211   : > { %s1830_s3 = sshll.u32 %s7934_s1, 4  ;;  %s7389_s0 = sshra.s32 %s8651_s12, 4  ;;  %s1831_s3 = int_to_ptr.vmem [resolvable:$true] %s1830_s3  ;;  %s7390_s0 = int_to_ptr.hbm [resolvable:$true] %s7389_s0 }
 0x212   : > { %s7391_s5 = scalar_lea.hbm %s7390_s0, 1  ;;  %s7395_s11 = scalar_lea.hbm %s9830_s6, 1 }
 0x213   : > { %p7392_p8 = scmp.ne.s32.totalorder %s7390_s0, %s7391_s5  ;;  %p7396_p0 = scmp.lt.s32.totalorder %s7390_s0, %s9830_s6 }
 0x214   : > { %p7397_p1 = scmp.lt.s32.totalorder %s7395_s11, %s7391_s5 }
 0x215   : > { %s1852_s4 = sshll.u32 %s9831_s2, 4  ;;  %p7393_p9 = pnand %p7392_p8, %p9719_p4  ;;  %s8665_s4 = int_to_ptr.hbm [resolvable:$true] %s1852_s4 }
 0x216   : > { %p7398_p2 = por %p7397_p1, %p7396_p0 }
 0x217   : > { %p7394_p10 = pneg %p7393_p9 }
 0x219   : > { %p7399_p3 = pnand %p7398_p2, %p7394_p10 }
 0x21b   : > { %7402 = shalt.err (!%p7399_p3)
}
 0x21c   : > { %s9832_s10 = sld [smem:[#allocation113_spill]]  ;;  %s7935_s8 = smov [#allocation37]  }
 0x21d   : > { %6193 = dma.hbm_to_vmem [thread:$0]  (%p9719_p4), %s8651_s12, 16, %s1831_s3, [#allocation33]  }
 0x21e   : > { %s1854_s1 = sshll.u32 %s7935_s8, 4  ;;  %s7417_s0 = sshra.s32 %s8665_s4, 4  ;;  %s1855_s1 = int_to_ptr.vmem [resolvable:$true] %s1854_s1  ;;  %s7418_s0 = int_to_ptr.hbm [resolvable:$true] %s7417_s0 }
 0x21f   : > { %s7419_s5 = scalar_lea.hbm %s7418_s0, 1  ;;  %s7423_s11 = scalar_lea.hbm %s9831_s2, 1 }
 0x220   : > { %p7420_p7 = scmp.ne.s32.totalorder %s7418_s0, %s7419_s5  ;;  %p7424_p10 = scmp.lt.s32.totalorder %s7418_s0, %s9831_s2 }
 0x221   : > { %p7425_p0 = scmp.lt.s32.totalorder %s7423_s11, %s7419_s5 }
 0x222   : > { %s1880_s9 = sshll.u32 %s9832_s10, 4  ;;  %p7421_p8 = pnand %p7420_p7, %p9719_p4  ;;  %s8676_s9 = int_to_ptr.hbm [resolvable:$true] %s1880_s9 }
 0x223   : > { %p7426_p1 = por %p7425_p0, %p7424_p10 }
 0x224   : > { %p7422_p9 = pneg %p7421_p8 }
 0x226   : > { %p7427_p2 = pnand %p7426_p1, %p7422_p9 }
 0x228   : > { %7430 = shalt.err (!%p7427_p2)
}
 0x229   : > { %s9833_s12 = sld [smem:[#allocation119_spill]]  ;;  %s7936_s8 = smov [#allocation40]  }
 0x22a   : > { %6197 = dma.hbm_to_vmem [thread:$0]  (%p9719_p4), %s8665_s4, 16, %s1855_s1, [#allocation36]  }
 0x22b   : > { %s1882_s6 = sshll.u32 %s7936_s8, 4  ;;  %s7445_s0 = sshra.s32 %s8676_s9, 4  ;;  %s1883_s6 = int_to_ptr.vmem [resolvable:$true] %s1882_s6  ;;  %s7446_s0 = int_to_ptr.hbm [resolvable:$true] %s7445_s0 }
 0x22c   : > { %s7447_s5 = scalar_lea.hbm %s7446_s0, 32  ;;  %s7451_s11 = scalar_lea.hbm %s9832_s10, 32 }
 0x22d   : > { %p7448_p3 = scmp.ne.s32.totalorder %s7446_s0, %s7447_s5  ;;  %p7452_p9 = scmp.lt.s32.totalorder %s7446_s0, %s9832_s10 }
 0x22e   : > { %p7453_p10 = scmp.lt.s32.totalorder %s7451_s11, %s7447_s5 }
 0x22f   : > { %s1923_s3 = sshll.u32 %s9833_s12, 4  ;;  %p7449_p7 = pnand %p7448_p3, %p9719_p4  ;;  %s8687_s3 = int_to_ptr.hbm [resolvable:$true] %s1923_s3 }
 0x230   : > { %p7454_p0 = por %p7453_p10, %p7452_p9 }
 0x231   : > { %p7450_p8 = pneg %p7449_p7 }
 0x233   : > { %p7455_p1 = pnand %p7454_p0, %p7450_p8 }
 0x235   : > { %7458 = shalt.err (!%p7455_p1)
}
 0x236   : > { %s9834_s4 = sld [smem:[#allocation120_spill]]  ;;  %s7937_s1 = smov [#allocation43]  }
 0x237   : > { %6201 = dma.hbm_to_vmem [thread:$0]  (%p9719_p4), %s8676_s9, 512, %s1883_s6, [#allocation39], %s9829_s15, %s9829_s15, %s9828_s23  }
 0x238   : > { %s1925_s8 = sshll.u32 %s7937_s1, 4  ;;  %s7473_s0 = sshra.s32 %s8687_s3, 4  ;;  %s1926_s8 = int_to_ptr.vmem [resolvable:$true] %s1925_s8  ;;  %s7474_s0 = int_to_ptr.hbm [resolvable:$true] %s7473_s0 }
 0x239   : > { %s7475_s5 = scalar_lea.hbm %s7474_s0, 32  ;;  %s7479_s11 = scalar_lea.hbm %s9833_s12, 32 }
 0x23a   : > { %p7476_p2 = scmp.ne.s32.totalorder %s7474_s0, %s7475_s5  ;;  %p7480_p8 = scmp.lt.s32.totalorder %s7474_s0, %s9833_s12 }
 0x23b   : > { %p7481_p9 = scmp.lt.s32.totalorder %s7479_s11, %s7475_s5 }
 0x23c   : > { %s1951_s2 = sshll.u32 %s9834_s4, 4  ;;  %p7477_p3 = pnand %p7476_p2, %p9719_p4  ;;  %s8701_s2 = int_to_ptr.hbm [resolvable:$true] %s1951_s2 }
 0x23d   : > { %p7482_p10 = por %p7481_p9, %p7480_p8 }
 0x23e   : > { %p7478_p7 = pneg %p7477_p3 }
 0x240   : > { %p7483_p0 = pnand %p7482_p10, %p7478_p7 }
 0x242   : > { %7486 = shalt.err (!%p7483_p0)
}
 0x243   : > { %s9835_s9 = sld [smem:[#allocation125_spill]]  ;;  %s7938_s1 = smov [#allocation46]  }
 0x244   : > { %6205 = dma.hbm_to_vmem [thread:$0]  (%p9719_p4), %s8687_s3, 512, %s1926_s8, [#allocation42], %s9829_s15, %s9829_s15, %s9828_s23  }
 0x245   : > { %s1953_s10 = sshll.u32 %s7938_s1, 4  ;;  %s7501_s0 = sshra.s32 %s8701_s2, 4  ;;  %s1954_s10 = int_to_ptr.vmem [resolvable:$true] %s1953_s10  ;;  %s7502_s0 = int_to_ptr.hbm [resolvable:$true] %s7501_s0 }
 0x246   : > { %s7503_s5 = scalar_lea.hbm %s7502_s0, 32  ;;  %s7507_s11 = scalar_lea.hbm %s9834_s4, 32 }
 0x247   : > { %p7504_p1 = scmp.ne.s32.totalorder %s7502_s0, %s7503_s5  ;;  %p7508_p7 = scmp.lt.s32.totalorder %s7502_s0, %s9834_s4 }
 0x248   : > { %p7509_p8 = scmp.lt.s32.totalorder %s7507_s11, %s7503_s5 }
 0x249   : > { %s1991_s6 = sshll.u32 %s9835_s9, 4  ;;  %p7505_p2 = pnand %p7504_p1, %p9719_p4  ;;  %s8715_s6 = int_to_ptr.hbm [resolvable:$true] %s1991_s6 }
 0x24a   : > { %p7510_p9 = por %p7509_p8, %p7508_p7 }
 0x24b   : > { %p7506_p3 = pneg %p7505_p2 }
 0x24d   : > { %p7511_p10 = pnand %p7510_p9, %p7506_p3 }
 0x24f   : > { %7514 = shalt.err (!%p7511_p10)
}
 0x250   : > { %s9836_s3 = sld [smem:[#allocation127_spill]]  ;;  %s7939_s8 = smov [#allocation49]  }
 0x251   : > { %6209 = dma.hbm_to_vmem [thread:$0]  (%p9719_p4), %s8701_s2, 512, %s1954_s10, [#allocation45], %s9829_s15, %s9829_s15, %s9828_s23  }
 0x252   : > { %s1993_s1 = sshll.u32 %s7939_s8, 4  ;;  %s7529_s0 = sshra.s32 %s8715_s6, 4  ;;  %s1994_s1 = int_to_ptr.vmem [resolvable:$true] %s1993_s1  ;;  %s7530_s0 = int_to_ptr.hbm [resolvable:$true] %s7529_s0 }
 0x253   : > { %s7531_s5 = scalar_lea.hbm %s7530_s0, 32  ;;  %s7535_s11 = scalar_lea.hbm %s9835_s9, 32 }
 0x254   : > { %p7532_p0 = scmp.ne.s32.totalorder %s7530_s0, %s7531_s5  ;;  %p7536_p3 = scmp.lt.s32.totalorder %s7530_s0, %s9835_s9 }
 0x255   : > { %p7537_p7 = scmp.lt.s32.totalorder %s7535_s11, %s7531_s5 }
 0x256   : > { %s2019_s12 = sshll.u32 %s9836_s3, 4  ;;  %p7533_p1 = pnand %p7532_p0, %p9719_p4  ;;  %s8729_s12 = int_to_ptr.hbm [resolvable:$true] %s2019_s12 }
 0x257   : > { %p7538_p8 = por %p7537_p7, %p7536_p3 }
 0x258   : > { %p7534_p2 = pneg %p7533_p1 }
 0x25a   : > { %p7539_p9 = pnand %p7538_p8, %p7534_p2 }
 0x25c   : > { %7542 = shalt.err (!%p7539_p9)
}
 0x25d   : > { %s9837_s2 = sld [smem:[#allocation132_spill]]  ;;  %s7940_s8 = smov [#allocation52]  }
 0x25e   : > { %6213 = dma.hbm_to_vmem [thread:$0]  (%p9719_p4), %s8715_s6, 512, %s1994_s1, [#allocation48], %s9829_s15, %s9829_s15, %s9828_s23  }
 0x25f   : > { %s2021_s4 = sshll.u32 %s7940_s8, 4  ;;  %s7557_s0 = sshra.s32 %s8729_s12, 4  ;;  %s2022_s4 = int_to_ptr.vmem [resolvable:$true] %s2021_s4  ;;  %s7558_s0 = int_to_ptr.hbm [resolvable:$true] %s7557_s0 }
 0x260   : > { %s7559_s5 = scalar_lea.hbm %s7558_s0, 32  ;;  %s7563_s11 = scalar_lea.hbm %s9836_s3, 32 }
 0x261   : > { %p7560_p10 = scmp.ne.s32.totalorder %s7558_s0, %s7559_s5  ;;  %p7564_p2 = scmp.lt.s32.totalorder %s7558_s0, %s9836_s3 }
 0x262   : > { %p7565_p3 = scmp.lt.s32.totalorder %s7563_s11, %s7559_s5 }
 0x263   : > { %s2059_s10 = sshll.u32 %s9837_s2, 4  ;;  %p7561_p0 = pnand %p7560_p10, %p9719_p4  ;;  %s8743_s10 = int_to_ptr.hbm [resolvable:$true] %s2059_s10 }
 0x264   : > { %p7566_p7 = por %p7565_p3, %p7564_p2 }
 0x265   : > { %p7562_p1 = pneg %p7561_p0 }
 0x267   : > { %p7567_p8 = pnand %p7566_p7, %p7562_p1 }
 0x269   : > { %7570 = shalt.err (!%p7567_p8)
}
 0x26a   : > { %6217 = dma.hbm_to_vmem [thread:$0]  (%p9719_p4), %s8729_s12, 512, %s2022_s4, [#allocation51], %s9829_s15, %s9829_s15, %s9828_s23  }
 0x26b   : > { %s7941_s6 = smov [#allocation55]   ;;  %s2087_s8 = sshll.u32 %s8261_s14, 4  ;;  %s8757_s8 = int_to_ptr.hbm [resolvable:$true] %s2087_s8 }
 0x26c   : > { %s2061_s1 = sshll.u32 %s7941_s6, 4  ;;  %s7585_s0 = sshra.s32 %s8743_s10, 4  ;;  %s2062_s1 = int_to_ptr.vmem [resolvable:$true] %s2061_s1  ;;  %s7586_s0 = int_to_ptr.hbm [resolvable:$true] %s7585_s0 }
 0x26d   : > { %s7587_s5 = scalar_lea.hbm %s7586_s0, 32  ;;  %s7591_s11 = scalar_lea.hbm %s9837_s2, 32 }
 0x26e   : > { %p7588_p9 = scmp.ne.s32.totalorder %s7586_s0, %s7587_s5  ;;  %p7592_p1 = scmp.lt.s32.totalorder %s7586_s0, %s9837_s2 }
 0x26f   : > { %p7593_p2 = scmp.lt.s32.totalorder %s7591_s11, %s7587_s5 }
 0x270   : > { %p7589_p10 = pnand %p7588_p9, %p9719_p4 }
 0x271   : > { %p7594_p3 = por %p7593_p2, %p7592_p1 }
 0x272   : > { %p7590_p0 = pneg %p7589_p10 }
 0x274   : > { %p7595_p7 = pnand %p7594_p3, %p7590_p0 }
 0x276   : > { %7598 = shalt.err (!%p7595_p7)
}
 0x277   : > { %6221 = dma.hbm_to_vmem [thread:$0]  (%p9719_p4), %s8743_s10, 512, %s2062_s1, [#allocation54], %s9829_s15, %s9829_s15, %s9828_s23  }
 0x278   : > { %s2101_s12 = sshll.u32 %s8266_s13, 4  ;;  %s7942_s4 = smov [#allocation58]   ;;  %s8771_s12 = int_to_ptr.hbm [resolvable:$true] %s2101_s12 }
 0x279   : > { %s2089_s6 = sshll.u32 %s7942_s4, 4  ;;  %s7613_s0 = sshra.s32 %s8757_s8, 4  ;;  %s2090_s6 = int_to_ptr.vmem [resolvable:$true] %s2089_s6  ;;  %s7614_s0 = int_to_ptr.hbm [resolvable:$true] %s7613_s0 }
 0x27a   : > { %s7615_s5 = scalar_lea.hbm %s7614_s0, 32  ;;  %s7619_s11 = scalar_lea.hbm %s8261_s14, 32 }
 0x27b   : > { %p7616_p8 = scmp.ne.s32.totalorder %s7614_s0, %s7615_s5  ;;  %p7620_p0 = scmp.lt.s32.totalorder %s7614_s0, %s8261_s14 }
 0x27c   : > { %p7621_p1 = scmp.lt.s32.totalorder %s7619_s11, %s7615_s5 }
 0x27d   : > { %p7617_p9 = pnand %p7616_p8, %p9719_p4 }
 0x27e   : > { %p7622_p2 = por %p7621_p1, %p7620_p0 }
 0x27f   : > { %p7618_p10 = pneg %p7617_p9 }
 0x281   : > { %p7623_p3 = pnand %p7622_p2, %p7618_p10 }
 0x283   : > { %7626 = shalt.err (!%p7623_p3)
}
 0x284   : > { %6225 = dma.hbm_to_vmem [thread:$0]  (%p9719_p4), %s8757_s8, 512, %s2090_s6, [#allocation57], %s9829_s15, %s9829_s15, %s9828_s23  }
 0x285   : > { %s7943_s10 = smov [#allocation59]   ;;  %s7641_s4 = sshra.s32 %s8771_s12, 4  ;;  %s7642_s4 = int_to_ptr.hbm [resolvable:$true] %s7641_s4 }
 0x286   : > { %s2103_s1 = sshll.u32 %s7943_s10, 4  ;;  %s7643_s0 = scalar_lea.hbm %s7642_s4, 32  ;;  %s2104_s1 = int_to_ptr.vmem [resolvable:$true] %s2103_s1 }
 0x287   : > { %p7644_p7 = scmp.ne.s32.totalorder %s7642_s4, %s7643_s0  ;;  %s7647_s5 = scalar_lea.hbm %s8266_s13, 32 }
 0x288   : > { %p7648_p10 = scmp.lt.s32.totalorder %s7642_s4, %s8266_s13  ;;  %p7649_p0 = scmp.lt.s32.totalorder %s7647_s5, %s7643_s0 }
 0x289   : > { %p7645_p8 = pnand %p7644_p7, %p9719_p4 }
 0x28a   : > { %p7650_p1 = por %p7649_p0, %p7648_p10 }
 0x28b   : > { %p7646_p9 = pneg %p7645_p8 }
 0x28d   : > { %p7651_p2 = pnand %p7650_p1, %p7646_p9 }
 0x28f   : > { %7654 = shalt.err (!%p7651_p2)
}
 0x290   : > { %6227 = dma.hbm_to_vmem [thread:$0]  (%p9719_p4), %s8771_s12, 512, %s2104_s1, [#allocation60], %s9829_s15, %s9829_s15, %s9828_s23  }
 0x291 PF: > { %s9838_s8 = sld [smem:[#allocation83_spill]]  ;;  %p6351_p7 = scmp.lt.s32.totalorder %s7841_s18, 2 }
 0x292   : > { %s2117_s6 = sand.u32 1, %s7837_s16   ;;  %s6147_s11 = sshll.u32 %s7841_s18, 9 }
 0x293   : > { %s5952_s10 = sshll.u32 %s2117_s6, 9  ;;  %p8802_p8 = pnand %p6351_p7, %p8312_p5 }
 0x294   : > { %s2121_s5 = scalar_lea.vmem [#allocation2], %s5952_s10  ;;  %s2118_s15 = scalar_lea.sflag [#allocation3], %s2117_s6 }
 0x295   : > { %s2129_s2 = sshll.u32 %s2121_s5, 4  ;;  %p7673_p10 = pneg %p8802_p8  ;;  %s2130_s2 = int_to_ptr.vmem [resolvable:$true] %s2129_s2 }
 0x297   : > { %s2126_s4 = scalar_lea.hbm %s9838_s8, %s6147_s11  ;;  %s7676_s11 = scalar_lea.hbm %s9838_s8, 1024 }
 0x298   : > { %s2127_s0 = sshll.u32 %s2126_s4, 4  ;;  %s2128_s0 = int_to_ptr.hbm [resolvable:$true] %s2127_s0 }
 0x299   : > { %s7669_s12 = sshra.s32 %s2128_s0, 4  ;;  %s7670_s12 = int_to_ptr.hbm [resolvable:$true] %s7669_s12 }
 0x29a   : > { %s7671_s1 = scalar_lea.hbm %s7670_s12, 512  ;;  %p7677_p2 = scmp.lt.s32.totalorder %s7670_s12, %s9838_s8 }
 0x29b   : > { %p7672_p9 = scmp.ne.s32.totalorder %s7670_s12, %s7671_s1  ;;  %p7678_p3 = scmp.lt.s32.totalorder %s7676_s11, %s7671_s1 }
 0x29d   : > { %p7674_p0 = pnand %p7673_p10, %p7672_p9  ;;  %p7679_p4 = por %p7678_p3, %p7677_p2 }
 0x29f   : > { %p7675_p1 = pneg %p7674_p0 }
 0x2a1   : > { %p7680_p12 = pnand %p7679_p4, %p7675_p1 }
 0x2a3   : > { %7683 = shalt.err (!%p7680_p12)
}
 0x2a4   : > { %s7944_s7 = smov 128   ;;  %s7945_s10 = smov 8  }
 0x2a5   : > { %6309 = dma.hbm_to_vmem [thread:$0]  (!%p8802_p8), %s2128_s0, 8192, %s2130_s2, %s2118_s15, %s7944_s7, %s7944_s7, %s7945_s10  }
 0x2a6   : > { %2141 = sbr.rel (%p8333_p13) target bundleno = 8941 (0x22ed), region = 276  ;;  %s9841_s4 = sld [smem:[#allocation136_spill]] (!%p8333_p13) }
 0x2ac   : > { %s8815_s3 = sand.u32 1, %s9841_s4  }
 0x2ad   : > { %s5956_s9 = sshll.u32 %s8815_s3, 9  ;;  %s2144_s12 = scalar_lea.sflag [#allocation3], %s8815_s3 }
 0x2ae   : > { %s8819_s1 = scalar_lea.vmem [#allocation2], %s5956_s9 }
 0x2af   : > { %7744 = dma.done.wait (%p8318_p6), %s2144_s12, 8192  }
 0x2b0   : > { %7746 = vsyncadd (%p8318_p6), %s2144_s12, 4294959104  ;;  %p9843_p4 = scmp.eq.s32.totalorder %s8294_s22, 0 }
 0x2b2   : > { %7748 = dma.done.wait (%p9843_p4), [#allocation6], 272   ;;  %p9844_p5 = pmov %p9843_p4 }
 0x2b3   : > { %p9845_p12 = pmov %p9843_p4 }
 0x2b4   : > { %7750 = vsyncadd (%p9844_p5), [#allocation6], 4294967024 }
 0x2b5   : > { %7752 = dma.done.wait (%p9845_p12), [#allocation9], 144   ;;  %p9846_p13 = pmov %p9843_p4 }
 0x2b6   : > { %p9847_p3 = pmov %p9843_p4 }
 0x2b7   : > { %7754 = vsyncadd (%p9846_p13), [#allocation9], 4294967152 }
 0x2b8   : > { %7756 = dma.done.wait (%p9847_p3), [#allocation12], 32   ;;  %p9848_p7 = pmov %p9847_p3 }
 0x2b9   : > { %p9849_p6 = pmov %p9847_p3 }
 0x2ba   : > { %7758 = vsyncadd (%p9848_p7), [#allocation12], 4294967264 }
 0x2bb   : > { %7760 = dma.done.wait (%p9849_p6), [#allocation15], 32   ;;  %p9850_p8 = pmov %p9847_p3 }
 0x2bc   : > { %p9851_p9 = pmov %p9847_p3 }
 0x2bd   : > { %7762 = vsyncadd (%p9850_p8), [#allocation15], 4294967264 }
 0x2be   : > { %7764 = dma.done.wait (%p9851_p9), [#allocation18], 32   ;;  %p9852_p10 = pmov %p9847_p3 }
 0x2bf   : > { %p9853_p0 = pmov %p9847_p3 }
 0x2c0   : > { %7766 = vsyncadd (%p9852_p10), [#allocation18], 4294967264 }
 0x2c1   : > { %7768 = dma.done.wait (%p9853_p0), [#allocation21], 144   ;;  %p9854_p1 = pmov %p9853_p0 }
 0x2c2   : > { %p9855_p2 = pmov %p9853_p0 }
 0x2c3   : > { %7770 = vsyncadd (%p9854_p1), [#allocation21], 4294967152 }
 0x2c4   : > { %7772 = dma.done.wait (%p9855_p2), [#allocation24], 32   ;;  %p9856_p4 = pmov %p9853_p0 }
 0x2c5   : > { %p9857_p5 = pmov %p9853_p0 }
 0x2c6   : > { %7774 = vsyncadd (%p9856_p4), [#allocation24], 4294967264 }
 0x2c7   : > { %7776 = dma.done.wait (%p9857_p5), [#allocation27], 528   ;;  %p9858_p12 = pmov %p9853_p0 }
 0x2c8   : > { %p9859_p13 = pmov %p9853_p0 }
 0x2c9   : > { %7778 = vsyncadd (%p9858_p12), [#allocation27], 4294966768 }
 0x2ca   : > { %7780 = dma.done.wait (%p9859_p13), [#allocation30], 1024   ;;  %p9860_p3 = pmov %p9853_p0 }
 0x2cb   : > { %p9861_p7 = pmov %p9853_p0 }
 0x2cc   : > { %7782 = vsyncadd (%p9860_p3), [#allocation30], 4294966272 }
 0x2cd   : > { %7784 = dma.done.wait (%p9861_p7), [#allocation33], 32   ;;  %p9862_p6 = pmov %p9853_p0 }
 0x2ce   : > { %p9863_p8 = pmov %p9853_p0 }
 0x2cf   : > { %7786 = vsyncadd (%p9862_p6), [#allocation33], 4294967264 }
 0x2d0   : > { %7788 = dma.done.wait (%p9863_p8), [#allocation36], 32   ;;  %p9864_p9 = pmov %p9853_p0 }
 0x2d1   : > { %p9865_p10 = pmov %p9853_p0 }
 0x2d2   : > { %7790 = vsyncadd (%p9864_p9), [#allocation36], 4294967264 }
 0x2d3   : > { %7792 = dma.done.wait (%p9865_p10), [#allocation39], 1024  }
 0x2d4   : > { %7794 = vsyncadd (%p9853_p0), [#allocation39], 4294966272  ;;  %p9866_p1 = pmov %p9853_p0 }
 0x2d5   : > { %p9867_p2 = pmov %p9853_p0 }
 0x2d6   : > { %7796 = dma.done.wait (%p9866_p1), [#allocation42], 1024  }
 0x2d7   : > { %7798 = vsyncadd (%p9867_p2), [#allocation42], 4294966272  ;;  %p9868_p4 = pmov %p9853_p0 }
 0x2d8   : > { %p9869_p5 = pmov %p9853_p0 }
 0x2d9   : > { %7800 = dma.done.wait (%p9868_p4), [#allocation45], 1024  }
 0x2da   : > { %7802 = vsyncadd (%p9869_p5), [#allocation45], 4294966272  ;;  %p9870_p12 = pmov %p9853_p0 }
 0x2db   : > { %p9871_p13 = pmov %p9853_p0 }
 0x2dc   : > { %7804 = dma.done.wait (%p9870_p12), [#allocation48], 1024  }
 0x2dd   : > { %7806 = vsyncadd (%p9871_p13), [#allocation48], 4294966272  ;;  %p9872_p3 = pmov %p9853_p0 }
 0x2de   : > { %p9873_p7 = pmov %p9853_p0 }
 0x2df   : > { %7808 = dma.done.wait (%p9872_p3), [#allocation51], 1024  }
 0x2e0   : > { %7810 = vsyncadd (%p9873_p7), [#allocation51], 4294966272  ;;  %p9874_p6 = pmov %p9853_p0 }
 0x2e1   : > { %p9875_p8 = pmov %p9853_p0 }
 0x2e2   : > { %7812 = dma.done.wait (%p9874_p6), [#allocation54], 1024  }
 0x2e3   : > { %7814 = vsyncadd (%p9875_p8), [#allocation54], 4294966272  ;;  %p9876_p9 = pmov %p9853_p0 }
 0x2e4   : > { %p9877_p10 = pmov %p9853_p0 }
 0x2e5   : > { %7816 = dma.done.wait (%p9876_p9), [#allocation57], 1024  }
 0x2e6   : > { %7818 = vsyncadd (%p9877_p10), [#allocation57], 4294966272 }
 0x2e7   : > { %7820 = dma.done.wait (%p9853_p0), [#allocation60], 512   ;;  %p9878_p1 = pmov %p9853_p0 }
 0x2e8   : > { %v2543_v0 = vld [vmem:[#allocation7 + $0x8] sm:$0xff]  ;;  %v2542_v1 = vld [vmem:[#allocation7] sm:$0xff]  ;;  %vm2548_vm0 = vcmask 130048   ;;  %v2481_v5 = vld [vmem:[%s8819_s1 + $0x18] sm:$0xff]  ;;  %vm3014_vm1 = vcmask 523264   ;;  %s9879_s9 = sld [smem:[#allocation92_spill]] }
 0x2e9   : > { %7822 = vsyncadd (%p9878_p1), [#allocation60], 4294966784  ;;  %2755 = vmatpush.msra.mxu0 %v2543_v0  ;;  %v2478_v2 = vld [vmem:[%s8819_s1] sm:$0xff]  ;;  %6149 = vmatpush.msra.mxu2 %v2543_v0  ;;  %v2479_v3 = vld [vmem:[%s8819_s1 + $0x8] sm:$0xff]  ;;  %s9880_s2 = sld [smem:[#allocation94_spill]]  ;;  %vm3251_vm3 = vcmask 1041409  }
 0x2ea   : > { %6148 = vmatpush.msra.mxu1 %v2543_v0  ;;  %6150 = vmatpush.msra.mxu3 %v2543_v0  ;;  %v2480_v4 = vld [vmem:[%s8819_s1 + $0x10] sm:$0xff]  ;;  %v2482_v6 = vld [vmem:[%s8819_s1 + $0x20] sm:$0xff]  ;;  %v2483_v7 = vld [vmem:[%s8819_s1 + $0x28] sm:$0xff]  ;;  %vm3253_vm4 = vcmask 1042434   ;;  %s9881_s0 = sld [smem:[#allocation95_spill]]  ;;  %vm3207_vm5 = vcmask 261120  }
 0x2eb   : > { %2756 = vmatpush.msra.mxu0 %v2542_v1  ;;  %6152 = vmatpush.msra.mxu2 %v2542_v1  ;;  %v2484_v8 = vld [vmem:[%s8819_s1 + $0x30] sm:$0xff]  ;;  %v2485_v9 = vld [vmem:[%s8819_s1 + $0x38] sm:$0xff]  ;;  %v2486_v10 = vld [vmem:[%s8819_s1 + $0x40] sm:$0xff]  ;;  %vm3255_vm6 = vcmask 1043459   ;;  %s9883_s15 = sld [smem:[#allocation88_spill]]  ;;  %vm3257_vm7 = vcmask 1044484  }
 0x2ec   : > { %5994 = vmatmul.msk.f32.vlgmr.msra.gmra.mxu0 %vm2548_vm0, %v2478_v2  ;;  %6151 = vmatpush.msra.mxu1 %v2542_v1  ;;  %v2520_v11 = vld [vmem:[%s8819_s1 + $0x150] sm:$0xff]  ;;  %v2487_v12 = vld [vmem:[%s8819_s1 + $0x48] sm:$0xff]  ;;  %v2521_v13 = vld [vmem:[%s8819_s1 + $0x158] sm:$0xff]  ;;  %vm3259_vm8 = vcmask 1045509   ;;  %vm3261_vm9 = vcmask 1046534   ;;  %vm3263_vm10 = vcmask 1047559  }
 0x2ed   : > { %6153 = vmatpush.msra.mxu3 %v2542_v1  ;;  %6036 = vmatmul.msk.f32.vlgmr.msra.gmra.mxu2 %vm2548_vm0, %v2520_v11  ;;  %v2488_v14 = vld [vmem:[%s8819_s1 + $0x50] sm:$0xff]  ;;  %v2511_v15 = vld [vmem:[%s8819_s1 + $0x108] sm:$0xff]  ;;  %v2522_v16 = vld [vmem:[%s8819_s1 + $0x160] sm:$0xff]  ;;  %vm3319_vm11 = vcmask 64512   ;;  %s9724_s11 = smov 120   ;;  %s9726_s7 = smov 112  }
 0x2ee   : > { %6027 = vmatmul.msk.f32.vlgmr.msra.gmra.mxu1 %vm2548_vm0, %v2511_v15  ;;  %v2489_v17 = vld [vmem:[%s8819_s1 + $0x58] sm:$0xff]  ;;  %v2512_v18 = vld [vmem:[%s8819_s1 + $0x110] sm:$0xff]  ;;  %v2523_v19 = vld [vmem:[%s8819_s1 + $0x168] sm:$0xff]  ;;  %s9728_s10 = smov 104   ;;  %s9884_s6 = sld [smem:[#allocation101_spill]]  ;;  %vm3594_vm12 = vcmask 195584  }
 0x2ef   : > { %v2490_v20 = vld [vmem:[%s8819_s1 + $0x60] sm:$0xff]  ;;  %v2513_v21 = vld [vmem:[%s8819_s1 + $0x118] sm:$0xff]  ;;  %v2524_v22 = vld [vmem:[%s8819_s1 + $0x170] sm:$0xff]  ;;  %s9885_s4 = sld [smem:[#allocation93_spill]]  ;;  %s9722_s5 = smov 8   ;;  %vm4941_vm13 = vcmask 57344  }
 0x2f0   : > { %v2491_v23 = vld [vmem:[%s8819_s1 + $0x68] sm:$0xff]  ;;  %v2514_v25 = vld [vmem:[%s8819_s1 + $0x120] sm:$0xff]  ;;  %v2525_v26 = vld [vmem:[%s8819_s1 + $0x178] sm:$0xff]  ;;  %s9882_s23 = smov %s9881_s0  ;;  %s9732_s12 = smov 16   ;;  %vm5417_vm14 = vcmask 516096  }
 0x2f1   : > { %v2531_v24 = vld [vmem:[%s8819_s1 + $0x1a8] sm:$0xff]  ;;  %v2492_v27 = vld [vmem:[%s8819_s1 + $0x70] sm:$0xff]  ;;  %v2526_v30 = vld [vmem:[%s8819_s1 + $0x180] sm:$0xff]  ;;  %s9902_s8 = sld [smem:[#allocation118_spill]] }
 0x2f2   : > { %6047 = vmatmul.msk.f32.vlgmr.msra.gmra.mxu3 %vm2548_vm0, %v2531_v24  ;;  %v2532_v28 = vld [vmem:[%s8819_s1 + $0x1b0] sm:$0xff]  ;;  %v2515_v29 = vld [vmem:[%s8819_s1 + $0x128] sm:$0xff]  ;;  %v2493_v31 = vld [vmem:[%s8819_s1 + $0x78] sm:$0xff] }
 0x2f3   : > { %v2533_v32 = vld [vmem:[%s8819_s1 + $0x1b8] sm:$0xff]  ;;  %v2516_v33 = vld [vmem:[%s8819_s1 + $0x130] sm:$0xff]  ;;  %v2527_v34 = vld [vmem:[%s8819_s1 + $0x188] sm:$0xff] }
 0x2f4   : > { %5995 = vmatmul.msk.f32.gmra.mxu0 %vm2548_vm0, %v2479_v3  ;;  %v2494_v36 = vld [vmem:[%s8819_s1 + $0x80] sm:$0xff]  ;;  %v2517_v38 = vld [vmem:[%s8819_s1 + $0x138] sm:$0xff]  ;;  %v2528_v39 = vld [vmem:[%s8819_s1 + $0x190] sm:$0xff] }
 0x2f5   : > { %6037 = vmatmul.msk.f32.gmra.mxu2 %vm2548_vm0, %v2521_v13  ;;  %v2534_v37 = vld [vmem:[%s8819_s1 + $0x1c0] sm:$0xff]  ;;  %v2495_v41 = vld [vmem:[%s8819_s1 + $0x88] sm:$0xff]  ;;  %v2529_v44 = vld [vmem:[%s8819_s1 + $0x198] sm:$0xff] }
 0x2f6   : > { %6028 = vmatmul.msk.f32.gmra.mxu1 %vm2548_vm0, %v2512_v18  ;;  %v2535_v42 = vld [vmem:[%s8819_s1 + $0x1c8] sm:$0xff]  ;;  %v2518_v43 = vld [vmem:[%s8819_s1 + $0x140] sm:$0xff]  ;;  %v2496_v46 = vld [vmem:[%s8819_s1 + $0x90] sm:$0xff] }
 0x2f7   : > { %v2536_v47 = vld [vmem:[%s8819_s1 + $0x1d0] sm:$0xff]  ;;  %v2519_v48 = vld [vmem:[%s8819_s1 + $0x148] sm:$0xff]  ;;  %v2530_v49 = vld [vmem:[%s8819_s1 + $0x1a0] sm:$0xff] }
 0x2f8   : > { %v2497_v51 = vld [vmem:[%s8819_s1 + $0x98] sm:$0xff]  ;;  %v2498_v54 = vld [vmem:[%s8819_s1 + $0xa0] sm:$0xff]  ;;  %v2499_v57 = vld [vmem:[%s8819_s1 + $0xa8] sm:$0xff] }
 0x2f9   : > { %v2537_v52 = vld [vmem:[%s8819_s1 + $0x1d8] sm:$0xff]  ;;  %v2538_v55 = vld [vmem:[%s8819_s1 + $0x1e0] sm:$0xff]  ;;  %v2539_v58 = vld [vmem:[%s8819_s1 + $0x1e8] sm:$0xff] }
 0x2fa   : > { %6048 = vmatmul.msk.f32.gmra.mxu3 %vm2548_vm0, %v2532_v28  ;;  %v2500_v60 = vld [vmem:[%s8819_s1 + $0xb0] sm:$0xff]  ;;  %v2501_v63 = vld [vmem:[%s8819_s1 + $0xb8] sm:$0xff]  ;;  %v2502_v2 = vld [vmem:[%s8819_s1 + $0xc0] sm:$0xff] }
 0x2fb   : > { %v2540_v61 = vld [vmem:[%s8819_s1 + $0x1f0] sm:$0xff]  ;;  %v2541_v0 = vld [vmem:[%s8819_s1 + $0x1f8] sm:$0xff]  ;;  %v9029_v3 = vld [vmem:[#allocation5] ss:$0 sm:$0xff] }
 0x2fc   : > { %5996 = vmatmul.msk.f32.gmra.mxu0 %vm2548_vm0, %v2480_v4  ;;  %v2504_v11 = vld [vmem:[%s8819_s1 + $0xd0] sm:$0xff] }
 0x2fd   : > { %6038 = vmatmul.msk.f32.gmra.mxu2 %vm2548_vm0, %v2522_v16 }
 0x2fe   : > { %6029 = vmatmul.msk.f32.gmra.mxu1 %vm2548_vm0, %v2513_v21 }
 0x302   : > { %6049 = vmatmul.msk.f32.gmra.mxu3 %vm2548_vm0, %v2533_v32  ;;  %v2507_v32 = vld [vmem:[%s8819_s1 + $0xe8] sm:$0xff] }
 0x304   : > { %5997 = vmatmul.msk.f32.gmra.mxu0 %vm2548_vm0, %v2481_v5  ;;  %v2503_v5 = vld [vmem:[%s8819_s1 + $0xc8] sm:$0xff] }
 0x305   : > { %6039 = vmatmul.msk.f32.gmra.mxu2 %vm2548_vm0, %v2523_v19 }
 0x306   : > { %6030 = vmatmul.msk.f32.gmra.mxu1 %vm2548_vm0, %v2514_v25 }
 0x30a   : > { %6050 = vmatmul.msk.f32.gmra.mxu3 %vm2548_vm0, %v2534_v37 }
 0x30c   : > { %5998 = vmatmul.msk.f32.gmra.mxu0 %vm2548_vm0, %v2482_v6 }
 0x30d   : > { %6040 = vmatmul.msk.f32.gmra.mxu2 %vm2548_vm0, %v2524_v22 }
 0x30e   : > { %6031 = vmatmul.msk.f32.gmra.mxu1 %vm2548_vm0, %v2515_v29 }
 0x312   : > { %6051 = vmatmul.msk.f32.gmra.mxu3 %vm2548_vm0, %v2535_v42 }
 0x314   : > { %5999 = vmatmul.msk.f32.gmra.mxu0 %vm2548_vm0, %v2483_v7 }
 0x315   : > { %6041 = vmatmul.msk.f32.gmra.mxu2 %vm2548_vm0, %v2525_v26  ;;  %v2506_v26 = vld [vmem:[%s8819_s1 + $0xe0] sm:$0xff] }
 0x316   : > { %6032 = vmatmul.msk.f32.gmra.mxu1 %vm2548_vm0, %v2516_v33 }
 0x31a   : > { %6052 = vmatmul.msk.f32.gmra.mxu3 %vm2548_vm0, %v2536_v47  ;;  %v2509_v47 = vld [vmem:[%s8819_s1 + $0xf8] sm:$0xff] }
 0x31c   : > { %6000 = vmatmul.msk.f32.gmra.mxu0 %vm2548_vm0, %v2484_v8 }
 0x31d   : > { %6042 = vmatmul.msk.f32.gmra.mxu2 %vm2548_vm0, %v2526_v30 }
 0x31e   : > { %6033 = vmatmul.msk.f32.gmra.mxu1 %vm2548_vm0, %v2517_v38 }
 0x322   : > { %6053 = vmatmul.msk.f32.gmra.mxu3 %vm2548_vm0, %v2537_v52 }
 0x324   : > { %6001 = vmatmul.msk.f32.gmra.mxu0 %vm2548_vm0, %v2485_v9 }
 0x325   : > { %6043 = vmatmul.msk.f32.gmra.mxu2 %vm2548_vm0, %v2527_v34 }
 0x326   : > { %6034 = vmatmul.msk.f32.gmra.mxu1 %vm2548_vm0, %v2518_v43 }
 0x32a   : > { %6054 = vmatmul.msk.f32.gmra.mxu3 %vm2548_vm0, %v2538_v55  ;;  %v2510_v55 = vld [vmem:[%s8819_s1 + $0x100] sm:$0xff] }
 0x32c   : > { %6002 = vmatmul.msk.f32.gmra.mxu0 %vm2548_vm0, %v2486_v10 }
 0x32d   : > { %6044 = vmatmul.msk.f32.gmra.mxu2 %vm2548_vm0, %v2528_v39  ;;  %v2508_v39 = vld [vmem:[%s8819_s1 + $0xf0] sm:$0xff] }
 0x32e   : > { %6035 = vmatmul.msk.f32.gmra.mxu1 %vm2548_vm0, %v2519_v48 }
 0x332   : > { %6055 = vmatmul.msk.f32.gmra.mxu3 %vm2548_vm0, %v2539_v58 }
 0x334   : > { %6003 = vmatmul.msk.f32.gmra.mxu0 %vm2548_vm0, %v2487_v12 }
 0x335   : > { %6045 = vmatmul.msk.f32.gmra.mxu2 %vm2548_vm0, %v2529_v44 }
 0x33a   : > { %6056 = vmatmul.msk.f32.gmra.mxu3 %vm2548_vm0, %v2540_v61 }
 0x33c   : > { %6004 = vmatmul.msk.f32.gmra.mxu0 %vm2548_vm0, %v2488_v14 }
 0x33d   : > { %6046 = vmatmul.msk.f32.gmra.mxu2 %vm2548_vm0, %v2530_v49 }
 0x342   : > { %6057 = vmatmul.msk.f32.gmra.mxu3 %vm2548_vm0, %v2541_v0 }
 0x344   : > { %6005 = vmatmul.msk.f32.gmra.mxu0 %vm2548_vm0, %v2489_v17 }
 0x34c   : > { %6006 = vmatmul.msk.f32.gmra.mxu0 %vm2548_vm0, %v2490_v20  ;;  %v2505_v20 = vld [vmem:[%s8819_s1 + $0xd8] sm:$0xff]  ;;  %s9886_s1 = sld [smem:[#allocation99_spill]] }
 0x354   : > { %6007 = vmatmul.msk.f32.gmra.mxu0 %vm2548_vm0, %v2491_v23 }
 0x35c   : > { %6008 = vmatmul.msk.f32.gmra.mxu0 %vm2548_vm0, %v2492_v27 }
 0x364   : > { %6009 = vmatmul.msk.f32.gmra.mxu0 %vm2548_vm0, %v2493_v31 }
 0x369   : > { %v8967_v35 = vpop.f32.mrf.mxu0 }
 0x36c   : > { %6010 = vmatmul.msk.f32.gmra.mxu0 %vm2548_vm0, %v2494_v36 }
 0x370   : > { %v9066_v58 = vpop.f32.mrf.mxu2 }
 0x371   : > { %v8977_v40 = vpop.f32.mrf.mxu0 }
 0x374   : > { %6011 = vmatmul.msk.f32.gmra.mxu0 %vm2548_vm0, %v2495_v41 }
 0x379   : > { %v8987_v45 = vpop.f32.mrf.mxu0 }
 0x37c   : > { %6012 = vmatmul.msk.f32.gmra.mxu0 %vm2548_vm0, %v2496_v46 }
 0x381   : > { %v8997_v50 = vpop.f32.mrf.mxu0 }
 0x384   : > { %6013 = vmatmul.msk.f32.gmra.mxu0 %vm2548_vm0, %v2497_v51 }
 0x389   : > { %v9003_v53 = vpop.f32.mrf.mxu0 }
 0x38c   : > { %6014 = vmatmul.msk.f32.gmra.mxu0 %vm2548_vm0, %v2498_v54 }
 0x391   : > { %v9009_v56 = vpop.f32.mrf.mxu0 }
 0x394   : > { %6015 = vmatmul.msk.f32.gmra.mxu0 %vm2548_vm0, %v2499_v57 }
 0x399   : > { %v9015_v59 = vpop.f32.mrf.mxu0 }
 0x39c   : > { %6016 = vmatmul.msk.f32.gmra.mxu0 %vm2548_vm0, %v2500_v60 }
 0x3a1   : > { %v9021_v62 = vpop.f32.mrf.mxu0 }
 0x3a4   : > { %6017 = vmatmul.msk.f32.gmra.mxu0 %vm2548_vm0, %v2501_v63 }
 0x3a9   : > { %v2782_v1 = vpop.f32.mrf.mxu0 }
 0x3aa   : > { %v2783_v7 = vadd.f32 %v9029_v3, %v2782_v1 }
 0x3ac   : > { %6018 = vmatmul.msk.f32.gmra.mxu0 %vm2548_vm0, %v2502_v2  ;;  %v2958_v9 = vmax.f32 %v2783_v7, 0.0  ;;  %v9073_v7 = vpop.f32.mrf.mxu2 }
 0x3ae   : > { %v3036_v14 = vsel %vm3014_vm1, %v2958_v9, 0.0 }
 0x3b1   : > { %v2785_v4 = vpop.f32.mrf.mxu0 }
 0x3b2   : > { %v2786_v6 = vadd.f32 %v9029_v3, %v2785_v4 }
 0x3b4   : > { %6019 = vmatmul.msk.f32.gmra.mxu0 %vm2548_vm0, %v2503_v5  ;;  %v2959_v8 = vmax.f32 %v2786_v6, 0.0  ;;  %v9071_v5 = vpop.f32.mrf.mxu1 }
 0x3b6   : > { %v3037_v12 = vsel %vm3014_vm1, %v2959_v8, 0.0 }
 0x3b7   : > { %v3038_v16 = vadd.f32 %v3037_v12, %v3036_v14 }
 0x3b9   : > { %v2788_v10 = vpop.f32.mrf.mxu0 }
 0x3ba   : > { %v2789_v13 = vadd.f32 %v9029_v3, %v2788_v10  ;;  %v9076_v10 = vpop.f32.mrf.mxu3 }
 0x3bc   : > { %v2960_v15 = vmax.f32 %v2789_v13, 0.0  ;;  %6020 = vmatmul.msk.f32.gmra.mxu0 %vm2548_vm0, %v2504_v11  ;;  %v2762_v13 = vadd.f32 %v9029_v3, %v8977_v40 }
 0x3be   : > { %v3039_v17 = vsel %vm3014_vm1, %v2960_v15, 0.0  ;;  %v9081_v15 = vpop.f32.mrf.mxu1 }
 0x3bf   : > { %v3040_v18 = vadd.f32 %v3039_v17, %v3038_v16  ;;  %v2759_v17 = vadd.f32 %v9029_v3, %v8967_v35 }
 0x3c1   : > { %v2791_v19 = vpop.f32.mrf.mxu0 }
 0x3c2   : > { %v2792_v21 = vadd.f32 %v9029_v3, %v2791_v19  ;;  %v9088_v19 = vpop.f32.mrf.mxu2 }
 0x3c4   : > { %v2961_v22 = vmax.f32 %v2792_v21, 0.0  ;;  %6021 = vmatmul.msk.f32.gmra.mxu0 %vm2548_vm0, %v2505_v20  ;;  %v2951_v21 = vmax.f32 %v2762_v13, 0.0 }
 0x3c6   : > { %v3041_v23 = vsel %vm3014_vm1, %v2961_v22, 0.0  ;;  %v2768_v22 = vadd.f32 %v9029_v3, %v8997_v50  ;;  %v3016_v35 = vsel %vm3014_vm1, %v2951_v21, 0.0 }
 0x3c7   : > { %v3042_v24 = vadd.f32 %v3041_v23, %v3040_v18  ;;  %v2765_v18 = vadd.f32 %v9029_v3, %v8987_v45  ;;  %v2950_v23 = vmax.f32 %v2759_v17, 0.0 }
 0x3c8   : > { %v2953_v45 = vmax.f32 %v2768_v22, 0.0  ;;  %v3238_v22 = vld [vmem:[%s9879_s9 + $0x38] sm:$0xff] }
 0x3c9   : > { %v2794_v25 = vpop.f32.mrf.mxu0  ;;  %v3015_v50 = vsel %vm3014_vm1, %v2950_v23, 0.0  ;;  %3275 = vmatpush.msrb.mxu2 %v3238_v22 }
 0x3ca   : > { %v2795_v27 = vadd.f32 %v9029_v3, %v2794_v25  ;;  %v2771_v25 = vadd.f32 %v9029_v3, %v9003_v53  ;;  %v2777_v53 = vadd.f32 %v9029_v3, %v9015_v59 }
 0x3cc   : > { %v2962_v28 = vmax.f32 %v2795_v27, 0.0  ;;  %6022 = vmatmul.msk.f32.gmra.mxu0 %vm2548_vm0, %v2506_v26  ;;  %v9095_v27 = vpop.f32.mrf.mxu3 }
 0x3ce   : > { %v3043_v29 = vsel %vm3014_vm1, %v2962_v28, 0.0  ;;  %v2774_v28 = vadd.f32 %v9029_v3, %v9009_v56  ;;  %v2780_v56 = vadd.f32 %v9029_v3, %v9021_v62 }
 0x3cf   : > { %v3044_v30 = vadd.f32 %v3043_v29, %v3042_v24  ;;  %v2952_v24 = vmax.f32 %v2765_v18, 0.0 }
 0x3d1   : > { %v2797_v31 = vpop.f32.mrf.mxu0 }
 0x3d2   : > { %v2798_v33 = vadd.f32 %v9029_v3, %v2797_v31  ;;  %v3018_v31 = vsel %vm3014_vm1, %v2952_v24, 0.0 }
 0x3d4   : > { %v2963_v34 = vmax.f32 %v2798_v33, 0.0  ;;  %6023 = vmatmul.msk.f32.gmra.mxu0 %vm2548_vm0, %v2507_v32  ;;  %v2954_v32 = vmax.f32 %v2771_v25, 0.0  ;;  %v3017_v33 = vadd.f32 %v3016_v35, %v3015_v50 }
 0x3d6   : > { %v3045_v36 = vsel %vm3014_vm1, %v2963_v34, 0.0  ;;  %v9105_v34 = vpop.f32.mrf.mxu1 }
 0x3d7   : > { %v3046_v37 = vadd.f32 %v3045_v36, %v3044_v30 }
 0x3d9   : > { %v2800_v38 = vpop.f32.mrf.mxu0 }
 0x3da   : > { %v2801_v41 = vadd.f32 %v9029_v3, %v2800_v38  ;;  %v2955_v38 = vmax.f32 %v2774_v28, 0.0 }
 0x3dc   : > { %v2964_v42 = vmax.f32 %v2801_v41, 0.0  ;;  %6024 = vmatmul.msk.f32.gmra.mxu0 %vm2548_vm0, %v2508_v39  ;;  %v3019_v39 = vadd.f32 %v3018_v31, %v3017_v33  ;;  %v9110_v41 = vpop.f32.mrf.mxu2 }
 0x3de   : > { %v3047_v43 = vsel %vm3014_vm1, %v2964_v42, 0.0 }
 0x3df   : > { %v3048_v44 = vadd.f32 %v3047_v43, %v3046_v37  ;;  %v3020_v37 = vsel %vm3014_vm1, %v2953_v45, 0.0  ;;  %v3022_v43 = vsel %vm3014_vm1, %v2954_v32, 0.0 }
 0x3e0   : > { %v3021_v59 = vadd.f32 %v3020_v37, %v3019_v39 }
 0x3e1   : > { %v2803_v46 = vpop.f32.mrf.mxu0 }
 0x3e2   : > { %v2804_v48 = vadd.f32 %v9029_v3, %v2803_v46 }
 0x3e4   : > { %v2965_v49 = vmax.f32 %v2804_v48, 0.0  ;;  %6025 = vmatmul.msk.f32.gmra.mxu0 %vm2548_vm0, %v2509_v47  ;;  %v3024_v47 = vsel %vm3014_vm1, %v2955_v38, 0.0  ;;  %v2957_v48 = vmax.f32 %v2780_v56, 0.0 }
 0x3e6   : > { %v3049_v51 = vsel %vm3014_vm1, %v2965_v49, 0.0 }
 0x3e7   : > { %v9061_v52 = vadd.f32 %v3049_v51, %v3048_v44  ;;  %v2956_v44 = vmax.f32 %v2777_v53, 0.0  ;;  %v3023_v51 = vadd.f32 %v3022_v43, %v3021_v59 }
 0x3e9   : > { %v2806_v54 = vpop.f32.mrf.mxu0  ;;  %v3026_v62 = vsel %vm3014_vm1, %v2956_v44, 0.0 }
 0x3ea   : > { %v2807_v57 = vadd.f32 %v9029_v3, %v2806_v54  ;;  %v9115_v54 = vpop.f32.mrf.mxu3 }
 0x3ec   : > { %6026 = vmatmul.msk.f32.gmra.mxu0 %vm2548_vm0, %v2510_v55  ;;  %v2966_v61 = vmax.f32 %v2807_v57, 0.0  ;;  %v3025_v57 = vadd.f32 %v3024_v47, %v3023_v51 }
 0x3ee   : > { %v3057_v1 = vsel %vm3014_vm1, %v2966_v61, 0.0  ;;  %v3028_v61 = vsel %vm3014_vm1, %v2957_v48, 0.0  ;;  %v3237_v48 = vld [vmem:[%s9879_s9 + $0x30] sm:$0xff] }
 0x3ef   : > { %3276 = vmatpush.msrb.mxu2 %v3237_v48 }
 0x3f1   : > { %v2809_v60 = vpop.f32.mrf.mxu0 }
 0x3f2   : > { %v2810_v63 = vadd.f32 %v9029_v3, %v2809_v60 }
 0x3f4   : > { %v2967_v0 = vmax.f32 %v2810_v63, 0.0  ;;  %v3027_v63 = vadd.f32 %v3026_v62, %v3025_v57 }
 0x3f6   : > { %v3058_v2 = vsel %vm3014_vm1, %v2967_v0, 0.0  ;;  %v9120_v0 = vpop.f32.mrf.mxu1 }
 0x3f7   : > { %v3059_v4 = vadd.f32 %v3058_v2, %v3057_v1 }
 0x3f9   : > { %v2812_v6 = vpop.f32.mrf.mxu0 }
 0x3fa   : > { %v2813_v8 = vadd.f32 %v9029_v3, %v2812_v6  ;;  %v7946_v6 = vmov 64.0  }
 0x3fb   : > { %6551 = vrcp.f32 %v7946_v6 }
 0x3fc   : > { %v2968_v9 = vmax.f32 %v2813_v8, 0.0  ;;  %v9123_v8 = vpop.f32.mrf.mxu2 }
 0x3fe   : > { %v3060_v11 = vsel %vm3014_vm1, %v2968_v9, 0.0  ;;  %v9132_v23 = vpop.f32.mrf.mxu1 }
 0x3ff   : > { %v3061_v12 = vadd.f32 %v3060_v11, %v3059_v4  ;;  %v3029_v4 = vadd.f32 %v3028_v61, %v3027_v63  ;;  %v3051_v11 = vrot.slane %v9061_v52, 4 }
 0x401   : > { %v2815_v14 = vpop.f32.mrf.mxu0  ;;  %v3030_v13 = vrot.slane %v3029_v4, 4  ;;  %v6552_v17 = vpop.eup %6551  ;;  %v3052_v18 = vadd.f32 %v3051_v11, %v9061_v52 }
 0x402   : > { %v2816_v16 = vadd.f32 %v9029_v3, %v2815_v14  ;;  %v9127_v14 = vpop.f32.mrf.mxu3  ;;  %v3184_v24 = vmul.f32 64.0, %v6552_v17  ;;  %vm3188_vm2 = vweird.f32 %v6552_v17 }
 0x404   : > { %v2969_v20 = vmax.f32 %v2816_v16, 0.0  ;;  %v9134_v35 = vpop.f32.mrf.mxu2 }
 0x406   : > { %v3062_v40 = vsel %vm3014_vm1, %v2969_v20, 0.0  ;;  %v9140_v56 = vpop.f32.mrf.mxu1 }
 0x407   : > { %v3063_v26 = vadd.f32 %v3062_v40, %v3061_v12  ;;  %v3031_v40 = vadd.f32 %v3030_v13, %v3029_v4 }
 0x409   : > { %v2818_v29 = vpop.f32.mrf.mxu0  ;;  %v3032_v28 = vrot.slane %v3031_v40, 2 }
 0x40a   : > { %v2819_v30 = vadd.f32 %v9029_v3, %v2818_v29  ;;  %v2929_v52 = vpop.f32.mrf.mxu3 }
 0x40b   : > { %v3033_v53 = vadd.f32 %v3032_v28, %v3031_v40  ;;  %v2885_v40 = vadd.f32 %v9029_v3, %v9066_v58  ;;  %v2927_v58 = vadd.f32 %v9029_v3, %v9127_v14 }
 0x40c   : > { %v2970_v36 = vmax.f32 %v2819_v30, 0.0  ;;  %v3185_v30 = vsub.f32 1.0, %v3184_v24  ;;  %v2902_v43 = vpop.f32.mrf.mxu2 }
 0x40d   : > { %v2903_v28 = vadd.f32 %v9029_v3, %v2902_v43 }
 0x40e   : > { %v3064_v42 = vsel %vm3014_vm1, %v2970_v36, 0.0  ;;  %v3186_v33 = vmul.f32 %v6552_v17, %v3185_v30 }
 0x40f   : > { %v3065_v46 = vadd.f32 %v3064_v42, %v3063_v26  ;;  %v3053_v26 = vrot.slane %v3052_v18, 2  ;;  %v3034_v42 = vrot.slane %v3033_v53, 1 }
 0x410   : > { %v3187_v44 = vadd.f32 %v6552_v17, %v3186_v33 }
 0x411   : > { %v2821_v49 = vpop.f32.mrf.mxu0  ;;  %v3054_v50 = vadd.f32 %v3053_v26, %v3052_v18  ;;  %v3235_v18 = vld [vmem:[%s9879_s9 + $0x20] sm:$0xff] }
 0x412   : > { %v2822_v55 = vadd.f32 %v9029_v3, %v2821_v49  ;;  %v3035_v49 = vadd.f32 %v3034_v42, %v3033_v53  ;;  %v2932_v51 = vpop.f32.mrf.mxu3 }
 0x413   : > { %v3055_v38 = vrot.slane %v3054_v50, 1 }
 0x414   : > { %v2971_v60 = vmax.f32 %v2822_v55, 0.0  ;;  %v9143_v55 = vsel %vm3188_vm2, %v6552_v17, %v3187_v44  ;;  %v2905_v6 = vpop.f32.mrf.mxu2  ;;  %v3202_v17 = vld [vmem:[%s9880_s2 + $0x18] sm:$0xff] }
 0x415   : > { %v3056_v59 = vadd.f32 %v3055_v38, %v3054_v50  ;;  %v3190_v63 = vmul.f32 %v9143_v55, %v3035_v49  ;;  %3223 = vmatpush.msrb.mxu1 %v3202_v17 }
 0x416   : > { %v3066_v1 = vsel %vm3014_vm1, %v2971_v60, 0.0 }
 0x417   : > { %v3067_v2 = vadd.f32 %v3066_v1, %v3065_v46  ;;  %v3191_v60 = vmul.f32 %v9143_v55, %v3056_v59  ;;  %v9147_v1 = vpop.f32.mrf.mxu1 }
 0x419   : > { %v2824_v9 = vpop.f32.mrf.mxu0  ;;  %v3252_v4 = vsel %vm3251_vm3, %v3191_v60, %v3190_v63 }
 0x41a   : > { %v2825_v12 = vadd.f32 %v9029_v3, %v2824_v9  ;;  %v3236_v9 = vld [vmem:[%s9879_s9 + $0x28] sm:$0xff]  ;;  %v2935_v13 = vpop.f32.mrf.mxu3 }
 0x41b   : > { %3277 = vmatpush.msrb.mxu2 %v3236_v9  ;;  %v2936_v17 = vadd.f32 %v9029_v3, %v2935_v13 }
 0x41c   : > { %v2972_v16 = vmax.f32 %v2825_v12, 0.0 }
 0x41d   : > { %3278 = vmatpush.msrb.mxu2 %v3235_v18 }
 0x41e   : > { %v3068_v20 = vsel %vm3014_vm1, %v2972_v16, 0.0 }
 0x41f   : > { %v3069_v21 = vadd.f32 %v3068_v20, %v3067_v2  ;;  %v2878_v16 = vpop.f32.mrf.mxu1  ;;  %v2908_v20 = vpop.f32.mrf.mxu2 }
 0x420   : > { %v2879_v50 = vadd.f32 %v9029_v3, %v2878_v16 }
 0x421   : > { %v2827_v25 = vpop.f32.mrf.mxu0 }
 0x422   : > { %v2828_v45 = vadd.f32 %v9029_v3, %v2827_v25  ;;  %v2938_v22 = vpop.f32.mrf.mxu3  ;;  %v2888_v25 = vadd.f32 %v9029_v3, %v9073_v7  ;;  %v2930_v7 = vadd.f32 %v9029_v3, %v2929_v52  ;;  %v2990_v42 = vmax.f32 %v2879_v50, 0.0 }
 0x423   : > { %v2933_v52 = vadd.f32 %v9029_v3, %v2932_v51  ;;  %v9187_v51 = vadd.f32 %v9029_v3, %v9110_v41  ;;  %v9201_v41 = vadd.f32 %v9029_v3, %v9076_v10 }
 0x424   : > { %v2973_v29 = vmax.f32 %v2828_v45, 0.0  ;;  %v2891_v45 = vadd.f32 %v9029_v3, %v9088_v19  ;;  %v2993_v53 = vmax.f32 %v2888_v25, 0.0  ;;  %v3007_v14 = vmax.f32 %v2930_v7, 0.0 }
 0x426   : > { %v3070_v31 = vsel %vm3014_vm1, %v2973_v29, 0.0  ;;  %v2906_v29 = vadd.f32 %v9029_v3, %v2905_v6  ;;  %v2994_v33 = vmax.f32 %v2891_v45, 0.0  ;;  %v3125_v59 = vsel %vm3014_vm1, %v2993_v53, 0.0 }
 0x427   : > { %v3071_v32 = vadd.f32 %v3070_v31, %v3069_v21  ;;  %v2881_v24 = vpop.f32.mrf.mxu1  ;;  %v2911_v30 = vpop.f32.mrf.mxu2  ;;  %v9191_v6 = vadd.f32 %v9029_v3, %v9123_v8  ;;  %v3163_v18 = vsel %vm3014_vm1, %v3007_v14, 0.0 }
 0x428   : > { %v2882_v31 = vadd.f32 %v9029_v3, %v2881_v24  ;;  %v2999_v38 = vmax.f32 %v2906_v29, 0.0  ;;  %v9177_v49 = vsel %vm3014_vm1, %v2994_v33, 0.0  ;;  %v9212_v33 = vadd.f32 %v9029_v3, %v9134_v35 }
 0x429   : > { %v3072_v36 = vrot.slane %v3071_v32, 4  ;;  %v9138_v37 = vpop.f32.mrf.mxu0 }
 0x42a   : > { %v2941_v19 = vpop.f32.mrf.mxu3  ;;  %v2991_v43 = vmax.f32 %v2882_v31, 0.0  ;;  %v3142_v60 = vsel %vm3014_vm1, %v2999_v38, 0.0 }
 0x42b   : > { %v3073_v39 = vadd.f32 %v3072_v36, %v3071_v32  ;;  %v2992_v32 = vmax.f32 %v2885_v40, 0.0  ;;  %v2998_v36 = vmax.f32 %v2903_v28, 0.0  ;;  %v2831_v40 = vadd.f32 %v9029_v3, %v9138_v37 }
 0x42c   : > { %v3009_v37 = vmax.f32 %v2936_v17, 0.0 }
 0x42d   : > { %v3074_v46 = vrot.slane %v3073_v39, 2  ;;  %v3123_v44 = vsel %vm3014_vm1, %v2992_v32, 0.0  ;;  %v2974_v32 = vmax.f32 %v2831_v40, 0.0 }
 0x42e   : > { %v3167_v14 = vsel %vm3014_vm1, %v3009_v37, 0.0  ;;  %v3293_v37 = vld [vmem:[%s9882_s23 + $0x30] sm:$0xff] }
 0x42f   : > { %v3075_v47 = vadd.f32 %v3074_v46, %v3073_v39  ;;  %v2909_v39 = vadd.f32 %v9029_v3, %v2908_v20  ;;  %v3006_v46 = vmax.f32 %v2927_v58, 0.0  ;;  %v2914_v16 = vpop.f32.mrf.mxu2  ;;  %v3008_v20 = vmax.f32 %v2933_v52, 0.0 }
 0x430   : > { %v2915_v28 = vadd.f32 %v9029_v3, %v2914_v16  ;;  %v2942_v52 = vadd.f32 %v9029_v3, %v2941_v19  ;;  %v3078_v35 = vsel %vm3014_vm1, %v2974_v32, 0.0 }
 0x431   : > { %v3076_v62 = vrot.slane %v3075_v47, 1  ;;  %v2833_v57 = vpop.f32.mrf.mxu0  ;;  %v3000_v63 = vmax.f32 %v2909_v39, 0.0  ;;  %v3162_v9 = vsel %vm3014_vm1, %v3006_v46, 0.0  ;;  %v3165_v10 = vsel %vm3014_vm1, %v3008_v20, 0.0 }
 0x432   : > { %v3164_v50 = vadd.f32 %v3163_v18, %v3162_v9  ;;  %v2944_v31 = vpop.f32.mrf.mxu3  ;;  %v3002_v39 = vmax.f32 %v2915_v28, 0.0  ;;  %v3294_v9 = vld [vmem:[%s9881_s0 + $0x38] sm:$0xff]  ;;  %s9730_s0 = smov 24  }
 0x433   : > { %v3077_v61 = vadd.f32 %v3076_v62, %v3075_v47  ;;  %v9173_v47 = vadd.f32 %v9029_v3, %v9071_v5  ;;  %v3141_v62 = vsel %vm3014_vm1, %v2998_v36, 0.0  ;;  %v2834_v5 = vadd.f32 %v9029_v3, %v2833_v57  ;;  %3307 = vmatpush.msrb.mxu3 %v3294_v9 }
 0x434   : > { %v3143_v24 = vadd.f32 %v3142_v60, %v3141_v62  ;;  %v3144_v45 = vsel %vm3014_vm1, %v3000_v63, 0.0  ;;  %v3166_v46 = vadd.f32 %v3165_v10, %v3164_v50  ;;  %v3003_v63 = vmax.f32 %v9201_v41, 0.0  ;;  %v3234_v41 = vld [vmem:[%s9879_s9 + $0x18] sm:$0xff]  ;;  %v3200_v50 = vld [vmem:[%s9880_s2 + $0x8] sm:$0xff] }
 0x435   : > { %v3192_v2 = vmul.f32 %v9143_v55, %v3077_v61  ;;  %v2912_v61 = vadd.f32 %v9029_v3, %v2911_v30  ;;  %v2975_v13 = vmax.f32 %v2834_v5, 0.0  ;;  %v2995_v30 = vmax.f32 %v9187_v51, 0.0  ;;  %3279 = vmatpush.msrb.mxu2 %v3234_v41  ;;  %3308 = vmatpush.msrb.mxu3 %v3293_v37 }
 0x436   : > { %v3145_v36 = vadd.f32 %v3144_v45, %v3143_v24  ;;  %v3148_v16 = vsel %vm3014_vm1, %v3002_v39, 0.0  ;;  %v3168_v17 = vadd.f32 %v3167_v14, %v3166_v46  ;;  %v2945_v20 = vadd.f32 %v9029_v3, %v2944_v31  ;;  %v3201_v24 = vld [vmem:[%s9880_s2 + $0x10] sm:$0xff] }
 0x437   : > { %v9151_v11 = vsel %vm3253_vm4, %v3192_v2, %v3252_v4  ;;  %v3120_v2 = vsel %vm3014_vm1, %v2990_v42, 0.0  ;;  %v3121_v4 = vsel %vm3014_vm1, %v2991_v43, 0.0  ;;  %v3001_v8 = vmax.f32 %v2912_v61, 0.0  ;;  %3224 = vmatpush.msrb.mxu1 %v3201_v24 }
 0x438   : > { %v3122_v25 = vadd.f32 %v3121_v4, %v3120_v2  ;;  %v3079_v42 = vsel %vm3014_vm1, %v2975_v13, 0.0  ;;  %v2996_v61 = vmax.f32 %v9191_v6, 0.0  ;;  %v2921_v4 = vadd.f32 %v9029_v3, %v9095_v27 }
 0x439   : > { %v2836_v12 = vpop.f32.mrf.mxu0  ;;  %3225 = vmatpush.msrb.mxu1 %v3200_v50  ;;  %v3012_v39 = vmax.f32 %v2945_v20, 0.0  ;;  %v3198_v50 = vld [vmem:[#allocation8] sm:$0xff] }
 0x43a   : > { %v2837_v57 = vadd.f32 %v9029_v3, %v2836_v12  ;;  %v2939_v12 = vadd.f32 %v9029_v3, %v2938_v22  ;;  %v3124_v38 = vadd.f32 %v3123_v44, %v3122_v25  ;;  %v3129_v25 = vsel %vm3014_vm1, %v2995_v30, 0.0  ;;  %v2947_v13 = vpop.f32.mrf.mxu3  ;;  %v3292_v30 = vld [vmem:[%s9882_s23 + $0x28] sm:$0xff] }
 0x43b   : > { %v3004_v31 = vmax.f32 %v2921_v4, 0.0  ;;  %3309 = vmatpush.msrb.mxu3 %v3292_v30  ;;  %v3289_v4 = vld [vmem:[%s9882_s23 + $0x10] sm:$0xff]  ;;  %v2876_v30 = vadd.f32 %v9029_v3, %v9147_v1 }
 0x43c   : > { %v2976_v58 = vmax.f32 %v2837_v57, 0.0  ;;  %v3126_v2 = vadd.f32 %v3125_v59, %v3124_v38  ;;  %v3011_v59 = vmax.f32 %v2942_v52, 0.0  ;;  %v3131_v52 = vsel %vm3014_vm1, %v2996_v61, 0.0 }
 0x43d   : > { %v3173_v61 = vsel %vm3014_vm1, %v3012_v39, 0.0 }
 0x43e   : > { %v3081_v62 = vsel %vm3014_vm1, %v2976_v58, 0.0  ;;  %v3128_v45 = vadd.f32 %v9177_v49, %v3126_v2  ;;  %v3232_v58 = vld [vmem:[%s9879_s9 + $0x8] sm:$0xff]  ;;  %v2924_v49 = vadd.f32 %v9029_v3, %v9115_v54  ;;  %v3171_v38 = vsel %vm3014_vm1, %v3011_v59, 0.0 }
 0x43f   : > { %v2861_v54 = vadd.f32 %v9029_v3, %v9081_v15  ;;  %v2983_v15 = vmax.f32 %v9173_v47, 0.0 }
 0x440   : > { %v3130_v46 = vadd.f32 %v3129_v25, %v3128_v45 }
 0x441   : > { %v2839_v21 = vpop.f32.mrf.mxu0  ;;  %v2984_v59 = vmax.f32 %v2861_v54, 0.0 }
 0x442   : > { %v2840_v29 = vadd.f32 %v9029_v3, %v2839_v21  ;;  %v3146_v21 = vsel %vm3014_vm1, %v3001_v8, 0.0  ;;  %v3233_v8 = vld [vmem:[%s9879_s9 + $0x10] sm:$0xff] }
 0x443   : > { %v3147_v5 = vadd.f32 %v3146_v21, %v3145_v36  ;;  %3280 = vmatpush.msrb.mxu2 %v3233_v8  ;;  %v3291_v21 = vld [vmem:[%s9882_s23 + $0x20] sm:$0xff]  ;;  %v3102_v37 = vsel %vm3014_vm1, %v2984_v59, 0.0 }
 0x444   : > { %v2977_v22 = vmax.f32 %v2840_v29, 0.0  ;;  %3310 = vmatpush.msrb.mxu3 %v3291_v21 }
 0x445   : > { %v3149_v10 = vadd.f32 %v3148_v16, %v3147_v5  ;;  %3281 = vmatpush.msrb.mxu2 %v3232_v58  ;;  %v2864_v5 = vadd.f32 %v9029_v3, %v9105_v34 }
 0x446   : > { %v3083_v19 = vsel %vm3014_vm1, %v2977_v22, 0.0 }
 0x447   : > { %v2985_v41 = vmax.f32 %v2864_v5, 0.0 }
 0x449   : > { %v2842_v26 = vpop.f32.mrf.mxu0 }
 0x44a   : > { %v2843_v53 = vadd.f32 %v9029_v3, %v2842_v26  ;;  %v3010_v26 = vmax.f32 %v2939_v12, 0.0  ;;  %v3150_v12 = vsel %vm3014_vm1, %v3003_v63, 0.0  ;;  %v3005_v63 = vmax.f32 %v2924_v49, 0.0 }
 0x44c   : > { %v2978_v60 = vmax.f32 %v2843_v53, 0.0  ;;  %v3169_v6 = vsel %vm3014_vm1, %v3010_v26, 0.0  ;;  %v3290_v26 = vld [vmem:[%s9882_s23 + $0x18] sm:$0xff]  ;;  %v3154_v34 = vsel %vm3014_vm1, %v3005_v63, 0.0 }
 0x44d   : > { %v3170_v53 = vadd.f32 %v3169_v6, %v3168_v17  ;;  %3311 = vmatpush.msrb.mxu3 %v3290_v26  ;;  %v3288_v17 = vld [vmem:[%s9882_s23 + $0x8] sm:$0xff]  ;;  %v2867_v6 = vadd.f32 %v9029_v3, %v9120_v0  ;;  %v2870_v0 = vadd.f32 %v9029_v3, %v9132_v23  ;;  %v3104_v23 = vsel %vm3014_vm1, %v2985_v41, 0.0 }
 0x44e   : > { %v3085_v27 = vsel %vm3014_vm1, %v2978_v60, 0.0 }
 0x44f   : > { %v3172_v2 = vadd.f32 %v3171_v38, %v3170_v53  ;;  %3312 = vmatpush.msrb.mxu3 %v3289_v4  ;;  %v2987_v58 = vmax.f32 %v2870_v0, 0.0 }
 0x451   : > { %v2845_v48 = vpop.f32.mrf.mxu0  ;;  %v3174_v20 = vadd.f32 %v3173_v61, %v3172_v2  ;;  %3313 = vmatpush.msrb.mxu3 %v3288_v17 }
 0x452   : > { %v2846_v43 = vadd.f32 %v9029_v3, %v2845_v48  ;;  %v3080_v48 = vadd.f32 %v3079_v42, %v3078_v35  ;;  %v2948_v42 = vadd.f32 %v9029_v3, %v2947_v13  ;;  %v2997_v35 = vmax.f32 %v9212_v33, 0.0 }
 0x454   : > { %v2979_v51 = vmax.f32 %v2846_v43, 0.0  ;;  %v3082_v18 = vadd.f32 %v3081_v62, %v3080_v48  ;;  %v3231_v43 = vld [vmem:[%s9879_s9] sm:$0xff]  ;;  %v3151_v62 = vadd.f32 %v3150_v12, %v3149_v10  ;;  %v3013_v33 = vmax.f32 %v2948_v42, 0.0 }
 0x455   : > { %3282 = vmatpush.msrb.mxu2 %v3231_v43  ;;  %v2986_v12 = vmax.f32 %v2867_v6, 0.0  ;;  %v3108_v42 = vsel %vm3014_vm1, %v2987_v58, 0.0 }
 0x456   : > { %v3084_v28 = vadd.f32 %v3083_v19, %v3082_v18  ;;  %v3087_v32 = vsel %vm3014_vm1, %v2979_v51, 0.0  ;;  %v3132_v51 = vadd.f32 %v3131_v52, %v3130_v46  ;;  %v3133_v18 = vsel %vm3014_vm1, %v2997_v35, 0.0 }
 0x457   : > { %v3175_v24 = vsel %vm3014_vm1, %v3013_v33, 0.0  ;;  %v3106_v21 = vsel %vm3014_vm1, %v2986_v12, 0.0 }
 0x458   : > { %v3134_v8 = vadd.f32 %v3133_v18, %v3132_v51  ;;  %v3176_v10 = vadd.f32 %v3175_v24, %v3174_v20 }
 0x459   : > { %v2848_v7 = vpop.f32.mrf.mxu0 }
 0x45a   : > { %v2849_v44 = vadd.f32 %v9029_v3, %v2848_v7  ;;  %v3086_v7 = vadd.f32 %v3085_v27, %v3084_v28  ;;  %v3135_v49 = vrot.slane %v3134_v8, 4  ;;  %v3177_v39 = vrot.slane %v3176_v10, 4 }
 0x45c   : > { %v2980_v40 = vmax.f32 %v2849_v44, 0.0  ;;  %v3088_v14 = vadd.f32 %v3087_v32, %v3086_v7  ;;  %v3152_v44 = vsel %vm3014_vm1, %v3004_v31, 0.0  ;;  %v2873_v31 = vadd.f32 %v9029_v3, %v9140_v56 }
 0x45d   : > { %v3153_v47 = vadd.f32 %v3152_v44, %v3151_v62  ;;  %v3136_v54 = vadd.f32 %v3135_v49, %v3134_v8  ;;  %v3178_v52 = vadd.f32 %v3177_v39, %v3176_v10 }
 0x45e   : > { %v3089_v22 = vsel %vm3014_vm1, %v2980_v40, 0.0  ;;  %v3287_v40 = vld [vmem:[%s9882_s23] sm:$0xff]  ;;  %v2988_v38 = vmax.f32 %v2873_v31, 0.0 }
 0x45f   : > { %v3090_v48 = vadd.f32 %v3089_v22, %v3088_v14  ;;  %v3155_v28 = vadd.f32 %v3154_v34, %v3153_v47  ;;  %3314 = vmatpush.msrb.mxu3 %v3287_v40  ;;  %v2989_v22 = vmax.f32 %v2876_v30, 0.0  ;;  %v3137_v62 = vrot.slane %v3136_v54, 2 }
 0x460   : > { %v3110_v26 = vsel %vm3014_vm1, %v2988_v38, 0.0  ;;  %v3179_v63 = vrot.slane %v3178_v52, 2 }
 0x461   : > { %v2851_v57 = vpop.f32.mrf.mxu0  ;;  %v3156_v7 = vrot.slane %v3155_v28, 4  ;;  %v3112_v1 = vsel %vm3014_vm1, %v2989_v22, 0.0  ;;  %v3138_v4 = vadd.f32 %v3137_v62, %v3136_v54 }
 0x462   : > { %v2852_v29 = vadd.f32 %v9029_v3, %v2851_v57  ;;  %v3100_v57 = vsel %vm3014_vm1, %v2983_v15, 0.0  ;;  %v3180_v61 = vadd.f32 %v3179_v63, %v3178_v52 }
 0x463   : > { %v3157_v46 = vadd.f32 %v3156_v7, %v3155_v28  ;;  %v3139_v51 = vrot.slane %v3138_v4, 1  ;;  %v6533_v28 = vld [vmem:[%s9883_s15] ss:$0 sm:$0xff]  ;;  %s9887_s15 = sld [smem:[#allocation102_spill]] }
 0x464   : > { %v2981_v36 = vmax.f32 %v2852_v29, 0.0  ;;  %v3199_v29 = vld [vmem:[%s9880_s2] sm:$0xff]  ;;  %v3181_v17 = vrot.slane %v3180_v61, 1  ;;  %s9897_s2 = smov 24  }
 0x465   : > { %3226 = vmatpush.msrb.mxu1 %v3199_v29  ;;  %v3140_v47 = vadd.f32 %v3139_v51, %v3138_v4  ;;  %v3635_v4 = vld [vmem:[%s9884_s6 + $0x28] sm:$0xff] }
 0x466   : > { %v3091_v60 = vsel %vm3014_vm1, %v2981_v36, 0.0  ;;  %6058 = vmatmul.msk.f32.vlgmr.msrb.gmra.mxu1 %vm3207_vm5, %v3198_v50  ;;  %v3182_v20 = vadd.f32 %v3181_v17, %v3180_v61  ;;  %v3631_v51 = vld [vmem:[%s9884_s6 + $0x8] sm:$0xff] }
 0x467   : > { %v3092_v9 = vadd.f32 %v3091_v60, %v3090_v48  ;;  %v3158_v60 = vrot.slane %v3157_v46, 2  ;;  %v3195_v40 = vmul.f32 %v9143_v55, %v3140_v47 }
 0x468   : > { %v3197_v0 = vmul.f32 %v9143_v55, %v3182_v20 }
 0x469   : > { %v2854_v19 = vpop.f32.mrf.mxu0  ;;  %v3093_v25 = vrot.slane %v3092_v9, 4  ;;  %v3159_v15 = vadd.f32 %v3158_v60, %v3157_v46 }
 0x46a   : > { %v2855_v16 = vadd.f32 %v9029_v3, %v2854_v19 }
 0x46b   : > { %v3094_v53 = vadd.f32 %v3093_v25, %v3092_v9 }
 0x46c   : > { %v2982_v27 = vmax.f32 %v2855_v16, 0.0  ;;  %v3160_v16 = vrot.slane %v3159_v15, 1 }
 0x46d   : > { %v3095_v43 = vrot.slane %v3094_v53, 2 }
 0x46e   : > { %v3099_v45 = vsel %vm3014_vm1, %v2982_v27, 0.0  ;;  %v3161_v34 = vadd.f32 %v3160_v16, %v3159_v15  ;;  %v3634_v15 = vld [vmem:[%s9884_s6 + $0x20] sm:$0xff] }
 0x46f   : > { %v3101_v13 = vadd.f32 %v3100_v57, %v3099_v45  ;;  %v3096_v35 = vadd.f32 %v3095_v43, %v3094_v53 }
 0x470   : > { %v3196_v41 = vmul.f32 %v9143_v55, %v3161_v34 }
 0x471   : > { %v3103_v32 = vadd.f32 %v3102_v37, %v3101_v13  ;;  %v3097_v48 = vrot.slane %v3096_v35, 1  ;;  %v6534_v13 = vld [vmem:[#allocation13] ss:$0 sm:$0xff] }
 0x473   : > { %v3105_v36 = vadd.f32 %v3104_v23, %v3103_v32  ;;  %v3098_v19 = vadd.f32 %v3097_v48, %v3096_v35  ;;  %v3636_v48 = vld [vmem:[%s9884_s6 + $0x30] sm:$0xff] }
 0x475   : > { %v3107_v56 = vadd.f32 %v3106_v21, %v3105_v36  ;;  %v3193_v18 = vmul.f32 %v9143_v55, %v3098_v19  ;;  %v3632_v19 = vld [vmem:[%s9884_s6 + $0x10] sm:$0xff] }
 0x477   : > { %v3109_v14 = vadd.f32 %v3108_v42, %v3107_v56  ;;  %v3256_v57 = vsel %vm3255_vm6, %v3193_v18, %v9151_v11  ;;  %v6535_v11 = vld [vmem:[#allocation11] ss:$0 sm:$0xff] }
 0x479   : > { %v3111_v3 = vadd.f32 %v3110_v26, %v3109_v14 }
 0x47b   : > { %v3113_v44 = vadd.f32 %v3112_v1, %v3111_v3 }
 0x47d   : > { %v3114_v2 = vrot.slane %v3113_v44, 4 }
 0x47f   : > { %v3115_v5 = vadd.f32 %v3114_v2, %v3113_v44  ;;  %v3637_v2 = vld [vmem:[%s9884_s6 + $0x38] sm:$0xff] }
 0x481   : > { %v3116_v33 = vrot.slane %v3115_v5, 2 }
 0x483   : > { %v3117_v9 = vadd.f32 %v3116_v33, %v3115_v5  ;;  %v3633_v5 = vld [vmem:[%s9884_s6 + $0x18] sm:$0xff] }
 0x485   : > { %v3118_v6 = vrot.slane %v3117_v9, 1 }
 0x487   : > { %v3119_v59 = vadd.f32 %v3118_v6, %v3117_v9  ;;  %v3630_v9 = vld [vmem:[%s9884_s6] sm:$0xff]  ;;  %s9901_s6 = sld [smem:[#allocation115_spill]] }
 0x489   : > { %v3194_v27 = vmul.f32 %v9143_v55, %v3119_v59 }
 0x48b   : > { %v3258_v24 = vsel %vm3257_vm7, %v3194_v27, %v3256_v57 }
 0x48c   : > { %v3260_v8 = vsel %vm3259_vm8, %v3195_v40, %v3258_v24 }
 0x48d   : > { %v3262_v25 = vsel %vm3261_vm9, %v3196_v41, %v3260_v8 }
 0x48e   : > { %v9293_v45 = vsel %vm3263_vm10, %v3197_v0, %v3262_v25 }
 0x48f   : > { %6059 = vmatmul.msk.f32.vlgmr.msrb.gmra.mxu2 %vm3014_vm1, %v9293_v45  ;;  %6060 = vmatmul.msk.f32.vlgmr.msrb.gmra.mxu3 %vm3014_vm1, %v9293_v45 }
 0x4e3   : > { %v3228_v29 = vpop.f32.mrf.mxu1 }
 0x4e4   : > { %v9302_v55 = vadd.f32 %v6535_v11, %v3228_v29 }
 0x512   : > { %v3284_v50 = vpop.f32.mrf.mxu2  ;;  %v3316_v37 = vpop.f32.mrf.mxu3 }
 0x513   : > { %v3285_v12 = vadd.f32 %v6533_v28, %v3284_v50  ;;  %v9300_v31 = vadd.f32 %v6534_v13, %v3316_v37  ;;  %v6536_v37 = vld [vmem:[#allocation17] ss:$0 sm:$0xff] }
 0x515   : > { %3383 = vrot.lane.b32.xlu0 %v3285_v12, %s9724_s11  ;;  %6061 = vmatpush.xpose.msk.msra.mxu1 %vm3319_vm11, %v3285_v12 }
 0x518   : > { %6062 = vmatmul.msk.f32.vlgmr.msra.gmra.mxu1 %vm3319_vm11, %v9302_v55 }
 0x519   : > { %3376 = vmatpush.msrb.mxu1 %v9300_v31 }
 0x51d   : > { %3381 = vrot.lane.b32.xlu0 %v9302_v55, %s9724_s11 }
 0x525   : > { %3422 = vrot.lane.b32.xlu0 %v9300_v31, %s9724_s11 }
 0x52d   : > { %3448 = vrot.lane.b32.xlu0 %v9302_v55, %s9726_s7 }
 0x535   : > { %3514 = vrot.lane.b32.xlu0 %v9302_v55, %s9728_s10 }
 0x587   : > { %v3384_v10 = vpop.permute.xlu0 %3383 }
 0x588   : > { %6064 = vmatpush.xpose.msk.msra.mxu2 %vm3319_vm11, %v3384_v10 }
 0x58f   : > { %v3382_v23 = vpop.permute.xlu0 %3381 }
 0x590   : > { %6065 = vmatmul.msk.f32.vlgmr.msra.gmra.mxu2 %vm3319_vm11, %v3382_v23 }
 0x595   : > { %v3343_v32 = vpop.f32.mrf.mxu1 }
 0x596   : > { %v3346_v58 = vmul.f32 0.17677669, %v3343_v32 }
 0x597   : > { %v3423_v30 = vpop.permute.xlu0 %3422 }
 0x598   : > { %3443 = vmatpush.msra.mxu3 %v3423_v30  ;;  %v3347_v49 = vsel %vm3319_vm11, %v3346_v58, -inf  ;;  %v3600_v30 = vld [vmem:[%s9885_s4 + $0x18] sm:$0xff] }
 0x599   : > { %3348 = vmax.xlane.f32.xlu1 %v3347_v49  ;;  %v3599_v49 = vld [vmem:[%s9885_s4 + $0x10] sm:$0xff] }
 0x59f   : > { %v3449_v35 = vpop.permute.xlu0 %3448 }
 0x5a7   : > { %v3515_v61 = vpop.permute.xlu0 %3514 }
 0x60c   : > { %v3349_v53 = vpop.xlane.xlu1 %3348 }
 0x60d   : > { %v3350_v7 = vsub.f32 %v3346_v58, %v3349_v53 }
 0x60f   : > { %v3351_v36 = vmul.f32 1.442695, %v3350_v7  ;;  %v3598_v7 = vld [vmem:[%s9885_s4 + $0x8] sm:$0xff] }
 0x611   : > { %6553 = vpow2.f32 %v3351_v36  ;;  %v3597_v36 = vld [vmem:[%s9885_s4] sm:$0xff]  ;;  %s9898_s4 = sld [smem:[#allocation112_spill]] }
 0x613   : > { %v3406_v21 = vpop.f32.mrf.mxu2 }
 0x614   : > { %v3409_v38 = vmul.f32 0.17677669, %v3406_v21 }
 0x616   : > { %v3410_v39 = vsel %vm3319_vm11, %v3409_v38, -inf }
 0x617   : > { %v6554_v56 = vpop.eup %6553  ;;  %3411 = vmax.xlane.f32.xlu1 %v3410_v39 }
 0x618   : > { %v3353_v42 = vsel %vm3319_vm11, %v6554_v56, 0.0 }
 0x619   : > { %3354 = vadd.xlane.f32.xlu2 %v3353_v42 }
 0x630   : > { %3450 = vrot.lane.b32.xlu1 %v3285_v12, %s9726_s7 }
 0x68a   : > { %v3412_v22 = vpop.xlane.xlu1 %3411 }
 0x68b   : > { %v3413_v43 = vsub.f32 %v3409_v38, %v3412_v22 }
 0x68c   : > { %v3355_v54 = vpop.xlane.xlu2 %3354 }
 0x68d   : > { %v3414_v46 = vmul.f32 1.442695, %v3413_v43  ;;  %6555 = vrcp.f32 %v3355_v54  ;;  %v3665_v54 = vld [vmem:[%s9886_s1 + $0x18] sm:$0xff] }
 0x68f   : > { %6557 = vpow2.f32 %v3414_v46  ;;  %v3696_v46 = vld [vmem:[%s9887_s15 + $0x18] sm:$0xff] }
 0x693   : > { %v6556_v14 = vpop.eup %6555 }
 0x694   : > { %v3357_v26 = vmul.f32 %v6556_v14, %v6554_v56  ;;  %v3664_v14 = vld [vmem:[%s9886_s1 + $0x10] sm:$0xff] }
 0x695   : > { %v6558_v52 = vpop.eup %6557 }
 0x696   : > { %6063 = vmatmul.msk.f32.vlgmr.msrb.gmra.mxu1 %vm3319_vm11, %v3357_v26  ;;  %v3416_v3 = vsel %vm3319_vm11, %v6558_v52, 0.0 }
 0x697   : > { %3417 = vadd.xlane.f32.xlu2 %v3416_v3 }
 0x6a2   : > { %v3451_v1 = vpop.permute.xlu1 %3450 }
 0x6a3   : > { %6067 = vmatpush.xpose.msk.msra.mxu1 %vm3319_vm11, %v3451_v1  ;;  %v3662_v1 = vld [vmem:[%s9886_s1] sm:$0xff] }
 0x6a6   : > { %6068 = vmatmul.msk.f32.vlgmr.msra.gmra.mxu1 %vm3319_vm11, %v3449_v35 }
 0x6af   : > { %3516 = vrot.lane.b32.xlu2 %v3285_v12, %s9728_s10 }
 0x70a   : > { %v3418_v62 = vpop.xlane.xlu2 %3417 }
 0x70b   : > { %6559 = vrcp.f32 %v3418_v62  ;;  %v6537_v62 = vld [vmem:[#allocation10] ss:$0 sm:$0xff] }
 0x711   : > { %v6560_v60 = vpop.eup %6559 }
 0x712   : > { %v3420_v44 = vmul.f32 %v6560_v60, %v6558_v52  ;;  %v3517_v63 = vpop.permute.xlu2 %3516  ;;  %v3663_v52 = vld [vmem:[%s9886_s1 + $0x8] sm:$0xff]  ;;  %s9896_s1 = smov 16  }
 0x713   : > { %6070 = vmatpush.xpose.msk.msrb.mxu3 %vm3319_vm11, %v3517_v63  ;;  %v9335_v33 = vpop.f32.mrf.mxu1 }
 0x714   : > { %6066 = vmatmul.msk.f32.vlgmr.msra.gmra.mxu3 %vm3319_vm11, %v3420_v44 }
 0x717   : > { %3650 = vmatpush.msra.mxu3 %v3637_v2  ;;  %v6538_v2 = vld [vmem:[#allocation14] ss:$0 sm:$0xff] }
 0x719   : > { %3651 = vmatpush.msra.mxu3 %v3636_v48 }
 0x71b   : > { %3652 = vmatpush.msra.mxu3 %v3635_v4 }
 0x71c   : > { %6071 = vmatmul.msk.f32.vlgmr.msrb.gmra.mxu3 %vm3319_vm11, %v3515_v61 }
 0x71d   : > { %3653 = vmatpush.msra.mxu3 %v3634_v15  ;;  %v6539_v15 = vld [vmem:[#allocation19] ss:$0 sm:$0xff] }
 0x71f   : > { %3654 = vmatpush.msra.mxu3 %v3633_v5 }
 0x721   : > { %3655 = vmatpush.msra.mxu3 %v3632_v19 }
 0x723   : > { %3656 = vmatpush.msra.mxu3 %v3631_v51  ;;  %v3473_v16 = vpop.f32.mrf.mxu1 }
 0x724   : > { %v3476_v17 = vmul.f32 0.17677669, %v3473_v16 }
 0x725   : > { %3657 = vmatpush.msra.mxu3 %v3630_v9 }
 0x726   : > { %6074 = vmatmul.msk.f32.vlgmr.msra.gmra.mxu3 %vm3014_vm1, %v9293_v45  ;;  %v3477_v6 = vsel %vm3319_vm11, %v3476_v17, -inf }
 0x727   : > { %3478 = vmax.xlane.f32.xlu0 %v3477_v6 }
 0x73b   : > { %3488 = vrot.lane.b32.xlu0 %v9300_v31, %s9726_s7 }
 0x797   : > { %v3445_v18 = vpop.f32.mrf.mxu3 }
 0x79a   : > { %v3479_v47 = vpop.xlane.xlu0 %3478 }
 0x79b   : > { %v3480_v59 = vsub.f32 %v3476_v17, %v3479_v47 }
 0x79d   : > { %v3481_v34 = vmul.f32 1.442695, %v3480_v59 }
 0x79f   : > { %6561 = vpow2.f32 %v3481_v34  ;;  %v3539_v20 = vpop.f32.mrf.mxu3 }
 0x7a0   : > { %v3542_v27 = vmul.f32 0.17677669, %v3539_v20 }
 0x7a2   : > { %v3543_v40 = vsel %vm3319_vm11, %v3542_v27, -inf }
 0x7a3   : > { %3544 = vmax.xlane.f32.xlu2 %v3543_v40 }
 0x7a5   : > { %v6562_v57 = vpop.eup %6561 }
 0x7a6   : > { %v3483_v41 = vsel %vm3319_vm11, %v6562_v57, 0.0 }
 0x7a7   : > { %3484 = vadd.xlane.f32.xlu1 %v3483_v41 }
 0x7a9   : > { %v3659_v12 = vpop.f32.mrf.mxu3 }
 0x7ad   : > { %v3489_v24 = vpop.permute.xlu0 %3488 }
 0x7ae   : > { %3509 = vmatpush.msrb.mxu2 %v3489_v24 }
 0x7b0   : > { %3620 = vmatpush.msra.mxu2 %v3600_v30 }
 0x7b2   : > { %3621 = vmatpush.msra.mxu2 %v3599_v49 }
 0x7b4   : > { %3622 = vmatpush.msra.mxu2 %v3598_v7 }
 0x7b6   : > { %3623 = vmatpush.msra.mxu2 %v3597_v36 }
 0x7c0   : > { %3554 = vrot.lane.b32.xlu1 %v9300_v31, %s9728_s10  ;;  %v9353_v31 = vadd.f32 %v6536_v37, %v3659_v12 }
 0x816   : > { %v3545_v0 = vpop.xlane.xlu2 %3544 }
 0x817   : > { %v3546_v8 = vsub.f32 %v3542_v27, %v3545_v0 }
 0x819   : > { %v3547_v25 = vmul.f32 1.442695, %v3546_v8 }
 0x81a   : > { %v3485_v45 = vpop.xlane.xlu1 %3484 }
 0x81b   : > { %6563 = vpow2.f32 %v3547_v25 }
 0x81c   : > { %6565 = vrcp.f32 %v3485_v45 }
 0x821   : > { %v6564_v28 = vpop.eup %6563 }
 0x822   : > { %v6566_v13 = vpop.eup %6565  ;;  %v3549_v11 = vsel %vm3319_vm11, %v6564_v28, 0.0 }
 0x823   : > { %v3487_v29 = vmul.f32 %v6566_v13, %v6562_v57  ;;  %3550 = vadd.xlane.f32.xlu2 %v3549_v11 }
 0x825   : > { %6069 = vmatmul.msk.f32.vlgmr.msrb.gmra.mxu2 %vm3319_vm11, %v3487_v29 }
 0x826   : > { %3713 = vmatpush.msrb.mxu2 %v3696_v46 }
 0x832   : > { %v3555_v50 = vpop.permute.xlu1 %3554 }
 0x833   : > { %3575 = vmatpush.msrb.mxu1 %v3555_v50 }
 0x835   : > { %3685 = vmatpush.msra.mxu1 %v3665_v54 }
 0x837   : > { %3686 = vmatpush.msra.mxu1 %v3664_v14 }
 0x839   : > { %3687 = vmatpush.msra.mxu1 %v3663_v52 }
 0x83b   : > { %3581 = vrot.lane.b32.xlu2 %v3445_v18, %s9722_s5  ;;  %s9888_s5 = smov %s9887_s15  ;;  %3688 = vmatpush.msra.mxu1 %v3662_v1  ;;  %s9889_s15 = sld [smem:[#allocation100_spill]] }
 0x83c   : > { %v3695_v26 = vld [vmem:[%s9888_s5 + $0x10] sm:$0xff]  ;;  %v3694_v3 = vld [vmem:[%s9888_s5 + $0x8] sm:$0xff]  ;;  %v3693_v35 = vld [vmem:[%s9888_s5] sm:$0xff]  ;;  %s9900_s5 = sld [smem:[#allocation117_spill]] }
 0x83d   : > { %3714 = vmatpush.msrb.mxu2 %v3695_v26 }
 0x83f   : > { %3715 = vmatpush.msrb.mxu2 %v3694_v3 }
 0x841   : > { %3716 = vmatpush.msrb.mxu2 %v3693_v35 }
 0x843   : > { %3782 = vrot.lane.b32.xlu2 %v9353_v31, %s9724_s11 }
 0x896   : > { %v3551_v10 = vpop.xlane.xlu2 %3550 }
 0x897   : > { %6567 = vrcp.f32 %v3551_v10 }
 0x89d   : > { %v6568_v23 = vpop.eup %6567 }
 0x89e   : > { %v3553_v32 = vmul.f32 %v6568_v23, %v6564_v28  ;;  %v3582_v21 = vpop.permute.xlu2 %3581 }
 0x89f   : > { %v3592_v39 = vsel %vm3319_vm11, %v9335_v33, %v3582_v21 }
 0x8a0   : > { %6072 = vmatmul.msk.f32.vlgmr.msrb.gmra.mxu1 %vm3319_vm11, %v3553_v32 }
 0x8a6   : > { %v3783_v33 = vpop.permute.xlu2 %3782 }
 0x8a8   : > { %v3511_v58 = vpop.f32.mrf.mxu2 }
 0x8a9   : > { %3585 = vrot.lane.b32.xlu0 %v3511_v58, %s9732_s12 }
 0x91b   : > { %v3586_v38 = vpop.permute.xlu0 %3585 }
 0x91c   : > { %v3593_v56 = vsel %vm2548_vm0, %v3592_v39, %v3586_v38 }
 0x91d   : > { %v3577_v53 = vpop.f32.mrf.mxu1 }
 0x91e   : > { %3589 = vrot.lane.b32.xlu1 %v3577_v53, %s9730_s0 }
 0x990   : > { %v3590_v42 = vpop.permute.xlu1 %3589 }
 0x991   : > { %v3595_v22 = vsel %vm3594_vm12, %v3593_v56, %v3590_v42 }
 0x992   : > { %v3596_v43 = vadd.f32 %v3595_v22, %v9302_v55 }
 0x994   : > { %6073 = vmatmul.msk.f32.vlgmr.msra.gmra.mxu2 %vm3207_vm5, %v3596_v43 }
 0xa17   : > { %v3625_v55 = vpop.f32.mrf.mxu2 }
 0xa18   : > { %v3626_v60 = vadd.f32 %v6537_v62, %v3625_v55 }
 0xa1a   : > { %v3628_v44 = vmax.f32 %v3626_v60, 0.0 }
 0xa1c   : > { %v3629_v63 = vadd.f32 %v3628_v44, %v3596_v43  ;;  %v4000_v44 = vld [vmem:[%s9889_s15 + $0x18] sm:$0xff] }
 0xa1e   : > { %6075 = vmatmul.msk.f32.vlgmr.msra.gmra.mxu1 %vm3207_vm5, %v3629_v63  ;;  %6076 = vmatmul.msk.f32.vlgmr.msrb.gmra.mxu2 %vm3207_vm5, %v3629_v63 }
 0xa9b   : > { %v3690_v48 = vpop.f32.mrf.mxu1 }
 0xa9c   : > { %v3691_v4 = vadd.f32 %v6538_v2, %v3690_v48 }
 0xa9e   : > { %3784 = vrot.lane.b32.xlu0 %v3691_v4, %s9724_s11  ;;  %6077 = vmatpush.xpose.msk.msrb.mxu1 %vm3319_vm11, %v3691_v4 }
 0xaa1   : > { %v3718_v5 = vpop.f32.mrf.mxu2  ;;  %6078 = vmatmul.msk.f32.vlgmr.msrb.gmra.mxu1 %vm3319_vm11, %v9353_v31 }
 0xaa2   : > { %v9384_v61 = vadd.f32 %v6539_v15, %v3718_v5  ;;  %v4034_v5 = vld [vmem:[#allocation29 + $0x18] sm:$0xff] }
 0xaa4   : > { %3823 = vrot.lane.b32.xlu2 %v9384_v61, %s9724_s11  ;;  %3777 = vmatpush.msra.mxu2 %v9384_v61  ;;  %s9890_s11 = smov %s9889_s15  ;;  %s9893_s15 = smov 120  }
 0xaa5   : > { %v3999_v63 = vld [vmem:[%s9890_s11 + $0x10] sm:$0xff]  ;;  %v3997_v15 = vld [vmem:[%s9890_s11] sm:$0xff] }
 0xafe   : > { %v3824_v19 = vpop.permute.xlu2 %3823 }
 0xaff   : > { %3844 = vmatpush.msra.mxu1 %v3824_v19  ;;  %v4031_v19 = vld [vmem:[#allocation29] sm:$0xff] }
 0xb10   : > { %v3785_v51 = vpop.permute.xlu0 %3784 }
 0xb11   : > { %6080 = vmatpush.xpose.msk.msrb.mxu3 %vm3319_vm11, %v3785_v51  ;;  %v4030_v51 = vld [vmem:[#allocation20] sm:$0xff] }
 0xb14   : > { %6081 = vmatmul.msk.f32.vlgmr.msrb.gmra.mxu3 %vm3319_vm11, %v3783_v33  ;;  %v4032_v33 = vld [vmem:[#allocation29 + $0x8] sm:$0xff] }
 0xb1e   : > { %v3744_v9 = vpop.f32.mrf.mxu1 }
 0xb1f   : > { %v3747_v16 = vmul.f32 0.17677669, %v3744_v9 }
 0xb21   : > { %v3748_v17 = vsel %vm3319_vm11, %v3747_v16, -inf }
 0xb22   : > { %3749 = vmax.xlane.f32.xlu1 %v3748_v17 }
 0xb95   : > { %v3750_v6 = vpop.xlane.xlu1 %3749 }
 0xb96   : > { %v3751_v18 = vsub.f32 %v3747_v16, %v3750_v6 }
 0xb97   : > { %v3807_v47 = vpop.f32.mrf.mxu3 }
 0xb98   : > { %v3752_v59 = vmul.f32 1.442695, %v3751_v18  ;;  %v3810_v34 = vmul.f32 0.17677669, %v3807_v47 }
 0xb9a   : > { %6569 = vpow2.f32 %v3752_v59  ;;  %v3811_v20 = vsel %vm3319_vm11, %v3810_v34, -inf }
 0xb9b   : > { %3812 = vmax.xlane.f32.xlu0 %v3811_v20  ;;  %v4096_v20 = vld [vmem:[#allocation31 + $0x18] sm:$0xff] }
 0xba0   : > { %v6570_v27 = vpop.eup %6569 }
 0xba1   : > { %v3754_v40 = vsel %vm3319_vm11, %v6570_v27, 0.0 }
 0xba2   : > { %3755 = vadd.xlane.f32.xlu2 %v3754_v40  ;;  %v4095_v40 = vld [vmem:[#allocation31 + $0x10] sm:$0xff] }
 0xbaf   : > { %3851 = vrot.lane.b32.xlu0 %v3691_v4, %s9726_s7 }
 0xbb7   : > { %3917 = vrot.lane.b32.xlu0 %v3691_v4, %s9728_s10  ;;  %v3998_v4 = vld [vmem:[%s9890_s11 + $0x8] sm:$0xff] }
 0xbba   : > { %3915 = vrot.lane.b32.xlu2 %v9353_v31, %s9728_s10 }
 0xc0e   : > { %v3813_v57 = vpop.xlane.xlu0 %3812 }
 0xc0f   : > { %v3814_v41 = vsub.f32 %v3810_v34, %v3813_v57 }
 0xc11   : > { %v3815_v24 = vmul.f32 1.442695, %v3814_v41  ;;  %v4094_v41 = vld [vmem:[#allocation31 + $0x8] sm:$0xff] }
 0xc13   : > { %6571 = vpow2.f32 %v3815_v24 }
 0xc15   : > { %v3756_v0 = vpop.xlane.xlu2 %3755 }
 0xc16   : > { %6573 = vrcp.f32 %v3756_v0  ;;  %v4093_v0 = vld [vmem:[#allocation31] sm:$0xff] }
 0xc19   : > { %v6572_v8 = vpop.eup %6571 }
 0xc1a   : > { %v3817_v25 = vsel %vm3319_vm11, %v6572_v8, 0.0 }
 0xc1b   : > { %3818 = vadd.xlane.f32.xlu1 %v3817_v25 }
 0xc1c   : > { %v6574_v45 = vpop.eup %6573 }
 0xc1d   : > { %v3758_v28 = vmul.f32 %v6574_v45, %v6570_v27  ;;  %v3916_v12 = vpop.permute.xlu2 %3915  ;;  %v6540_v45 = vld [vmem:[#allocation16] ss:$0 sm:$0xff] }
 0xc1f   : > { %6079 = vmatmul.msk.f32.vlgmr.msra.gmra.mxu2 %vm3319_vm11, %v3758_v28 }
 0xc21   : > { %v3852_v13 = vpop.permute.xlu0 %3851 }
 0xc22   : > { %6083 = vmatpush.xpose.msk.msrb.mxu2 %vm3319_vm11, %v3852_v13 }
 0xc29   : > { %v3918_v11 = vpop.permute.xlu0 %3917 }
 0xc2a   : > { %6086 = vmatpush.xpose.msk.msrb.mxu1 %vm3319_vm11, %v3918_v11 }
 0xc34   : > { %3849 = vrot.lane.b32.xlu1 %v9353_v31, %s9726_s7 }
 0xc8e   : > { %v3819_v29 = vpop.xlane.xlu1 %3818 }
 0xc8f   : > { %6575 = vrcp.f32 %v3819_v29 }
 0xc95   : > { %v6576_v50 = vpop.eup %6575 }
 0xc96   : > { %v3821_v37 = vmul.f32 %v6576_v50, %v6572_v8  ;;  %v6541_v8 = vld [vmem:[#allocation25] ss:$0 sm:$0xff]  ;;  %v6542_v50 = vld [vmem:[#allocation22] ss:$0 sm:$0xff] }
 0xc98   : > { %6082 = vmatmul.msk.f32.vlgmr.msra.gmra.mxu1 %vm3319_vm11, %v3821_v37  ;;  %v6543_v37 = vld [vmem:[#allocation26] ss:$0 sm:$0xff] }
 0xc99   : > { %4054 = vmatpush.msra.mxu1 %v4034_v5  ;;  %v4430_v5 = vld [vmem:[#allocation40] sm:$0xff] }
 0xca0   : > { %6087 = vmatmul.msk.f32.vlgmr.msrb.gmra.mxu1 %vm3319_vm11, %v3916_v12 }
 0xca2   : > { %v3779_v49 = vpop.f32.mrf.mxu2 }
 0xca6   : > { %v3850_v10 = vpop.permute.xlu1 %3849 }
 0xca7   : > { %6084 = vmatmul.msk.f32.vlgmr.msrb.gmra.mxu2 %vm3319_vm11, %v3850_v10 }
 0xd15   : > { %v3846_v23 = vpop.f32.mrf.mxu1 }
 0xd1d   : > { %v3940_v32 = vpop.f32.mrf.mxu1 }
 0xd1e   : > { %v3943_v58 = vmul.f32 0.17677669, %v3940_v32 }
 0xd20   : > { %v3944_v30 = vsel %vm3319_vm11, %v3943_v58, -inf }
 0xd21   : > { %3945 = vmax.xlane.f32.xlu1 %v3944_v30 }
 0xd2a   : > { %v3874_v53 = vpop.f32.mrf.mxu2 }
 0xd2b   : > { %v3877_v7 = vmul.f32 0.17677669, %v3874_v53 }
 0xd2d   : > { %v3878_v36 = vsel %vm3319_vm11, %v3877_v7, -inf }
 0xd2e   : > { %3879 = vmax.xlane.f32.xlu0 %v3878_v36 }
 0xd3a   : > { %3889 = vrot.lane.b32.xlu1 %v9384_v61, %s9726_s7  ;;  %s9891_s7 = smov 8  }
 0xd94   : > { %v3946_v21 = vpop.xlane.xlu1 %3945 }
 0xd95   : > { %v3947_v38 = vsub.f32 %v3943_v58, %v3946_v21 }
 0xd97   : > { %v3948_v39 = vmul.f32 1.442695, %v3947_v38 }
 0xd99   : > { %6577 = vpow2.f32 %v3948_v39 }
 0xd9f   : > { %v6578_v56 = vpop.eup %6577 }
 0xda0   : > { %v3950_v42 = vsel %vm3319_vm11, %v6578_v56, 0.0 }
 0xda1   : > { %v3880_v22 = vpop.xlane.xlu0 %3879  ;;  %3951 = vadd.xlane.f32.xlu0 %v3950_v42 }
 0xda2   : > { %v3881_v43 = vsub.f32 %v3877_v7, %v3880_v22 }
 0xda4   : > { %v3882_v54 = vmul.f32 1.442695, %v3881_v43 }
 0xda6   : > { %6579 = vpow2.f32 %v3882_v54 }
 0xdac   : > { %v6580_v46 = vpop.eup %6579  ;;  %v3890_v14 = vpop.permute.xlu1 %3889 }
 0xdad   : > { %3910 = vmatpush.msra.mxu3 %v3890_v14  ;;  %v3884_v26 = vsel %vm3319_vm11, %v6580_v46, 0.0 }
 0xdae   : > { %3885 = vadd.xlane.f32.xlu2 %v3884_v26 }
 0xdaf   : > { %4020 = vmatpush.msrb.mxu3 %v4000_v44 }
 0xdb1   : > { %4021 = vmatpush.msrb.mxu3 %v3999_v63 }
 0xdb3   : > { %4022 = vmatpush.msrb.mxu3 %v3998_v4  ;;  %v4432_v4 = vld [vmem:[#allocation40 + $0x10] sm:$0xff] }
 0xdb5   : > { %3982 = vrot.lane.b32.xlu0 %v3846_v23, %s9891_s7  ;;  %4023 = vmatpush.msrb.mxu3 %v3997_v15  ;;  %v4431_v15 = vld [vmem:[#allocation40 + $0x8] sm:$0xff] }
 0xdc6   : > { %3955 = vrot.lane.b32.xlu2 %v9384_v61, %s9728_s10  ;;  %v4033_v61 = vld [vmem:[#allocation29 + $0x10] sm:$0xff]  ;;  %s9892_s10 = sld [smem:[#allocation106_spill]] }
 0xdc7   : > { %4055 = vmatpush.msra.mxu1 %v4033_v61 }
 0xdc9   : > { %4056 = vmatpush.msra.mxu1 %v4032_v33 }
 0xdcb   : > { %4057 = vmatpush.msra.mxu1 %v4031_v19 }
 0xdcc   : > { %6090 = vmatmul.msk.f32.vlgmr.msra.gmra.mxu1 %vm3207_vm5, %v4030_v51  ;;  %v4065_v34 = vld [vmem:[%s9892_s10 + $0x18] sm:$0xff]  ;;  %v4064_v27 = vld [vmem:[%s9892_s10 + $0x10] sm:$0xff]  ;;  %v4063_v57 = vld [vmem:[%s9892_s10 + $0x8] sm:$0xff] }
 0xdcd   : > { %v4062_v24 = vld [vmem:[%s9892_s10] sm:$0xff] }
 0xe14   : > { %v3952_v52 = vpop.xlane.xlu0 %3951 }
 0xe15   : > { %6581 = vrcp.f32 %v3952_v52 }
 0xe1b   : > { %v6582_v1 = vpop.eup %6581 }
 0xe1c   : > { %v3954_v62 = vmul.f32 %v6582_v1, %v6578_v56 }
 0xe21   : > { %v3886_v3 = vpop.xlane.xlu2 %3885 }
 0xe22   : > { %6583 = vrcp.f32 %v3886_v3 }
 0xe27   : > { %v3983_v9 = vpop.permute.xlu0 %3982 }
 0xe28   : > { %v6584_v35 = vpop.eup %6583  ;;  %v3993_v16 = vsel %vm3319_vm11, %v3779_v49, %v3983_v9 }
 0xe29   : > { %v3888_v55 = vmul.f32 %v6584_v35, %v6580_v46  ;;  %v3956_v60 = vpop.permute.xlu2 %3955 }
 0xe2a   : > { %3976 = vmatpush.msra.mxu2 %v3956_v60 }
 0xe2b   : > { %6085 = vmatmul.msk.f32.vlgmr.msra.gmra.mxu3 %vm3319_vm11, %v3888_v55  ;;  %6088 = vmatmul.msk.f32.vlgmr.msra.gmra.mxu2 %vm3319_vm11, %v3954_v62 }
 0xe2c   : > { %4085 = vmatpush.msrb.mxu2 %v4065_v34  ;;  %4113 = vmatpush.msra.mxu3 %v4096_v20 }
 0xe2e   : > { %4086 = vmatpush.msrb.mxu2 %v4064_v27  ;;  %4114 = vmatpush.msra.mxu3 %v4095_v40 }
 0xe30   : > { %4087 = vmatpush.msrb.mxu2 %v4063_v57  ;;  %4115 = vmatpush.msra.mxu3 %v4094_v41 }
 0xe32   : > { %4088 = vmatpush.msrb.mxu2 %v4062_v24  ;;  %4116 = vmatpush.msra.mxu3 %v4093_v0 }
 0xeae   : > { %v3912_v2 = vpop.f32.mrf.mxu3  ;;  %v3978_v48 = vpop.f32.mrf.mxu2 }
 0xeaf   : > { %3990 = vrot.lane.b32.xlu1 %v3978_v48, %s9730_s0  ;;  %3986 = vrot.lane.b32.xlu0 %v3912_v2, %s9732_s12  ;;  %s9894_s0 = smov 112   ;;  %s9895_s12 = smov 104   ;;  %v4433_v48 = vld [vmem:[#allocation40 + $0x18] sm:$0xff] }
 0xf21   : > { %v3987_v17 = vpop.permute.xlu0 %3986  ;;  %v3991_v6 = vpop.permute.xlu1 %3990 }
 0xf22   : > { %v3994_v18 = vsel %vm2548_vm0, %v3993_v16, %v3987_v17 }
 0xf23   : > { %v3995_v47 = vsel %vm3594_vm12, %v3994_v18, %v3991_v6 }
 0xf24   : > { %v3996_v59 = vadd.f32 %v3995_v47, %v9353_v31  ;;  %v4059_v31 = vpop.f32.mrf.mxu1 }
 0xf25   : > { %v9434_v25 = vadd.f32 %v6541_v8, %v4059_v31 }
 0xf26   : > { %6089 = vmatmul.msk.f32.vlgmr.msrb.gmra.mxu3 %vm3207_vm5, %v3996_v59 }
 0xf27   : > { %4182 = vrot.lane.b32.xlu0 %v9434_v25, %s9893_s15 }
 0xf99   : > { %v4183_v30 = vpop.permute.xlu0 %4182 }
 0xfa9   : > { %v4025_v28 = vpop.f32.mrf.mxu3 }
 0xfaa   : > { %v4026_v13 = vadd.f32 %v6540_v45, %v4025_v28 }
 0xfac   : > { %v4028_v11 = vmax.f32 %v4026_v13, 0.0 }
 0xfae   : > { %v9438_v29 = vadd.f32 %v4028_v11, %v3996_v59 }
 0xfb0   : > { %6091 = vmatmul.msk.f32.vlgmr.msrb.gmra.mxu2 %vm3207_vm5, %v9438_v29  ;;  %6092 = vmatmul.msk.f32.vlgmr.msra.gmra.mxu3 %vm3207_vm5, %v9438_v29 }
0x1033   : > { %v4090_v12 = vpop.f32.mrf.mxu2  ;;  %v4118_v10 = vpop.f32.mrf.mxu3 }
0x1034   : > { %v4091_v23 = vadd.f32 %v6542_v50, %v4090_v12  ;;  %v9444_v32 = vadd.f32 %v6543_v37, %v4118_v10  ;;  %v6544_v10 = vld [vmem:[#allocation35] ss:$0 sm:$0xff] }
0x1036   : > { %4223 = vrot.lane.b32.xlu0 %v9444_v32, %s9893_s15  ;;  %4177 = vmatpush.msra.mxu2 %v9444_v32 }
0x1037   : > { %4184 = vrot.lane.b32.xlu2 %v4091_v23, %s9893_s15  ;;  %6093 = vmatpush.xpose.msk.msrb.mxu1 %vm3319_vm11, %v4091_v23 }
0x103a   : > { %6094 = vmatmul.msk.f32.vlgmr.msrb.gmra.mxu1 %vm3319_vm11, %v9434_v25 }
0x1091   : > { %v4185_v58 = vpop.permute.xlu2 %4184 }
0x1092   : > { %6096 = vmatpush.xpose.msk.msrb.mxu3 %vm3319_vm11, %v4185_v58 }
0x1095   : > { %6097 = vmatmul.msk.f32.vlgmr.msrb.gmra.mxu3 %vm3319_vm11, %v4183_v30  ;;  %v4400_v30 = vld [vmem:[#allocation28 + $0x18] sm:$0xff] }
0x10a8   : > { %v4224_v49 = vpop.permute.xlu0 %4223 }
0x10a9   : > { %4244 = vmatpush.msra.mxu1 %v4224_v49  ;;  %v4399_v49 = vld [vmem:[#allocation28 + $0x10] sm:$0xff] }
0x10b7   : > { %v4144_v53 = vpop.f32.mrf.mxu1 }
0x10b8   : > { %v4147_v7 = vmul.f32 0.17677669, %v4144_v53  ;;  %v4398_v53 = vld [vmem:[#allocation28 + $0x8] sm:$0xff] }
0x10ba   : > { %v4148_v36 = vsel %vm3319_vm11, %v4147_v7, -inf }
0x10bb   : > { %4149 = vmax.xlane.f32.xlu1 %v4148_v36 }
0x1118   : > { %v4207_v21 = vpop.f32.mrf.mxu3 }
0x1119   : > { %v4210_v38 = vmul.f32 0.17677669, %v4207_v21 }
0x111b   : > { %v4211_v39 = vsel %vm3319_vm11, %v4210_v38, -inf }
0x111c   : > { %4212 = vmax.xlane.f32.xlu2 %v4211_v39 }
0x112e   : > { %v4150_v56 = vpop.xlane.xlu1 %4149 }
0x112f   : > { %v4151_v42 = vsub.f32 %v4147_v7, %v4150_v56  ;;  %v4397_v7 = vld [vmem:[#allocation28] sm:$0xff] }
0x1131   : > { %v4152_v22 = vmul.f32 1.442695, %v4151_v42 }
0x1133   : > { %6585 = vpow2.f32 %v4152_v22 }
0x1134   : > { %4251 = vrot.lane.b32.xlu2 %v4091_v23, %s9894_s0 }
0x1139   : > { %v6586_v43 = vpop.eup %6585 }
0x113a   : > { %v4154_v54 = vsel %vm3319_vm11, %v6586_v43, 0.0 }
0x113b   : > { %4155 = vadd.xlane.f32.xlu0 %v4154_v54  ;;  %v4492_v54 = vld [vmem:[#allocation41 + $0x18] sm:$0xff] }
0x113c   : > { %4317 = vrot.lane.b32.xlu2 %v4091_v23, %s9895_s12 }
0x114f   : > { %4315 = vrot.lane.b32.xlu0 %v9434_v25, %s9895_s12 }
0x118f   : > { %v4213_v46 = vpop.xlane.xlu2 %4212 }
0x1190   : > { %v4214_v14 = vsub.f32 %v4210_v38, %v4213_v46  ;;  %v4460_v46 = vld [vmem:[%s9898_s4 + $0x10] sm:$0xff] }
0x1192   : > { %v4215_v26 = vmul.f32 1.442695, %v4214_v14  ;;  %v4491_v14 = vld [vmem:[#allocation41 + $0x10] sm:$0xff] }
0x1194   : > { %6587 = vpow2.f32 %v4215_v26  ;;  %v4459_v26 = vld [vmem:[%s9898_s4 + $0x8] sm:$0xff] }
0x1197   : > { %v4252_v52 = vpop.permute.xlu2 %4251 }
0x1198   : > { %6099 = vmatpush.xpose.msk.msrb.mxu2 %vm3319_vm11, %v4252_v52  ;;  %v4490_v52 = vld [vmem:[#allocation41 + $0x8] sm:$0xff] }
0x119a   : > { %v6588_v3 = vpop.eup %6587 }
0x119b   : > { %v4217_v1 = vsel %vm3319_vm11, %v6588_v3, 0.0 }
0x119c   : > { %4218 = vadd.xlane.f32.xlu1 %v4217_v1  ;;  %v4489_v1 = vld [vmem:[#allocation41] sm:$0xff] }
0x119f   : > { %v4318_v35 = vpop.permute.xlu2 %4317 }
0x11a0   : > { %6102 = vmatpush.xpose.msk.msrb.mxu1 %vm3319_vm11, %v4318_v35  ;;  %v6545_v35 = vld [vmem:[#allocation23] ss:$0 sm:$0xff] }
0x11ae   : > { %v4156_v62 = vpop.xlane.xlu0 %4155 }
0x11af   : > { %6589 = vrcp.f32 %v4156_v62 }
0x11b5   : > { %v6590_v55 = vpop.eup %6589  ;;  %4249 = vrot.lane.b32.xlu1 %v9434_v25, %s9894_s0 }
0x11b6   : > { %v4158_v60 = vmul.f32 %v6590_v55, %v6586_v43  ;;  %v4461_v43 = vld [vmem:[%s9898_s4 + $0x18] sm:$0xff] }
0x11b8   : > { %6095 = vmatmul.msk.f32.vlgmr.msra.gmra.mxu2 %vm3319_vm11, %v4158_v60 }
0x11c1   : > { %v4316_v61 = vpop.permute.xlu0 %4315 }
0x120f   : > { %v4219_v44 = vpop.xlane.xlu1 %4218 }
0x1210   : > { %6591 = vrcp.f32 %v4219_v44  ;;  %v6546_v44 = vld [vmem:[#allocation32] ss:$0 sm:$0xff] }
0x1216   : > { %v6592_v63 = vpop.eup %6591 }
0x1217   : > { %v4221_v2 = vmul.f32 %v6592_v63, %v6588_v3  ;;  %v4458_v3 = vld [vmem:[%s9898_s4] sm:$0xff]  ;;  %v6547_v63 = vld [vmem:[#allocation37] ss:$0 sm:$0xff]  ;;  %s9899_s4 = sld [smem:[#allocation114_spill]] }
0x1219   : > { %6098 = vmatmul.msk.f32.vlgmr.msra.gmra.mxu1 %vm3319_vm11, %v4221_v2 }
0x121a   : > { %4450 = vmatpush.msra.mxu1 %v4433_v48 }
0x121c   : > { %4451 = vmatpush.msra.mxu1 %v4432_v4 }
0x121e   : > { %4452 = vmatpush.msra.mxu1 %v4431_v15 }
0x1220   : > { %4453 = vmatpush.msra.mxu1 %v4430_v5 }
0x1221   : > { %6103 = vmatmul.msk.f32.vlgmr.msrb.gmra.mxu1 %vm3319_vm11, %v4316_v61 }
0x1227   : > { %v4250_v33 = vpop.permute.xlu1 %4249 }
0x1228   : > { %6100 = vmatmul.msk.f32.vlgmr.msrb.gmra.mxu2 %vm3319_vm11, %v4250_v33 }
0x1229   : > { %6106 = vmatmul.msk.f32.vlgmr.msra.gmra.mxu1 %vm3207_vm5, %v9438_v29 }
0x123b   : > { %v4179_v17 = vpop.f32.mrf.mxu2 }
0x1296   : > { %v4246_v19 = vpop.f32.mrf.mxu1 }
0x129e   : > { %v4340_v51 = vpop.f32.mrf.mxu1 }
0x129f   : > { %v4343_v9 = vmul.f32 0.17677669, %v4340_v51 }
0x12a1   : > { %v4344_v16 = vsel %vm3319_vm11, %v4343_v9, -inf }
0x12a2   : > { %4345 = vmax.xlane.f32.xlu1 %v4344_v16 }
0x12a6   : > { %v4455_v23 = vpop.f32.mrf.mxu1 }
0x12ab   : > { %v4274_v6 = vpop.f32.mrf.mxu2 }
0x12ac   : > { %v4277_v18 = vmul.f32 0.17677669, %v4274_v6 }
0x12ae   : > { %v4278_v47 = vsel %vm3319_vm11, %v4277_v18, -inf }
0x12af   : > { %4279 = vmax.xlane.f32.xlu2 %v4278_v47 }
0x12bb   : > { %4289 = vrot.lane.b32.xlu1 %v9444_v32, %s9894_s0 }
0x1315   : > { %v4346_v59 = vpop.xlane.xlu1 %4345 }
0x1316   : > { %v4347_v34 = vsub.f32 %v4343_v9, %v4346_v59 }
0x1318   : > { %v4348_v20 = vmul.f32 1.442695, %v4347_v34 }
0x131a   : > { %6593 = vpow2.f32 %v4348_v20 }
0x1320   : > { %v6594_v27 = vpop.eup %6593 }
0x1321   : > { %v4350_v40 = vsel %vm3319_vm11, %v6594_v27, 0.0 }
0x1322   : > { %v4280_v57 = vpop.xlane.xlu2 %4279  ;;  %4351 = vadd.xlane.f32.xlu2 %v4350_v40 }
0x1323   : > { %v4281_v41 = vsub.f32 %v4277_v18, %v4280_v57 }
0x1325   : > { %v4282_v24 = vmul.f32 1.442695, %v4281_v41 }
0x1327   : > { %6595 = vpow2.f32 %v4282_v24 }
0x132d   : > { %v6596_v0 = vpop.eup %6595  ;;  %v4290_v8 = vpop.permute.xlu1 %4289 }
0x132e   : > { %4310 = vmatpush.msra.mxu3 %v4290_v8  ;;  %v4284_v31 = vsel %vm3319_vm11, %v6596_v0, 0.0 }
0x132f   : > { %4285 = vadd.xlane.f32.xlu0 %v4284_v31 }
0x1330   : > { %4420 = vmatpush.msrb.mxu3 %v4400_v30 }
0x1332   : > { %4421 = vmatpush.msrb.mxu3 %v4399_v49 }
0x1334   : > { %4422 = vmatpush.msrb.mxu3 %v4398_v53 }
0x1336   : > { %4423 = vmatpush.msrb.mxu3 %v4397_v7 }
0x133a   : > { %4382 = vrot.lane.b32.xlu2 %v4246_v19, %s9891_s7 }
0x1343   : > { %4355 = vrot.lane.b32.xlu0 %v9444_v32, %s9895_s12  ;;  %v9485_v32 = vadd.f32 %v6544_v10, %v4455_v23 }
0x1395   : > { %v4352_v13 = vpop.xlane.xlu2 %4351 }
0x139d   : > { %v4383_v36 = vpop.permute.xlu2 %4382 }
0x139e   : > { %v4393_v38 = vsel %vm3319_vm11, %v4179_v17, %v4383_v36 }
0x13a2   : > { %v4286_v45 = vpop.xlane.xlu0 %4285 }
0x13a3   : > { %6597 = vrcp.f32 %v4286_v45 }
0x13a4   : > { %6599 = vrcp.f32 %v4352_v13 }
0x13a9   : > { %v6598_v28 = vpop.eup %6597 }
0x13aa   : > { %v4288_v11 = vmul.f32 %v6598_v28, %v6596_v0  ;;  %v6600_v29 = vpop.eup %6599 }
0x13ab   : > { %v4354_v50 = vmul.f32 %v6600_v29, %v6594_v27 }
0x13ac   : > { %6101 = vmatmul.msk.f32.vlgmr.msra.gmra.mxu3 %vm3319_vm11, %v4288_v11 }
0x13ad   : > { %4509 = vmatpush.msra.mxu3 %v4492_v54 }
0x13af   : > { %4510 = vmatpush.msra.mxu3 %v4491_v14 }
0x13b1   : > { %4511 = vmatpush.msra.mxu3 %v4490_v52 }
0x13b3   : > { %4512 = vmatpush.msra.mxu3 %v4489_v1 }
0x13b5   : > { %v4356_v37 = vpop.permute.xlu0 %4355 }
0x13b6   : > { %4376 = vmatpush.msra.mxu2 %v4356_v37 }
0x13b7   : > { %6104 = vmatmul.msk.f32.vlgmr.msra.gmra.mxu2 %vm3319_vm11, %v4354_v50 }
0x13b8   : > { %4481 = vmatpush.msrb.mxu2 %v4461_v43 }
0x13ba   : > { %4482 = vmatpush.msrb.mxu2 %v4460_v46 }
0x13bc   : > { %4483 = vmatpush.msrb.mxu2 %v4459_v26 }
0x13be   : > { %4484 = vmatpush.msrb.mxu2 %v4458_v3 }
0x142f   : > { %v4312_v12 = vpop.f32.mrf.mxu3 }
0x1430   : > { %4386 = vrot.lane.b32.xlu0 %v4312_v12, %s9896_s1 }
0x1438   : > { %4578 = vrot.lane.b32.xlu0 %v9485_v32, %s9893_s15 }
0x143a   : > { %v4378_v58 = vpop.f32.mrf.mxu2 }
0x143b   : > { %4390 = vrot.lane.b32.xlu1 %v4378_v58, %s9897_s2 }
0x14a2   : > { %v4387_v21 = vpop.permute.xlu0 %4386 }
0x14a3   : > { %v4394_v39 = vsel %vm2548_vm0, %v4393_v38, %v4387_v21 }
0x14aa   : > { %v4579_v61 = vpop.permute.xlu0 %4578 }
0x14ad   : > { %v4391_v56 = vpop.permute.xlu1 %4390 }
0x14ae   : > { %v4395_v42 = vsel %vm3594_vm12, %v4394_v39, %v4391_v56 }
0x14af   : > { %v4396_v22 = vadd.f32 %v4395_v42, %v9434_v25 }
0x14b1   : > { %6105 = vmatmul.msk.f32.vlgmr.msrb.gmra.mxu3 %vm3207_vm5, %v4396_v22 }
0x1534   : > { %v4425_v25 = vpop.f32.mrf.mxu3 }
0x1535   : > { %v4426_v62 = vadd.f32 %v6545_v35, %v4425_v25 }
0x1537   : > { %v4428_v55 = vmax.f32 %v4426_v62, 0.0 }
0x1539   : > { %v4429_v60 = vadd.f32 %v4428_v55, %v4396_v22 }
0x153b   : > { %6107 = vmatmul.msk.f32.vlgmr.msrb.gmra.mxu2 %vm3207_vm5, %v4429_v60  ;;  %6108 = vmatmul.msk.f32.vlgmr.msra.gmra.mxu3 %vm3207_vm5, %v4429_v60 }
0x15be   : > { %v4486_v2 = vpop.f32.mrf.mxu2  ;;  %v4514_v48 = vpop.f32.mrf.mxu3 }
0x15bf   : > { %v4487_v4 = vadd.f32 %v6546_v44, %v4486_v2  ;;  %v9501_v15 = vadd.f32 %v6547_v63, %v4514_v48  ;;  %v4796_v44 = vld [vmem:[#allocation38 + $0x18] sm:$0xff]  ;;  %v4795_v63 = vld [vmem:[#allocation38 + $0x10] sm:$0xff]  ;;  %v4794_v2 = vld [vmem:[#allocation38 + $0x8] sm:$0xff] }
0x15c0   : > { %v4793_v48 = vld [vmem:[#allocation38] sm:$0xff] }
0x15c1   : > { %4619 = vrot.lane.b32.xlu0 %v9501_v15, %s9893_s15  ;;  %4573 = vmatpush.msra.mxu2 %v9501_v15 }
0x15c2   : > { %4580 = vrot.lane.b32.xlu2 %v4487_v4, %s9893_s15  ;;  %6109 = vmatpush.xpose.msk.msrb.mxu1 %vm3319_vm11, %v4487_v4 }
0x15c5   : > { %6110 = vmatmul.msk.f32.vlgmr.msrb.gmra.mxu1 %vm3319_vm11, %v9485_v32 }
0x161c   : > { %v4581_v5 = vpop.permute.xlu2 %4580 }
0x161d   : > { %6112 = vmatpush.xpose.msk.msrb.mxu3 %vm3319_vm11, %v4581_v5 }
0x1620   : > { %6113 = vmatmul.msk.f32.vlgmr.msrb.gmra.mxu3 %vm3319_vm11, %v4579_v61 }
0x1633   : > { %v4620_v33 = vpop.permute.xlu0 %4619 }
0x1634   : > { %4640 = vmatpush.msra.mxu1 %v4620_v33 }
0x1642   : > { %v4540_v19 = vpop.f32.mrf.mxu1 }
0x1643   : > { %v4543_v51 = vmul.f32 0.17677669, %v4540_v19 }
0x1645   : > { %v4544_v9 = vsel %vm3319_vm11, %v4543_v51, -inf }
0x1646   : > { %4545 = vmax.xlane.f32.xlu1 %v4544_v9  ;;  %v4858_v9 = vld [vmem:[#allocation43 + $0x18] sm:$0xff] }
0x16a3   : > { %v4603_v16 = vpop.f32.mrf.mxu3 }
0x16a4   : > { %v4606_v17 = vmul.f32 0.17677669, %v4603_v16  ;;  %v4889_v16 = vld [vmem:[#allocation47 + $0x18] sm:$0xff] }
0x16a6   : > { %v4607_v6 = vsel %vm3319_vm11, %v4606_v17, -inf }
0x16a7   : > { %4608 = vmax.xlane.f32.xlu2 %v4607_v6  ;;  %v4888_v6 = vld [vmem:[#allocation47 + $0x10] sm:$0xff] }
0x16b9   : > { %v4546_v18 = vpop.xlane.xlu1 %4545 }
0x16ba   : > { %v4547_v47 = vsub.f32 %v4543_v51, %v4546_v18  ;;  %v4856_v18 = vld [vmem:[#allocation43 + $0x8] sm:$0xff] }
0x16bc   : > { %v4548_v59 = vmul.f32 1.442695, %v4547_v47  ;;  %v4887_v47 = vld [vmem:[#allocation47 + $0x8] sm:$0xff] }
0x16be   : > { %6601 = vpow2.f32 %v4548_v59  ;;  %v4855_v59 = vld [vmem:[#allocation43] sm:$0xff] }
0x16bf   : > { %4647 = vrot.lane.b32.xlu2 %v4487_v4, %s9894_s0 }
0x16c4   : > { %v6602_v34 = vpop.eup %6601 }
0x16c5   : > { %v4550_v20 = vsel %vm3319_vm11, %v6602_v34, 0.0 }
0x16c6   : > { %4551 = vadd.xlane.f32.xlu0 %v4550_v20  ;;  %v4829_v20 = vld [vmem:[#allocation46 + $0x10] sm:$0xff] }
0x16c7   : > { %4711 = vrot.lane.b32.xlu2 %v9485_v32, %s9895_s12 }
0x16da   : > { %4713 = vrot.lane.b32.xlu0 %v4487_v4, %s9895_s12 }
0x171a   : > { %v4609_v27 = vpop.xlane.xlu2 %4608 }
0x171b   : > { %v4610_v40 = vsub.f32 %v4606_v17, %v4609_v27  ;;  %v4857_v17 = vld [vmem:[#allocation43 + $0x10] sm:$0xff]  ;;  %v4828_v27 = vld [vmem:[#allocation46 + $0x8] sm:$0xff] }
0x171d   : > { %v4611_v57 = vmul.f32 1.442695, %v4610_v40  ;;  %v4827_v40 = vld [vmem:[#allocation46] sm:$0xff] }
0x171f   : > { %6603 = vpow2.f32 %v4611_v57  ;;  %v4826_v57 = vld [vmem:[%s9899_s4] sm:$0x1]  ;;  %s9907_s4 = sld [smem:[#allocation130_spill]] }
0x1722   : > { %v4648_v41 = vpop.permute.xlu2 %4647 }
0x1723   : > { %6115 = vmatpush.xpose.msk.msrb.mxu2 %vm3319_vm11, %v4648_v41  ;;  %v6548_v41 = vld [vmem:[#allocation34] ss:$0 sm:$0xff] }
0x1725   : > { %v6604_v24 = vpop.eup %6603 }
0x1726   : > { %v4613_v0 = vsel %vm3319_vm11, %v6604_v24, 0.0 }
0x1727   : > { %4614 = vadd.xlane.f32.xlu1 %v4613_v0 }
0x172a   : > { %v4712_v50 = vpop.permute.xlu2 %4711 }
0x1739   : > { %v4552_v8 = vpop.xlane.xlu0 %4551 }
0x173a   : > { %6605 = vrcp.f32 %v4552_v8 }
0x1740   : > { %v6606_v31 = vpop.eup %6605  ;;  %4645 = vrot.lane.b32.xlu1 %v9485_v32, %s9894_s0 }
0x1741   : > { %v4554_v45 = vmul.f32 %v6606_v31, %v6602_v34  ;;  %v4886_v34 = vld [vmem:[#allocation47] sm:$0xff] }
0x1743   : > { %6111 = vmatmul.msk.f32.vlgmr.msra.gmra.mxu2 %vm3319_vm11, %v4554_v45  ;;  %v4831_v45 = vld [vmem:[%s9900_s5] sm:$0x1]  ;;  %s9908_s5 = sld [smem:[#allocation131_spill]] }
0x174c   : > { %v4714_v28 = vpop.permute.xlu0 %4713 }
0x174d   : > { %6118 = vmatpush.xpose.msk.msrb.mxu1 %vm3319_vm11, %v4714_v28 }
0x179a   : > { %v4615_v13 = vpop.xlane.xlu1 %4614 }
0x179b   : > { %6607 = vrcp.f32 %v4615_v13 }
0x17a1   : > { %v6608_v11 = vpop.eup %6607 }
0x17a2   : > { %v4617_v29 = vmul.f32 %v6608_v11, %v6604_v24  ;;  %v6549_v11 = vld [vmem:[%s9901_s6] ss:$0 sm:$0xff]  ;;  %s9906_s6 = sld [smem:[#allocation122_spill]] }
0x17a4   : > { %6114 = vmatmul.msk.f32.vlgmr.msra.gmra.mxu1 %vm3319_vm11, %v4617_v29  ;;  %v6550_v29 = vld [vmem:[%s9902_s8] ss:$0 sm:$0xff]  ;;  %s9903_s8 = sld [smem:[#allocation116_spill]] }
0x17ac   : > { %6119 = vmatmul.msk.f32.vlgmr.msrb.gmra.mxu1 %vm3319_vm11, %v4712_v50 }
0x17b2   : > { %v4646_v37 = vpop.permute.xlu1 %4645 }
0x17b3   : > { %6116 = vmatmul.msk.f32.vlgmr.msrb.gmra.mxu2 %vm3319_vm11, %v4646_v37 }
0x17c6   : > { %v4575_v30 = vpop.f32.mrf.mxu2 }
0x1821   : > { %v4642_v12 = vpop.f32.mrf.mxu1 }
0x1829   : > { %v4736_v10 = vpop.f32.mrf.mxu1 }
0x182a   : > { %v4739_v23 = vmul.f32 0.17677669, %v4736_v10 }
0x182c   : > { %v4740_v58 = vsel %vm3319_vm11, %v4739_v23, -inf }
0x182d   : > { %4741 = vmax.xlane.f32.xlu0 %v4740_v58 }
0x1836   : > { %v4670_v49 = vpop.f32.mrf.mxu2 }
0x1837   : > { %v4673_v53 = vmul.f32 0.17677669, %v4670_v49 }
0x1839   : > { %v4674_v7 = vsel %vm3319_vm11, %v4673_v53, -inf }
0x183a   : > { %4675 = vmax.xlane.f32.xlu1 %v4674_v7 }
0x1841   : > { %4685 = vrot.lane.b32.xlu0 %v9501_v15, %s9894_s0 }
0x18a0   : > { %v4742_v36 = vpop.xlane.xlu0 %4741 }
0x18a1   : > { %v4743_v21 = vsub.f32 %v4739_v23, %v4742_v36 }
0x18a3   : > { %v4744_v38 = vmul.f32 1.442695, %v4743_v21 }
0x18a5   : > { %6609 = vpow2.f32 %v4744_v38 }
0x18ab   : > { %v6610_v39 = vpop.eup %6609 }
0x18ac   : > { %v4746_v56 = vsel %vm3319_vm11, %v6610_v39, 0.0 }
0x18ad   : > { %4747 = vadd.xlane.f32.xlu1 %v4746_v56  ;;  %v4676_v42 = vpop.xlane.xlu1 %4675 }
0x18ae   : > { %v4677_v22 = vsub.f32 %v4673_v53, %v4676_v42 }
0x18b0   : > { %v4678_v43 = vmul.f32 1.442695, %v4677_v22 }
0x18b2   : > { %6611 = vpow2.f32 %v4678_v43 }
0x18b3   : > { %v4686_v54 = vpop.permute.xlu0 %4685 }
0x18b4   : > { %4706 = vmatpush.msra.mxu3 %v4686_v54 }
0x18b6   : > { %4816 = vmatpush.msrb.mxu3 %v4796_v44 }
0x18b8   : > { %v6612_v46 = vpop.eup %6611  ;;  %4817 = vmatpush.msrb.mxu3 %v4795_v63 }
0x18b9   : > { %v4680_v14 = vsel %vm3319_vm11, %v6612_v46, 0.0 }
0x18ba   : > { %4681 = vadd.xlane.f32.xlu2 %v4680_v14  ;;  %4818 = vmatpush.msrb.mxu3 %v4794_v2 }
0x18bc   : > { %4819 = vmatpush.msrb.mxu3 %v4793_v48 }
0x18c6   : > { %4778 = vrot.lane.b32.xlu1 %v4642_v12, %s9891_s7 }
0x18d2   : > { %4751 = vrot.lane.b32.xlu2 %v9501_v15, %s9895_s12 }
0x1920   : > { %v4748_v26 = vpop.xlane.xlu1 %4747 }
0x1921   : > { %6613 = vrcp.f32 %v4748_v26 }
0x1927   : > { %v6614_v3 = vpop.eup %6613 }
0x1928   : > { %v4750_v35 = vmul.f32 %v6614_v3, %v6610_v39 }
0x192d   : > { %v4682_v52 = vpop.xlane.xlu2 %4681 }
0x192e   : > { %6615 = vrcp.f32 %v4682_v52 }
0x1934   : > { %v6616_v1 = vpop.eup %6615 }
0x1935   : > { %v4684_v25 = vmul.f32 %v6616_v1, %v6612_v46  ;;  %v4752_v62 = vpop.permute.xlu2 %4751 }
0x1936   : > { %4772 = vmatpush.msra.mxu2 %v4752_v62 }
0x1937   : > { %6117 = vmatmul.msk.f32.vlgmr.msra.gmra.mxu3 %vm3319_vm11, %v4684_v25  ;;  %6120 = vmatmul.msk.f32.vlgmr.msra.gmra.mxu2 %vm3319_vm11, %v4750_v35 }
0x1938   : > { %v4779_v4 = vpop.permute.xlu1 %4778  ;;  %4878 = vmatpush.msrb.mxu2 %v4858_v9  ;;  %4906 = vmatpush.msra.mxu3 %v4889_v16 }
0x1939   : > { %v4789_v15 = vsel %vm3319_vm11, %v4575_v30, %v4779_v4 }
0x193a   : > { %4879 = vmatpush.msrb.mxu2 %v4857_v17  ;;  %4907 = vmatpush.msra.mxu3 %v4888_v6 }
0x193c   : > { %4880 = vmatpush.msrb.mxu2 %v4856_v18  ;;  %4908 = vmatpush.msra.mxu3 %v4887_v47 }
0x193e   : > { %4881 = vmatpush.msrb.mxu2 %v4855_v59  ;;  %4909 = vmatpush.msra.mxu3 %v4886_v34 }
0x19ba   : > { %v4708_v55 = vpop.f32.mrf.mxu3  ;;  %v4774_v60 = vpop.f32.mrf.mxu2 }
0x19bb   : > { %4782 = vrot.lane.b32.xlu0 %v4708_v55, %s9896_s1  ;;  %4786 = vrot.lane.b32.xlu2 %v4774_v60, %s9897_s2 }
0x1a15   : > { %v4787_v61 = vpop.permute.xlu2 %4786 }
0x1a2d   : > { %v4783_v5 = vpop.permute.xlu0 %4782 }
0x1a2e   : > { %v4790_v33 = vsel %vm2548_vm0, %v4789_v15, %v4783_v5 }
0x1a2f   : > { %v4791_v19 = vsel %vm3594_vm12, %v4790_v33, %v4787_v61 }
0x1a30   : > { %v4792_v51 = vadd.f32 %v4791_v19, %v9485_v32  ;;  %v4830_v32 = vld [vmem:[#allocation46 + $0x18] sm:$0xff] }
0x1a31   : > { %4847 = vmatpush.msra.mxu1 %v4830_v32 }
0x1a32   : > { %6121 = vmatmul.msk.f32.vlgmr.msrb.gmra.mxu3 %vm3207_vm5, %v4792_v51 }
0x1a33   : > { %4848 = vmatpush.msra.mxu1 %v4829_v20 }
0x1a35   : > { %4849 = vmatpush.msra.mxu1 %v4828_v27 }
0x1a37   : > { %4850 = vmatpush.msra.mxu1 %v4827_v40 }
0x1a38   : > { %6122 = vmatmul.msk.f32.vlgmr.msra.gmra.mxu1 %vm3207_vm5, %v4826_v57 }
0x1ab5   : > { %v4821_v24 = vpop.f32.mrf.mxu3  ;;  %v4852_v28 = vpop.f32.mrf.mxu1 }
0x1ab6   : > { %v4822_v0 = vadd.f32 %v6548_v41, %v4821_v24  ;;  %v9551_v13 = vadd.f32 %v4852_v28, %v4831_v45  ;;  %v5194_v45 = vld [vmem:[#allocation44 + $0x18] sm:$0xff] }
0x1ab8   : > { %v4824_v8 = vmax.f32 %v4822_v0, 0.0  ;;  %4976 = vrot.lane.b32.xlu1 %v9551_v13, %s9893_s15 }
0x1aba   : > { %v4825_v31 = vadd.f32 %v4824_v8, %v4792_v51 }
0x1abc   : > { %6123 = vmatmul.msk.f32.vlgmr.msrb.gmra.mxu2 %vm3207_vm5, %v4825_v31  ;;  %6124 = vmatmul.msk.f32.vlgmr.msra.gmra.mxu3 %vm3207_vm5, %v4825_v31 }
0x1b2a   : > { %v4977_v58 = vpop.permute.xlu1 %4976 }
0x1b3f   : > { %v4883_v50 = vpop.f32.mrf.mxu2  ;;  %v4911_v37 = vpop.f32.mrf.mxu3 }
0x1b40   : > { %v4884_v12 = vadd.f32 %v6549_v11, %v4883_v50  ;;  %v9557_v10 = vadd.f32 %v6550_v29, %v4911_v37  ;;  %v5193_v29 = vld [vmem:[#allocation44 + $0x10] sm:$0xff]  ;;  %v5192_v50 = vld [vmem:[#allocation44 + $0x8] sm:$0xff]  ;;  %v5191_v37 = vld [vmem:[#allocation44] sm:$0xff] }
0x1b42   : > { %4971 = vmatpush.msra.mxu2 %v9557_v10  ;;  %4978 = vrot.lane.b32.xlu0 %v4884_v12, %s9893_s15 }
0x1b43   : > { %6125 = vmatpush.xpose.msk.msrb.mxu1 %vm3319_vm11, %v4884_v12 }
0x1b46   : > { %6126 = vmatmul.msk.f32.vlgmr.msrb.gmra.mxu1 %vm3319_vm11, %v9551_v13 }
0x1bb4   : > { %v4979_v23 = vpop.permute.xlu0 %4978 }
0x1bb5   : > { %6128 = vmatpush.xpose.msk.msrb.mxu3 %vm3319_vm11, %v4979_v23 }
0x1bb8   : > { %6129 = vmatmul.msk.f32.vlgmr.msrb.gmra.mxu3 %vm3319_vm11, %v4977_v58 }
0x1bc3   : > { %v4937_v30 = vpop.f32.mrf.mxu1 }
0x1bc4   : > { %v4940_v49 = vmul.f32 0.17677669, %v4937_v30 }
0x1bc6   : > { %v4942_v53 = vsel %vm4941_vm13, %v4940_v49, -inf }
0x1bc7   : > { %4943 = vmax.xlane.f32.xlu2 %v4942_v53 }
0x1c3a   : > { %v4944_v7 = vpop.xlane.xlu2 %4943 }
0x1c3b   : > { %v4945_v36 = vsub.f32 %v4940_v49, %v4944_v7  ;;  %v5001_v21 = vpop.f32.mrf.mxu3  ;;  %v5224_v7 = vld [vmem:[#allocation52 + $0x18] sm:$0xff] }
0x1c3c   : > { %v5004_v38 = vmul.f32 0.17677669, %v5001_v21  ;;  %v5223_v21 = vld [vmem:[#allocation52 + $0x10] sm:$0xff] }
0x1c3d   : > { %v4946_v39 = vmul.f32 1.442695, %v4945_v36  ;;  %v5252_v36 = vld [vmem:[#allocation53 + $0x18] sm:$0xff] }
0x1c3e   : > { %v5005_v56 = vsel %vm4941_vm13, %v5004_v38, -inf }
0x1c3f   : > { %6617 = vpow2.f32 %v4946_v39  ;;  %5006 = vmax.xlane.f32.xlu0 %v5005_v56  ;;  %v5222_v39 = vld [vmem:[#allocation52 + $0x8] sm:$0xff] }
0x1c40   : > { %v5250_v56 = vld [vmem:[#allocation53 + $0x8] sm:$0xff] }
0x1c45   : > { %v6618_v42 = vpop.eup %6617 }
0x1c46   : > { %v4948_v22 = vsel %vm4941_vm13, %v6618_v42, 0.0 }
0x1c47   : > { %4949 = vadd.xlane.f32.xlu1 %v4948_v22  ;;  %v5249_v22 = vld [vmem:[#allocation53] sm:$0xff] }
0x1c53   : > { %5045 = vrot.lane.b32.xlu0 %v4884_v12, %s9894_s0 }
0x1c5b   : > { %5111 = vrot.lane.b32.xlu0 %v4884_v12, %s9895_s12 }
0x1c60   : > { %5017 = vrot.lane.b32.xlu1 %v9557_v10, %s9893_s15  ;;  %s9913_s15 = sld [smem:[#allocation86_spill]] }
0x1c63   : > { %5109 = vrot.lane.b32.xlu0 %v9551_v13, %s9895_s12 }
0x1cb2   : > { %v5007_v43 = vpop.xlane.xlu0 %5006 }
0x1cb3   : > { %v5008_v54 = vsub.f32 %v5004_v38, %v5007_v43  ;;  %v5251_v38 = vld [vmem:[#allocation53 + $0x10] sm:$0xff] }
0x1cb5   : > { %v5009_v46 = vmul.f32 1.442695, %v5008_v54 }
0x1cb7   : > { %6619 = vpow2.f32 %v5009_v46 }
0x1cba   : > { %v4950_v14 = vpop.xlane.xlu1 %4949 }
0x1cbb   : > { %6621 = vrcp.f32 %v4950_v14 }
0x1cbd   : > { %v6620_v26 = vpop.eup %6619 }
0x1cbe   : > { %v5011_v52 = vsel %vm4941_vm13, %v6620_v26, 0.0 }
0x1cbf   : > { %5012 = vadd.xlane.f32.xlu2 %v5011_v52  ;;  %v5277_v52 = vld [vmem:[#allocation50 + $0x10] sm:$0xff] }
0x1cc1   : > { %v6622_v3 = vpop.eup %6621 }
0x1cc2   : > { %v4952_v1 = vmul.f32 %v6622_v3, %v6618_v42  ;;  %v5221_v42 = vld [vmem:[#allocation52] sm:$0xff]  ;;  %v5276_v3 = vld [vmem:[#allocation50 + $0x8] sm:$0xff] }
0x1cc4   : > { %6127 = vmatmul.msk.f32.vlgmr.msra.gmra.mxu2 %vm3319_vm11, %v4952_v1  ;;  %v5275_v1 = vld [vmem:[#allocation50] sm:$0xff] }
0x1cc5   : > { %v5046_v35 = vpop.permute.xlu0 %5045 }
0x1cc6   : > { %6131 = vmatpush.xpose.msk.msrb.mxu2 %vm3319_vm11, %v5046_v35 }
0x1ccd   : > { %v5112_v62 = vpop.permute.xlu0 %5111 }
0x1cd2   : > { %v5018_v25 = vpop.permute.xlu1 %5017 }
0x1cd3   : > { %5038 = vmatpush.msra.mxu1 %v5018_v25 }
0x1cd5   : > { %6134 = vmatpush.xpose.msk.msrb.mxu1 %vm3319_vm11, %v5112_v62  ;;  %v5110_v2 = vpop.permute.xlu0 %5109 }
0x1cd7   : > { %5043 = vrot.lane.b32.xlu2 %v9551_v13, %s9894_s0 }
0x1d32   : > { %v5013_v55 = vpop.xlane.xlu2 %5012 }
0x1d33   : > { %6623 = vrcp.f32 %v5013_v55 }
0x1d39   : > { %v6624_v60 = vpop.eup %6623 }
0x1d3a   : > { %v5015_v44 = vmul.f32 %v6624_v60, %v6620_v26  ;;  %v5044_v63 = vpop.permute.xlu2 %5043  ;;  %v5278_v26 = vld [vmem:[#allocation50 + $0x18] sm:$0xff] }
0x1d3b   : > { %6132 = vmatmul.msk.f32.vlgmr.msrb.gmra.mxu2 %vm3319_vm11, %v5044_v63 }
0x1d3c   : > { %6130 = vmatmul.msk.f32.vlgmr.msra.gmra.mxu1 %vm3319_vm11, %v5015_v44 }
0x1d3d   : > { %5241 = vmatpush.msra.mxu1 %v5224_v7 }
0x1d3f   : > { %5242 = vmatpush.msra.mxu1 %v5223_v21 }
0x1d41   : > { %5243 = vmatpush.msra.mxu1 %v5222_v39 }
0x1d43   : > { %5244 = vmatpush.msra.mxu1 %v5221_v42 }
0x1d44   : > { %6135 = vmatmul.msk.f32.vlgmr.msrb.gmra.mxu1 %vm3319_vm11, %v5110_v2  ;;  %v5308_v2 = vld [vmem:[#allocation58 + $0x18] sm:$0xff] }
0x1d45   : > { %5325 = vmatpush.msrb.mxu1 %v5308_v2 }
0x1d47   : > { %v4973_v48 = vpop.f32.mrf.mxu2 }
0x1db9   : > { %v5040_v4 = vpop.f32.mrf.mxu1 }
0x1dbe   : > { %v5068_v15 = vpop.f32.mrf.mxu2 }
0x1dbf   : > { %v5071_v5 = vmul.f32 0.17677669, %v5068_v15  ;;  %v5335_v15 = vld [vmem:[#allocation59 + $0x10] sm:$0xff] }
0x1dc1   : > { %v5134_v61 = vpop.f32.mrf.mxu1  ;;  %v5072_v33 = vsel %vm4941_vm13, %v5071_v5, -inf }
0x1dc2   : > { %v5137_v19 = vmul.f32 0.17677669, %v5134_v61  ;;  %5073 = vmax.xlane.f32.xlu2 %v5072_v33  ;;  %v5334_v61 = vld [vmem:[#allocation59 + $0x8] sm:$0xff]  ;;  %v5305_v33 = vld [vmem:[#allocation58] sm:$0xff] }
0x1dc4   : > { %v5138_v51 = vsel %vm4941_vm13, %v5137_v19, -inf }
0x1dc5   : > { %5139 = vmax.xlane.f32.xlu1 %v5138_v51  ;;  %v5279_v51 = vld [vmem:[%s9906_s6] sm:$0x1]  ;;  %s2476_s6 = scalar_lea.vmem [#allocation61], %s8815_s3 }
0x1dde   : > { %5083 = vrot.lane.b32.xlu1 %v9557_v10, %s9894_s0  ;;  %s9911_s0 = sld [smem:[#allocation134_spill]] }
0x1e35   : > { %v5074_v9 = vpop.xlane.xlu2 %5073 }
0x1e36   : > { %v5075_v16 = vsub.f32 %v5071_v5, %v5074_v9  ;;  %v5306_v5 = vld [vmem:[#allocation58 + $0x8] sm:$0xff] }
0x1e38   : > { %v5076_v17 = vmul.f32 1.442695, %v5075_v16  ;;  %v5140_v6 = vpop.xlane.xlu1 %5139 }
0x1e39   : > { %v5141_v18 = vsub.f32 %v5137_v19, %v5140_v6  ;;  %v5333_v19 = vld [vmem:[#allocation59] sm:$0xff] }
0x1e3a   : > { %6625 = vpow2.f32 %v5076_v17 }
0x1e3b   : > { %v5142_v47 = vmul.f32 1.442695, %v5141_v18  ;;  %v5362_v18 = vld [vmem:[#allocation56 + $0x18] sm:$0xff] }
0x1e3d   : > { %6627 = vpow2.f32 %v5142_v47  ;;  %v5361_v47 = vld [vmem:[#allocation56 + $0x10] sm:$0xff] }
0x1e40   : > { %v6626_v59 = vpop.eup %6625 }
0x1e41   : > { %v5078_v34 = vsel %vm4941_vm13, %v6626_v59, 0.0 }
0x1e42   : > { %5079 = vadd.xlane.f32.xlu0 %v5078_v34  ;;  %v5359_v34 = vld [vmem:[#allocation56] sm:$0xff] }
0x1e43   : > { %v6628_v32 = vpop.eup %6627 }
0x1e44   : > { %v5144_v20 = vsel %vm4941_vm13, %v6628_v32, 0.0 }
0x1e45   : > { %5145 = vadd.xlane.f32.xlu2 %v5144_v20 }
0x1e50   : > { %v5084_v27 = vpop.permute.xlu1 %5083 }
0x1e51   : > { %5104 = vmatpush.msra.mxu3 %v5084_v27  ;;  %v5337_v27 = vld [vmem:[%s9908_s5] sm:$0x1] }
0x1e53   : > { %5211 = vmatpush.msrb.mxu3 %v5194_v45 }
0x1e55   : > { %5212 = vmatpush.msrb.mxu3 %v5193_v29 }
0x1e56   : > { %5176 = vrot.lane.b32.xlu0 %v5040_v4, %s9891_s7  ;;  %s9905_s7 = sld [smem:[#allocation124_spill]]  ;;  %v5307_v4 = vld [vmem:[#allocation58 + $0x10] sm:$0xff] }
0x1e57   : > { %5213 = vmatpush.msrb.mxu3 %v5192_v50  ;;  %5326 = vmatpush.msrb.mxu1 %v5307_v4 }
0x1e59   : > { %5214 = vmatpush.msrb.mxu3 %v5191_v37  ;;  %5327 = vmatpush.msrb.mxu1 %v5306_v5 }
0x1e5b   : > { %5328 = vmatpush.msrb.mxu1 %v5305_v33 }
0x1e5c   : > { %v5253_v62 = vld [vmem:[%s9905_s7] sm:$0x1] }
0x1e5d   : > { %5149 = vrot.lane.b32.xlu2 %v9557_v10, %s9895_s12  ;;  %s9909_s12 = sld [smem:[#allocation87_spill]] }
0x1e63   : > { %v5389_v45 = vld [vmem:[%s9909_s12] sm:$0xff] }
0x1eb5   : > { %v5080_v40 = vpop.xlane.xlu0 %5079 }
0x1eb6   : > { %6629 = vrcp.f32 %v5080_v40 }
0x1eb8   : > { %v5146_v57 = vpop.xlane.xlu2 %5145 }
0x1eb9   : > { %6631 = vrcp.f32 %v5146_v57 }
0x1ebc   : > { %v6630_v41 = vpop.eup %6629 }
0x1ebd   : > { %v5082_v24 = vmul.f32 %v6630_v41, %v6626_v59  ;;  %v5360_v59 = vld [vmem:[#allocation56 + $0x8] sm:$0xff] }
0x1ebf   : > { %v6632_v0 = vpop.eup %6631  ;;  %6133 = vmatmul.msk.f32.vlgmr.msra.gmra.mxu3 %vm3319_vm11, %v5082_v24 }
0x1ec0   : > { %v5148_v8 = vmul.f32 %v6632_v0, %v6628_v32  ;;  %v5150_v31 = vpop.permute.xlu2 %5149  ;;  %5295 = vmatpush.msra.mxu3 %v5278_v26  ;;  %v5309_v32 = vld [vmem:[%s9907_s4] sm:$0x1]  ;;  %v5392_v0 = vld [vmem:[%s9909_s12 + $0x18] sm:$0xff]  ;;  %s5430_s4 = sshll.u32 %s2476_s6, 4  ;;  %s5431_s4 = int_to_ptr.vmem [resolvable:$true] %s5430_s4 }
0x1ec1   : > { %5170 = vmatpush.msra.mxu2 %v5150_v31  ;;  %v5390_v31 = vld [vmem:[%s9909_s12 + $0x8] sm:$0xff] }
0x1ec2   : > { %6136 = vmatmul.msk.f32.vlgmr.msra.gmra.mxu2 %vm3319_vm11, %v5148_v8  ;;  %5296 = vmatpush.msra.mxu3 %v5277_v52  ;;  %v5391_v8 = vld [vmem:[%s9909_s12 + $0x10] sm:$0xff] }
0x1ec3   : > { %5266 = vmatpush.msrb.mxu2 %v5252_v36 }
0x1ec4   : > { %5297 = vmatpush.msra.mxu3 %v5276_v3 }
0x1ec5   : > { %5267 = vmatpush.msrb.mxu2 %v5251_v38 }
0x1ec6   : > { %5298 = vmatpush.msra.mxu3 %v5275_v1 }
0x1ec7   : > { %5268 = vmatpush.msrb.mxu2 %v5250_v56 }
0x1ec8   : > { %v5177_v12 = vpop.permute.xlu0 %5176 }
0x1ec9   : > { %v5187_v23 = vsel %vm3319_vm11, %v4973_v48, %v5177_v12  ;;  %5269 = vmatpush.msrb.mxu2 %v5249_v22  ;;  %v5336_v48 = vld [vmem:[#allocation59 + $0x18] sm:$0xff]  ;;  %v5393_v12 = vld [vmem:[%s9913_s15] sm:$0x1] }
0x1ecb   : > { %5350 = vmatpush.msra.mxu2 %v5336_v48 }
0x1ecd   : > { %5351 = vmatpush.msra.mxu2 %v5335_v15 }
0x1ecf   : > { %5352 = vmatpush.msra.mxu2 %v5334_v61 }
0x1ed1   : > { %5353 = vmatpush.msra.mxu2 %v5333_v19 }
0x1f42   : > { %v5106_v28 = vpop.f32.mrf.mxu3 }
0x1f43   : > { %5180 = vrot.lane.b32.xlu1 %v5106_v28, %s9896_s1  ;;  %s9910_s1 = sld [smem:[#allocation129_spill]] }
0x1f45   : > { %v5172_v11 = vpop.f32.mrf.mxu2 }
0x1f46   : > { %5184 = vrot.lane.b32.xlu0 %v5172_v11, %s9897_s2  ;;  %s9904_s2 = sld [smem:[#allocation123_spill]] }
0x1f49   : > { %v5363_v28 = vld [vmem:[%s9910_s1] sm:$0x1]  ;;  %s5420_s1 = scalar_lea.sflag [#allocation4], %s8815_s3 }
0x1f4c   : > { %v5225_v35 = vld [vmem:[%s9904_s2] sm:$0x1]  ;;  %s5428_s2 = scalar_lea.hbm %s9911_s0, %s8294_s22 }
0x1f4d   : > { %s5432_s5 = sshll.u32 %s5428_s2, 4  ;;  %s5433_s5 = int_to_ptr.hbm [resolvable:$true] %s5432_s5 }
0x1f4e   : > { %s7713_s9 = sshra.s32 %s5433_s5, 4  ;;  %s7714_s9 = int_to_ptr.hbm [resolvable:$true] %s7713_s9 }
0x1f4f   : > { %s7715_s10 = scalar_lea.hbm %s7714_s9, 1 }
0x1f50   : > { %p7716_p2 = scmp.ne.s32.totalorder %s7714_s9, %s7715_s10 }
0x1f52   : > { %p7717_p4 = pnand %p7716_p2, %p8325_p11 }
0x1f54   : > { %p7718_p5 = pneg %p7717_p4 }
0x1fb5   : > { %v5181_v10 = vpop.permute.xlu1 %5180 }
0x1fb6   : > { %v5188_v58 = vsel %vm2548_vm0, %v5187_v23, %v5181_v10 }
0x1fb8   : > { %v5185_v30 = vpop.permute.xlu0 %5184 }
0x1fb9   : > { %v5189_v49 = vsel %vm3594_vm12, %v5188_v58, %v5185_v30 }
0x1fba   : > { %v5190_v53 = vadd.f32 %v5189_v49, %v9551_v13  ;;  %v5195_v13 = vld [vmem:[%s9903_s8] sm:$0x1]  ;;  %s9912_s8 = smov %s9911_s0 }
0x1fbb   : > { %s7719_s22 = scalar_lea.hbm %s9912_s8, 2  ;;  %p7720_p12 = scmp.lt.s32.totalorder %s7714_s9, %s9912_s8 }
0x1fbc   : > { %6137 = vmatmul.msk.f32.vlgmr.msrb.gmra.mxu3 %vm3207_vm5, %v5190_v53  ;;  %p7721_p13 = scmp.lt.s32.totalorder %s7719_s22, %s7715_s10 }
0x1fbd   : > { %5379 = vmatpush.msrb.mxu3 %v5362_v18 }
0x1fbe   : > { %p7722_p3 = por %p7721_p13, %p7720_p12 }
0x1fbf   : > { %5380 = vmatpush.msrb.mxu3 %v5361_v47 }
0x1fc0   : > { %p7723_p7 = pnand %p7722_p3, %p7718_p5 }
0x1fc1   : > { %5381 = vmatpush.msrb.mxu3 %v5360_v59 }
0x1fc3   : > { %5382 = vmatpush.msrb.mxu3 %v5359_v34 }
0x203f   : > { %v5216_v43 = vpop.f32.mrf.mxu3 }
0x2040   : > { %v5217_v54 = vadd.f32 %v5216_v43, %v5195_v13 }
0x2042   : > { %v5219_v46 = vmax.f32 %v5217_v54, 0.0 }
0x2044   : > { %v5220_v14 = vadd.f32 %v5219_v46, %v5190_v53 }
0x2046   : > { %6138 = vmatmul.msk.f32.vlgmr.msra.gmra.mxu1 %vm3207_vm5, %v5220_v14  ;;  %6139 = vmatmul.msk.f32.vlgmr.msrb.gmra.mxu2 %vm3207_vm5, %v5220_v14 }
0x2047   : > { %5409 = vmatpush.msra.mxu1 %v5392_v0 }
0x2049   : > { %5410 = vmatpush.msra.mxu1 %v5391_v8 }
0x204b   : > { %5411 = vmatpush.msra.mxu1 %v5390_v31 }
0x204d   : > { %5412 = vmatpush.msra.mxu1 %v5389_v45 }
0x20c3   : > { %v5246_v25 = vpop.f32.mrf.mxu1 }
0x20c4   : > { %v5247_v60 = vadd.f32 %v5246_v25, %v5225_v35 }
0x20c9   : > { %v5271_v55 = vpop.f32.mrf.mxu2 }
0x20ca   : > { %v5272_v44 = vadd.f32 %v5271_v55, %v5253_v62 }
0x20cc   : > { %v5274_v63 = vadd.f32 %v5272_v44, %v5247_v60 }
0x20ce   : > { %6140 = vmatmul.msk.f32.vlgmr.msra.gmra.mxu3 %vm3207_vm5, %v5274_v63 }
0x2151   : > { %v5300_v9 = vpop.f32.mrf.mxu3 }
0x2152   : > { %v5301_v16 = vadd.f32 %v5300_v9, %v5279_v51 }
0x2154   : > { %v5303_v17 = vmax.f32 %v5301_v16, 0.0 }
0x2156   : > { %v5304_v6 = vadd.f32 %v5303_v17, %v5274_v63 }
0x2158   : > { %6141 = vmatmul.msk.f32.vlgmr.msrb.gmra.mxu1 %vm3207_vm5, %v5304_v6  ;;  %6142 = vmatmul.msk.f32.vlgmr.msra.gmra.mxu2 %vm3207_vm5, %v5304_v6 }
0x21d5   : > { %v5330_v20 = vpop.f32.mrf.mxu1 }
0x21d6   : > { %v5331_v57 = vadd.f32 %v5330_v20, %v5309_v32 }
0x21db   : > { %v5355_v40 = vpop.f32.mrf.mxu2 }
0x21dc   : > { %v5356_v41 = vadd.f32 %v5355_v40, %v5337_v27 }
0x21de   : > { %v5358_v24 = vadd.f32 %v5356_v41, %v5331_v57 }
0x21e0   : > { %6143 = vmatmul.msk.f32.vlgmr.msrb.gmra.mxu3 %vm3207_vm5, %v5358_v24 }
0x2263   : > { %v5384_v11 = vpop.f32.mrf.mxu3 }
0x2264   : > { %v5385_v29 = vadd.f32 %v5384_v11, %v5363_v28 }
0x2266   : > { %v5387_v50 = vmax.f32 %v5385_v29, 0.0 }
0x2268   : > { %v5388_v37 = vadd.f32 %v5387_v50, %v5358_v24 }
0x226a   : > { %6144 = vmatmul.msk.f32.vlgmr.msra.gmra.mxu1 %vm3207_vm5, %v5388_v37 }
0x22e7   : > { %v5414_v10 = vpop.f32.mrf.mxu1 }
0x22e8   : > { %v5415_v23 = vadd.f32 %v5414_v10, %v5393_v12 }
0x22ea   : > { %5418 = vst.msk [vmem:[%s2476_s6] sm:$0x1] %vm5417_vm14, %v5415_v23 }
0x22eb   : > { %7726 = shalt.err (!%p7723_p7)
}
0x22ec   : > { %6304 = dma.vmem_to_hbm [thread:$0]  (%p8325_p11), %s5431_s4, 16, %s5433_s5, %s5420_s1  }
0x22ed PF: > { %s9915_s0 = sld [smem:[#allocation135_spill]]  ;;  %p9918_p8 = scmp.ge.s32.totalorder %s7841_s18, 2 }
0x22ee   : > { %s9916_s15 = sld [smem:[#allocation141_spill]] }
0x22f3   : > { %s5444_s3 = sand.u32 1, %s9915_s0  }
0x22f4   : > { %p9917_p6 = scmp.ne.s32.totalorder %s9916_s15, 0  ;;  %s5445_s2 = scalar_lea.sflag [#allocation4], %s5444_s3 }
0x22f6   : > { %p6311_p9 = pnand %p9918_p8, %p9917_p6 }
0x22f8   : > { %p6312_p10 = pneg %p6311_p9 }
0x22fa   : > { %7824 = dma.done.wait (%p6312_p10), %s5445_s2, 16  }
0x22fb   : > { %7826 = vsyncadd (%p6312_p10), %s5445_s2, 4294967280  ;;  %s9919_s18 = sld [smem:[#allocation137_spill]]  ;;  %s9922_s15 = smov %s7837_s16 }
0x22fc   : > { %s9920_s0 = sld [smem:[#allocation136_spill]] }
0x22fd   : > { %s9921_s9 = sld [smem:[#allocation138_spill]] }
0x2301   : > { %p161_p0 = scmp.ge.s32.totalorder %s9919_s18, 4  }
0x2303   : > { %s9923_s16 = smov %s9921_s9  ;;  %163 = sbr.rel (!%p161_p0) target bundleno = 150 (0x96), region = 533 }
0x2308   :  { %5450 = vsyncpa [#allocation3], 1 }
0x2309   :  { %5452 = vsyncpa [#allocation3 + $0x1], 1 }
0x230a   :  { %5453 = vsyncpa [#allocation6], 1 }
0x230b   :  { %5454 = vsyncpa [#allocation9], 1 }
0x230c   :  { %5455 = vsyncpa [#allocation12], 1 }
0x230d   :  { %5456 = vsyncpa [#allocation15], 1 }
0x230e   :  { %5457 = vsyncpa [#allocation18], 1 }
0x230f   :  { %5458 = vsyncpa [#allocation21], 1 }
0x2310   :  { %5459 = vsyncpa [#allocation24], 1 }
0x2311   :  { %5460 = vsyncpa [#allocation27], 1 }
0x2312   :  { %5461 = vsyncpa [#allocation30], 1 }
0x2313   :  { %5462 = vsyncpa [#allocation33], 1 }
0x2314   :  { %5463 = vsyncpa [#allocation36], 1 }
0x2315   :  { %5464 = vsyncpa [#allocation39], 1 }
0x2316   :  { %5465 = vsyncpa [#allocation42], 1 }
0x2317   :  { %5466 = vsyncpa [#allocation45], 1 }
0x2318   :  { %5467 = vsyncpa [#allocation48], 1 }
0x2319   :  { %5468 = vsyncpa [#allocation51], 1 }
0x231a   :  { %5469 = vsyncpa [#allocation54], 1 }
0x231b   :  { %5470 = vsyncpa [#allocation57], 1 }
0x231c   :  { %5471 = vsyncpa [#allocation60], 1 }
0x231d   :  { %5472 = vsyncpa [#allocation4], 1 }
0x231e   :  { %5474 = vsyncpa [#allocation4 + $0x1], 1 }

</bundles_post_ra>
